<compile_context>
chip_gen: v5e
topology: v5e:2x2
jax: 0.10.0
libtpu: 0.0.40
codegen_flags: <defaults>
</compile_context>

<pallas_src>
import functools

import jax
import jax.numpy as jnp
from jax import lax
from jax.experimental import pallas as pl
from jax.experimental.pallas import tpu as pltpu


def _bilstm_block_kernel(T_BLK, T_PAD, hidden,
                         lens_ref, gf_ref, gb_ref, whhf_ref, whhb_ref,
                         of_ref, ob_ref, hT_ref, cT_ref,
                         hf_sc, cf_sc, hb_sc, cb_sc):
    """Fused fwd+bwd LSTM recurrence over one time block of T_BLK steps.

    gf_ref : (T_BLK, B, 4H) f32  fwd pre-gates (x W_ih^T + b), natural time.
    gb_ref : (T_BLK, B, 4H) f32  bwd pre-gates, block fetched at reversed index.
    whh*_ref : (H, 4H) bf16 recurrent weights.
    of_ref/ob_ref : (T_BLK, B, H) per-time hidden outputs (bwd written so the
                    HBM array ends up in natural time order).
    """
    blk = pl.program_id(0)
    nblk = pl.num_programs(0)
    H = hidden
    B = hf_sc.shape[0]

    @pl.when(blk == 0)
    def _():
        hf_sc[...] = jnp.zeros_like(hf_sc)
        cf_sc[...] = jnp.zeros_like(cf_sc)
        hb_sc[...] = jnp.zeros_like(hb_sc)
        cb_sc[...] = jnp.zeros_like(cb_sc)

    # Hoisted loads / broadcasts (JAX does not CSE broadcast_in_dim in loops).
    whh_f = whhf_ref[...]                                  # (H, 4H) bf16
    whh_b = whhb_ref[...]
    lens_bh = jnp.broadcast_to(lens_ref[...], (B, H))      # (B, H) int32

    def sigmoid(x):
        # exp + reciprocal both occupy the EUP slot (idle otherwise here).
        return pl.reciprocal(1.0 + jnp.exp(-x), approx=True)

    def cell(g_pre, whh, h, c, valid):
        gates = g_pre + jnp.dot(h.astype(jnp.bfloat16), whh,
                                preferred_element_type=jnp.float32)  # (B,4H)
        i_g = sigmoid(gates[:, 0 * H:1 * H])
        f_g = sigmoid(gates[:, 1 * H:2 * H])
        g_g = jnp.tanh(gates[:, 2 * H:3 * H])
        o_g = sigmoid(gates[:, 3 * H:4 * H])
        c_new = f_g * c + i_g * g_g
        h_new = o_g * jnp.tanh(c_new)
        # Frozen-state update == pack_padded_sequence semantics.
        h = jnp.where(valid, h_new, h)
        c = jnp.where(valid, c_new, c)
        return h, c

    def step(i, carry):
        h_f, c_f, h_b, c_b = carry
        t_f = blk * T_BLK + i                  # fwd time index
        t_b = (T_PAD - 1) - t_f                # bwd time index
        g_f = gf_ref[i]                        # (B, 4H)
        g_b = gb_ref[T_BLK - 1 - i]            # (B, 4H) (block is time-reversed)
        h_f, c_f = cell(g_f, whh_f, h_f, c_f, t_f < lens_bh)
        h_b, c_b = cell(g_b, whh_b, h_b, c_b, t_b < lens_bh)
        of_ref[i] = h_f
        ob_ref[T_BLK - 1 - i] = h_b            # lands at natural time order
        return h_f, c_f, h_b, c_b

    carry0 = (hf_sc[...], cf_sc[...], hb_sc[...], cb_sc[...])
    h_f, c_f, h_b, c_b = lax.fori_loop(0, T_BLK, step, carry0, unroll=True)

    hf_sc[...] = h_f
    cf_sc[...] = c_f
    hb_sc[...] = h_b
    cb_sc[...] = c_b

    @pl.when(blk == nblk - 1)
    def _():
        hT_ref[0] = h_f
        hT_ref[1] = h_b
        cT_ref[0] = c_f
        cT_ref[1] = c_b


def bilstm_layer(g_f, g_b, whh_f, whh_b, lengths, hidden, t_blk):
    """Fused bidirectional LSTM recurrence over pre-computed pre-gates.

    g_f, g_b : (T_pad, B, 4H) f32  (both in natural time order).
    Returns out_f, out_b (T_pad, B, H) and hT, cT of shape (2, B, H)
    where index 0 = fwd direction, 1 = bwd direction.
    """
    T_pad, B, G4 = g_f.shape
    H = hidden
    nblk = T_pad // t_blk
    lens2 = lengths.reshape(B, 1).astype(jnp.int32)

    kernel = functools.partial(_bilstm_block_kernel, t_blk, T_pad, hidden)

    out_shape = (
        jax.ShapeDtypeStruct((T_pad, B, H), jnp.float32),   # fwd hidden per t
        jax.ShapeDtypeStruct((T_pad, B, H), jnp.float32),   # bwd hidden per t
        jax.ShapeDtypeStruct((2, B, H), jnp.float32),       # final h (fwd,bwd)
        jax.ShapeDtypeStruct((2, B, H), jnp.float32),       # final c (fwd,bwd)
    )

    return pl.pallas_call(
        kernel,
        out_shape=out_shape,
        grid_spec=pltpu.PrefetchScalarGridSpec(
            num_scalar_prefetch=0,
            grid=(nblk,),
            in_specs=[
                pl.BlockSpec((B, 1), lambda blk: (0, 0)),                  # lengths
                pl.BlockSpec((t_blk, B, G4), lambda blk: (blk, 0, 0)),     # fwd pre-gates
                pl.BlockSpec((t_blk, B, G4),
                             lambda blk: (nblk - 1 - blk, 0, 0)),          # bwd pre-gates
                pl.BlockSpec((H, G4), lambda blk: (0, 0)),                 # W_hh fwd
                pl.BlockSpec((H, G4), lambda blk: (0, 0)),                 # W_hh bwd
            ],
            out_specs=[
                pl.BlockSpec((t_blk, B, H), lambda blk: (blk, 0, 0)),
                pl.BlockSpec((t_blk, B, H), lambda blk: (nblk - 1 - blk, 0, 0)),
                pl.BlockSpec((2, B, H), lambda blk: (0, 0, 0)),
                pl.BlockSpec((2, B, H), lambda blk: (0, 0, 0)),
            ],
            scratch_shapes=[pltpu.VMEM((B, H), jnp.float32)] * 4),
        compiler_params=pltpu.CompilerParams(
            dimension_semantics=("arbitrary",)),   # sequential recurrence
    )(lens2, g_f, g_b, whh_f, whh_b)


def init_params(key, vocab, embed_dim, hidden):
    """Deterministic parameter init matching nn.Embedding / nn.LSTM shapes."""
    keys = jax.random.split(key, 1 + 2 * 2 * 4)
    embed_table = jax.random.normal(keys[0], (vocab, embed_dim), jnp.float32)
    bound = 1.0 / (hidden ** 0.5)
    params = []
    ki = 1
    for layer in range(2):
        in_dim = embed_dim if layer == 0 else 2 * hidden
        layer_p = {}
        for tag in ("f", "b"):   # forward / backward direction
            wih = jax.random.uniform(keys[ki + 0], (4 * hidden, in_dim),
                                     jnp.float32, -bound, bound)
            whh = jax.random.uniform(keys[ki + 1], (4 * hidden, hidden),
                                     jnp.float32, -bound, bound)
            bih = jax.random.uniform(keys[ki + 2], (4 * hidden,),
                                     jnp.float32, -bound, bound)
            bhh = jax.random.uniform(keys[ki + 3], (4 * hidden,),
                                     jnp.float32, -bound, bound)
            ki += 4
            # bf16 weights (2x MXU throughput, half the VMEM residency);
            # biases stay f32 and are folded into the pre-gate tensor.
            layer_p["wih_" + tag] = jnp.transpose(wih).astype(jnp.bfloat16)  # (in,4H)
            layer_p["whh_" + tag] = jnp.transpose(whh).astype(jnp.bfloat16)  # (H,4H)
            layer_p["b_" + tag] = (bih + bhh).astype(jnp.float32)            # (4H,)
        params.append(layer_p)
    return embed_table, params


def encoder_forward(tokens, embed_table, params, hidden, pad_value, t_blk=128):
    """tokens: (T, B) int32, time-major. Returns (output, (h, c)).

    Notes:
      * jittable: no host syncs. The output keeps T rows; PyTorch's
        pad_packed_sequence truncates to max(lengths) — caller can slice.
      * t_blk sizes the per-grid-step time tile; keep the resulting
        (t_blk, B, 4H) f32 tiles (x2 dirs, double-buffered) well under the
        scoped VMEM limit (64 MiB physical on v7x, 128 MiB on v5e/v6e).
    """
    T, B = tokens.shape
    H = hidden
    lengths = jnp.sum((tokens != pad_value).astype(jnp.int32), axis=0)     # (B,)

    # Pad batch to a multiple of 8 (full sublanes) and time to the block size.
    B_pad = -(-B // 8) * 8
    t_blk = max(1, min(t_blk, T))
    T_pad = -(-T // t_blk) * t_blk

    # Embedding lookup (glue gather, stays in plain JAX).
    x = embed_table[tokens]                                                # (T,B,E)
    x = jnp.pad(x, ((0, T_pad - T), (0, B_pad - B), (0, 0)))
    lens_p = jnp.pad(lengths, (0, B_pad - B))                              # (B_pad,)
    mask = (jnp.arange(T_pad)[:, None] < lens_p[None, :])[..., None]       # (T_pad,B_pad,1)

    x_in = x
    hT = cT = None
    for layer in range(2):
        p = params[layer]
        # Hoisted input projection: ONE large batched matmul per direction over
        # all T*B rows (bf16 inputs, f32 accumulate) instead of T tiny matmuls.
        xb = x_in.astype(jnp.bfloat16)
        g_f = jnp.dot(xb, p["wih_f"], preferred_element_type=jnp.float32) + p["b_f"]
        g_b = jnp.dot(xb, p["wih_b"], preferred_element_type=jnp.float32) + p["b_b"]
        out_f, out_b, hT, cT = bilstm_layer(g_f, g_b, p["whh_f"], p["whh_b"],
                                            lens_p, H, t_blk)
        x_in = jnp.concatenate([out_f, out_b], axis=-1)                    # (T_pad,B_pad,2H)

    # pad_packed_sequence(padding_value=pad_value) semantics on padded slots.
    output = jnp.where(mask, x_in, jnp.float32(pad_value))
    # TODO(synk): PyTorch additionally truncates the output to max(lengths);
    # done by the caller here to avoid a host sync / dynamic shape under jit
    # (in the demo max(lengths) == T so shapes already match).
    output = output[:T, :B]

    # h[-2] + h[-1] / c[-2] + c[-1]  ==  last-layer fwd + bwd final states.
    h = (hT[0] + hT[1])[:B]
    c = (cT[0] + cT[1])[:B]
    return output, (h, c)


if __name__ == "__main__":
    T, B = 8, 4
    vocab, embed_dim, hidden = 20, 16, 32
    pad_value = 0

    key = jax.random.PRNGKey(0)
    k_tok, k_par = jax.random.split(key)
    embed_table, params = init_params(k_par, vocab, embed_dim, hidden)

    # Padded token batch, time-major (T, B); pad token == pad_value == 0.
    lengths = jnp.array([8, 6, 5, 3], dtype=jnp.int32)
    toks = jax.random.randint(k_tok, (T, B), 1, vocab, dtype=jnp.int32)
    valid = jnp.arange(T)[:, None] < lengths[None, :]
    tokens = jnp.where(valid, toks, pad_value)

    fwd = jax.jit(functools.partial(encoder_forward, hidden=hidden,
                                    pad_value=pad_value))
    output, (h, c) = fwd(tokens, embed_table, params)
    jax.block_until_ready((output, h, c))

    assert output.shape == (T, B, 2 * hidden)
    assert h.shape == (B, hidden) and c.shape == (B, hidden)
    print("KERNEL_OK")
</pallas_src>

<mosaic_0001>
module attributes {stable_mosaic.version = 11 : i64} {
  func.func @_bilstm_block_kernel(%arg0: i32, %arg1: memref<8x1xi32, #tpu.memory_space<vmem>>, %arg2: memref<8x8x128xf32, #tpu.memory_space<vmem>>, %arg3: memref<8x8x128xf32, #tpu.memory_space<vmem>>, %arg4: memref<32x128xbf16, #tpu.memory_space<vmem>>, %arg5: memref<32x128xbf16, #tpu.memory_space<vmem>>, %arg6: memref<8x8x32xf32, #tpu.memory_space<vmem>>, %arg7: memref<8x8x32xf32, #tpu.memory_space<vmem>>, %arg8: memref<2x8x32xf32, #tpu.memory_space<vmem>>, %arg9: memref<2x8x32xf32, #tpu.memory_space<vmem>>, %arg10: memref<8x32xf32, #tpu.memory_space<vmem>>, %arg11: memref<8x32xf32, #tpu.memory_space<vmem>>, %arg12: memref<8x32xf32, #tpu.memory_space<vmem>>, %arg13: memref<8x32xf32, #tpu.memory_space<vmem>>) attributes {dimension_semantics = [#tpu.dimension_semantics<arbitrary>], iteration_bounds = array<i64: 1>, scalar_prefetch = 0 : i64, scratch_operands = 4 : i64, tpu.core_type = #tpu.core_type<tc>, window_params = [{pipeline_mode = #tpu.pipeline_mode<synchronous>, transform_indices = @transform_0, window_bounds = array<i64: 8, 1>}, {transform_indices = @transform_1, window_bounds = array<i64: 8, 8, 128>}, {transform_indices = @transform_2, window_bounds = array<i64: 8, 8, 128>}, {pipeline_mode = #tpu.pipeline_mode<synchronous>, transform_indices = @transform_3, window_bounds = array<i64: 32, 128>}, {pipeline_mode = #tpu.pipeline_mode<synchronous>, transform_indices = @transform_4, window_bounds = array<i64: 32, 128>}, {transform_indices = @transform_5, window_bounds = array<i64: 8, 8, 32>}, {transform_indices = @transform_6, window_bounds = array<i64: 8, 8, 32>}, {pipeline_mode = #tpu.pipeline_mode<synchronous>, transform_indices = @transform_7, window_bounds = array<i64: 2, 8, 32>}, {pipeline_mode = #tpu.pipeline_mode<synchronous>, transform_indices = @transform_8, window_bounds = array<i64: 2, 8, 32>}]} {
    %c0_i32 = arith.constant 0 : i32
    %0 = arith.cmpi eq, %arg0, %c0_i32 : i32
    %1 = arith.extui %0 : i1 to i32
    %c0_i32_0 = arith.constant 0 : i32
    %2 = arith.cmpi ne, %1, %c0_i32_0 : i32
    scf.if %2 {
      %cst_232 = arith.constant 0.000000e+00 : f32
      %731 = vector.broadcast %cst_232 : f32 to vector<8x32xf32>
      %c0_233 = arith.constant 0 : index
      %c0_234 = arith.constant 0 : index
      %732 = vector.load %arg10[%c0_233, %c0_234] : memref<8x32xf32, #tpu.memory_space<vmem>>, vector<8x32xf32>
      tpu.vector_store %arg10[%c0_233, %c0_234], %731 {strides = array<i32>} : memref<8x32xf32, #tpu.memory_space<vmem>>, vector<8x32xf32>,
      %cst_235 = arith.constant 0.000000e+00 : f32
      %733 = vector.broadcast %cst_235 : f32 to vector<8x32xf32>
      %c0_236 = arith.constant 0 : index
      %c0_237 = arith.constant 0 : index
      %734 = vector.load %arg11[%c0_236, %c0_237] : memref<8x32xf32, #tpu.memory_space<vmem>>, vector<8x32xf32>
      tpu.vector_store %arg11[%c0_236, %c0_237], %733 {strides = array<i32>} : memref<8x32xf32, #tpu.memory_space<vmem>>, vector<8x32xf32>,
      %cst_238 = arith.constant 0.000000e+00 : f32
      %735 = vector.broadcast %cst_238 : f32 to vector<8x32xf32>
      %c0_239 = arith.constant 0 : index
      %c0_240 = arith.constant 0 : index
      %736 = vector.load %arg12[%c0_239, %c0_240] : memref<8x32xf32, #tpu.memory_space<vmem>>, vector<8x32xf32>
      tpu.vector_store %arg12[%c0_239, %c0_240], %735 {strides = array<i32>} : memref<8x32xf32, #tpu.memory_space<vmem>>, vector<8x32xf32>,
      %cst_241 = arith.constant 0.000000e+00 : f32
      %737 = vector.broadcast %cst_241 : f32 to vector<8x32xf32>
      %c0_242 = arith.constant 0 : index
      %c0_243 = arith.constant 0 : index
      %738 = vector.load %arg13[%c0_242, %c0_243] : memref<8x32xf32, #tpu.memory_space<vmem>>, vector<8x32xf32>
      tpu.vector_store %arg13[%c0_242, %c0_243], %737 {strides = array<i32>} : memref<8x32xf32, #tpu.memory_space<vmem>>, vector<8x32xf32>,
    } else {
    }
    %c0 = arith.constant 0 : index
    %c0_1 = arith.constant 0 : index
    %3 = vector.load %arg4[%c0, %c0_1] : memref<32x128xbf16, #tpu.memory_space<vmem>>, vector<32x128xbf16>
    %c0_2 = arith.constant 0 : index
    %c0_3 = arith.constant 0 : index
    %4 = vector.load %arg5[%c0_2, %c0_3] : memref<32x128xbf16, #tpu.memory_space<vmem>>, vector<32x128xbf16>
    %c0_4 = arith.constant 0 : index
    %c0_5 = arith.constant 0 : index
    %5 = vector.load %arg1[%c0_4, %c0_5] : memref<8x1xi32, #tpu.memory_space<vmem>>, vector<8x1xi32>
    %6 = vector.shape_cast %5 : vector<8x1xi32> to vector<8x1xi32>
    %7 = vector.broadcast %6 : vector<8x1xi32> to vector<8x32xi32>
    %c0_6 = arith.constant 0 : index
    %c0_7 = arith.constant 0 : index
    %8 = vector.load %arg10[%c0_6, %c0_7] : memref<8x32xf32, #tpu.memory_space<vmem>>, vector<8x32xf32>
    %c0_8 = arith.constant 0 : index
    %c0_9 = arith.constant 0 : index
    %9 = vector.load %arg11[%c0_8, %c0_9] : memref<8x32xf32, #tpu.memory_space<vmem>>, vector<8x32xf32>
    %c0_10 = arith.constant 0 : index
    %c0_11 = arith.constant 0 : index
    %10 = vector.load %arg12[%c0_10, %c0_11] : memref<8x32xf32, #tpu.memory_space<vmem>>, vector<8x32xf32>
    %c0_12 = arith.constant 0 : index
    %c0_13 = arith.constant 0 : index
    %11 = vector.load %arg13[%c0_12, %c0_13] : memref<8x32xf32, #tpu.memory_space<vmem>>, vector<8x32xf32>
    %c0_i32_14 = arith.constant 0 : i32
    %c8_i32 = arith.constant 8 : i32
    %12 = arith.muli %arg0, %c8_i32 : i32
    %13 = arith.addi %12, %c0_i32_14 : i32
    %c7_i32 = arith.constant 7 : i32
    %14 = arith.subi %c7_i32, %13 : i32
    %15 = arith.index_cast %c0_i32_14 : i32 to index
    %c0_15 = arith.constant 0 : index
    %c0_16 = arith.constant 0 : index
    %16 = vector.load %arg2[%15, %c0_15, %c0_16] : memref<8x8x128xf32, #tpu.memory_space<vmem>>, vector<1x8x128xf32>
    %17 = vector.shape_cast %16 : vector<1x8x128xf32> to vector<8x128xf32>
    %c7_i32_17 = arith.constant 7 : i32
    %18 = arith.subi %c7_i32_17, %c0_i32_14 : i32
    %19 = arith.index_cast %18 : i32 to index
    %c0_18 = arith.constant 0 : index
    %c0_19 = arith.constant 0 : index
    %20 = vector.load %arg3[%19, %c0_18, %c0_19] : memref<8x8x128xf32, #tpu.memory_space<vmem>>, vector<1x8x128xf32>
    %21 = vector.shape_cast %20 : vector<1x8x128xf32> to vector<8x128xf32>
    %22 = vector.broadcast %13 : i32 to vector<8x32xi32>
    %23 = arith.cmpi slt, %22, %7 : vector<8x32xi32>
    %24 = arith.truncf %8 : vector<8x32xf32> to vector<8x32xbf16>
    %cst = arith.constant dense<0.000000e+00> : vector<8x128xf32>
    %25 = tpu.matmul %24, %3, %cst {dimension_numbers = #tpu.dot_dimension_numbers<[1], [0], [0], [1], [0, 0, 1, 1], [], []>} : vector<8x32xbf16>, vector<32x128xbf16>, vector<8x128xf32> -> vector<8x128xf32>
    %26 = arith.addf %17, %25 : vector<8x128xf32>
    %27 = vector.extract_strided_slice %26 {offsets = [0, 0], sizes = [8, 32], strides = [1, 1]} : vector<8x128xf32> to vector<8x32xf32>
    %cst_20 = arith.constant 0.000000e+00 : f32
    %28 = vector.broadcast %cst_20 : f32 to vector<8x32xf32>
    %29 = arith.subf %28, %27 : vector<8x32xf32>
    %30 = math.exp %29 : vector<8x32xf32>
    %cst_21 = arith.constant 1.000000e+00 : f32
    %31 = vector.broadcast %cst_21 : f32 to vector<8x32xf32>
    %32 = arith.addf %31, %30 : vector<8x32xf32>
    %33 = tpu.reciprocal %32 {approx = true} : vector<8x32xf32> -> vector<8x32xf32>
    %34 = vector.extract_strided_slice %26 {offsets = [0, 32], sizes = [8, 32], strides = [1, 1]} : vector<8x128xf32> to vector<8x32xf32>
    %cst_22 = arith.constant 0.000000e+00 : f32
    %35 = vector.broadcast %cst_22 : f32 to vector<8x32xf32>
    %36 = arith.subf %35, %34 : vector<8x32xf32>
    %37 = math.exp %36 : vector<8x32xf32>
    %cst_23 = arith.constant 1.000000e+00 : f32
    %38 = vector.broadcast %cst_23 : f32 to vector<8x32xf32>
    %39 = arith.addf %38, %37 : vector<8x32xf32>
    %40 = tpu.reciprocal %39 {approx = true} : vector<8x32xf32> -> vector<8x32xf32>
    %41 = vector.extract_strided_slice %26 {offsets = [0, 64], sizes = [8, 32], strides = [1, 1]} : vector<8x128xf32> to vector<8x32xf32>
    %42 = math.tanh %41 : vector<8x32xf32>
    %43 = vector.extract_strided_slice %26 {offsets = [0, 96], sizes = [8, 32], strides = [1, 1]} : vector<8x128xf32> to vector<8x32xf32>
    %cst_24 = arith.constant 0.000000e+00 : f32
    %44 = vector.broadcast %cst_24 : f32 to vector<8x32xf32>
    %45 = arith.subf %44, %43 : vector<8x32xf32>
    %46 = math.exp %45 : vector<8x32xf32>
    %cst_25 = arith.constant 1.000000e+00 : f32
    %47 = vector.broadcast %cst_25 : f32 to vector<8x32xf32>
    %48 = arith.addf %47, %46 : vector<8x32xf32>
    %49 = tpu.reciprocal %48 {approx = true} : vector<8x32xf32> -> vector<8x32xf32>
    %50 = arith.mulf %40, %9 : vector<8x32xf32>
    %51 = arith.mulf %33, %42 : vector<8x32xf32>
    %52 = arith.addf %50, %51 : vector<8x32xf32>
    %53 = math.tanh %52 : vector<8x32xf32>
    %54 = arith.mulf %49, %53 : vector<8x32xf32>
    %55 = arith.select %23, %54, %8 : vector<8x32xi1>, vector<8x32xf32>
    %56 = arith.select %23, %52, %9 : vector<8x32xi1>, vector<8x32xf32>
    %57 = vector.broadcast %14 : i32 to vector<8x32xi32>
    %58 = arith.cmpi slt, %57, %7 : vector<8x32xi32>
    %59 = arith.truncf %10 : vector<8x32xf32> to vector<8x32xbf16>
    %cst_26 = arith.constant dense<0.000000e+00> : vector<8x128xf32>
    %60 = tpu.matmul %59, %4, %cst_26 {dimension_numbers = #tpu.dot_dimension_numbers<[1], [0], [0], [1], [0, 0, 1, 1], [], []>} : vector<8x32xbf16>, vector<32x128xbf16>, vector<8x128xf32> -> vector<8x128xf32>
    %61 = arith.addf %21, %60 : vector<8x128xf32>
    %62 = vector.extract_strided_slice %61 {offsets = [0, 0], sizes = [8, 32], strides = [1, 1]} : vector<8x128xf32> to vector<8x32xf32>
    %cst_27 = arith.constant 0.000000e+00 : f32
    %63 = vector.broadcast %cst_27 : f32 to vector<8x32xf32>
    %64 = arith.subf %63, %62 : vector<8x32xf32>
    %65 = math.exp %64 : vector<8x32xf32>
    %cst_28 = arith.constant 1.000000e+00 : f32
    %66 = vector.broadcast %cst_28 : f32 to vector<8x32xf32>
    %67 = arith.addf %66, %65 : vector<8x32xf32>
    %68 = tpu.reciprocal %67 {approx = true} : vector<8x32xf32> -> vector<8x32xf32>
    %69 = vector.extract_strided_slice %61 {offsets = [0, 32], sizes = [8, 32], strides = [1, 1]} : vector<8x128xf32> to vector<8x32xf32>
    %cst_29 = arith.constant 0.000000e+00 : f32
    %70 = vector.broadcast %cst_29 : f32 to vector<8x32xf32>
    %71 = arith.subf %70, %69 : vector<8x32xf32>
    %72 = math.exp %71 : vector<8x32xf32>
    %cst_30 = arith.constant 1.000000e+00 : f32
    %73 = vector.broadcast %cst_30 : f32 to vector<8x32xf32>
    %74 = arith.addf %73, %72 : vector<8x32xf32>
    %75 = tpu.reciprocal %74 {approx = true} : vector<8x32xf32> -> vector<8x32xf32>
    %76 = vector.extract_strided_slice %61 {offsets = [0, 64], sizes = [8, 32], strides = [1, 1]} : vector<8x128xf32> to vector<8x32xf32>
    %77 = math.tanh %76 : vector<8x32xf32>
    %78 = vector.extract_strided_slice %61 {offsets = [0, 96], sizes = [8, 32], strides = [1, 1]} : vector<8x128xf32> to vector<8x32xf32>
    %cst_31 = arith.constant 0.000000e+00 : f32
    %79 = vector.broadcast %cst_31 : f32 to vector<8x32xf32>
    %80 = arith.subf %79, %78 : vector<8x32xf32>
    %81 = math.exp %80 : vector<8x32xf32>
    %cst_32 = arith.constant 1.000000e+00 : f32
    %82 = vector.broadcast %cst_32 : f32 to vector<8x32xf32>
    %83 = arith.addf %82, %81 : vector<8x32xf32>
    %84 = tpu.reciprocal %83 {approx = true} : vector<8x32xf32> -> vector<8x32xf32>
    %85 = arith.mulf %75, %11 : vector<8x32xf32>
    %86 = arith.mulf %68, %77 : vector<8x32xf32>
    %87 = arith.addf %85, %86 : vector<8x32xf32>
    %88 = math.tanh %87 : vector<8x32xf32>
    %89 = arith.mulf %84, %88 : vector<8x32xf32>
    %90 = arith.select %58, %89, %10 : vector<8x32xi1>, vector<8x32xf32>
    %91 = arith.select %58, %87, %11 : vector<8x32xi1>, vector<8x32xf32>
    %92 = arith.index_cast %c0_i32_14 : i32 to index
    %c0_33 = arith.constant 0 : index
    %c0_34 = arith.constant 0 : index
    %93 = vector.load %arg6[%92, %c0_33, %c0_34] : memref<8x8x32xf32, #tpu.memory_space<vmem>>, vector<1x8x32xf32>
    %94 = vector.shape_cast %93 : vector<1x8x32xf32> to vector<8x32xf32>
    %95 = vector.shape_cast %55 : vector<8x32xf32> to vector<1x8x32xf32>
    tpu.vector_store %arg6[%92, %c0_33, %c0_34], %95 {strides = array<i32>} : memref<8x8x32xf32, #tpu.memory_space<vmem>>, vector<1x8x32xf32>,
    %c7_i32_35 = arith.constant 7 : i32
    %96 = arith.subi %c7_i32_35, %c0_i32_14 : i32
    %97 = arith.index_cast %96 : i32 to index
    %c0_36 = arith.constant 0 : index
    %c0_37 = arith.constant 0 : index
    %98 = vector.load %arg7[%97, %c0_36, %c0_37] : memref<8x8x32xf32, #tpu.memory_space<vmem>>, vector<1x8x32xf32>
    %99 = vector.shape_cast %98 : vector<1x8x32xf32> to vector<8x32xf32>
    %100 = vector.shape_cast %90 : vector<8x32xf32> to vector<1x8x32xf32>
    tpu.vector_store %arg7[%97, %c0_36, %c0_37], %100 {strides = array<i32>} : memref<8x8x32xf32, #tpu.memory_space<vmem>>, vector<1x8x32xf32>,
    %c1_i32 = arith.constant 1 : i32
    %c8_i32_38 = arith.constant 8 : i32
    %101 = arith.muli %arg0, %c8_i32_38 : i32
    %102 = arith.addi %101, %c1_i32 : i32
    %c7_i32_39 = arith.constant 7 : i32
    %103 = arith.subi %c7_i32_39, %102 : i32
    %104 = arith.index_cast %c1_i32 : i32 to index
    %c0_40 = arith.constant 0 : index
    %c0_41 = arith.constant 0 : index
    %105 = vector.load %arg2[%104, %c0_40, %c0_41] : memref<8x8x128xf32, #tpu.memory_space<vmem>>, vector<1x8x128xf32>
    %106 = vector.shape_cast %105 : vector<1x8x128xf32> to vector<8x128xf32>
    %c7_i32_42 = arith.constant 7 : i32
    %107 = arith.subi %c7_i32_42, %c1_i32 : i32
    %108 = arith.index_cast %107 : i32 to index
    %c0_43 = arith.constant 0 : index
    %c0_44 = arith.constant 0 : index
    %109 = vector.load %arg3[%108, %c0_43, %c0_44] : memref<8x8x128xf32, #tpu.memory_space<vmem>>, vector<1x8x128xf32>
    %110 = vector.shape_cast %109 : vector<1x8x128xf32> to vector<8x128xf32>
    %111 = vector.broadcast %102 : i32 to vector<8x32xi32>
    %112 = arith.cmpi slt, %111, %7 : vector<8x32xi32>
    %113 = arith.truncf %55 : vector<8x32xf32> to vector<8x32xbf16>
    %cst_45 = arith.constant dense<0.000000e+00> : vector<8x128xf32>
    %114 = tpu.matmul %113, %3, %cst_45 {dimension_numbers = #tpu.dot_dimension_numbers<[1], [0], [0], [1], [0, 0, 1, 1], [], []>} : vector<8x32xbf16>, vector<32x128xbf16>, vector<8x128xf32> -> vector<8x128xf32>
    %115 = arith.addf %106, %114 : vector<8x128xf32>
    %116 = vector.extract_strided_slice %115 {offsets = [0, 0], sizes = [8, 32], strides = [1, 1]} : vector<8x128xf32> to vector<8x32xf32>
    %cst_46 = arith.constant 0.000000e+00 : f32
    %117 = vector.broadcast %cst_46 : f32 to vector<8x32xf32>
    %118 = arith.subf %117, %116 : vector<8x32xf32>
    %119 = math.exp %118 : vector<8x32xf32>
    %cst_47 = arith.constant 1.000000e+00 : f32
    %120 = vector.broadcast %cst_47 : f32 to vector<8x32xf32>
    %121 = arith.addf %120, %119 : vector<8x32xf32>
    %122 = tpu.reciprocal %121 {approx = true} : vector<8x32xf32> -> vector<8x32xf32>
    %123 = vector.extract_strided_slice %115 {offsets = [0, 32], sizes = [8, 32], strides = [1, 1]} : vector<8x128xf32> to vector<8x32xf32>
    %cst_48 = arith.constant 0.000000e+00 : f32
    %124 = vector.broadcast %cst_48 : f32 to vector<8x32xf32>
    %125 = arith.subf %124, %123 : vector<8x32xf32>
    %126 = math.exp %125 : vector<8x32xf32>
    %cst_49 = arith.constant 1.000000e+00 : f32
    %127 = vector.broadcast %cst_49 : f32 to vector<8x32xf32>
    %128 = arith.addf %127, %126 : vector<8x32xf32>
    %129 = tpu.reciprocal %128 {approx = true} : vector<8x32xf32> -> vector<8x32xf32>
    %130 = vector.extract_strided_slice %115 {offsets = [0, 64], sizes = [8, 32], strides = [1, 1]} : vector<8x128xf32> to vector<8x32xf32>
    %131 = math.tanh %130 : vector<8x32xf32>
    %132 = vector.extract_strided_slice %115 {offsets = [0, 96], sizes = [8, 32], strides = [1, 1]} : vector<8x128xf32> to vector<8x32xf32>
    %cst_50 = arith.constant 0.000000e+00 : f32
    %133 = vector.broadcast %cst_50 : f32 to vector<8x32xf32>
    %134 = arith.subf %133, %132 : vector<8x32xf32>
    %135 = math.exp %134 : vector<8x32xf32>
    %cst_51 = arith.constant 1.000000e+00 : f32
    %136 = vector.broadcast %cst_51 : f32 to vector<8x32xf32>
    %137 = arith.addf %136, %135 : vector<8x32xf32>
    %138 = tpu.reciprocal %137 {approx = true} : vector<8x32xf32> -> vector<8x32xf32>
    %139 = arith.mulf %129, %56 : vector<8x32xf32>
    %140 = arith.mulf %122, %131 : vector<8x32xf32>
    %141 = arith.addf %139, %140 : vector<8x32xf32>
    %142 = math.tanh %141 : vector<8x32xf32>
    %143 = arith.mulf %138, %142 : vector<8x32xf32>
    %144 = arith.select %112, %143, %55 : vector<8x32xi1>, vector<8x32xf32>
    %145 = arith.select %112, %141, %56 : vector<8x32xi1>, vector<8x32xf32>
    %146 = vector.broadcast %103 : i32 to vector<8x32xi32>
    %147 = arith.cmpi slt, %146, %7 : vector<8x32xi32>
    %148 = arith.truncf %90 : vector<8x32xf32> to vector<8x32xbf16>
    %cst_52 = arith.constant dense<0.000000e+00> : vector<8x128xf32>
    %149 = tpu.matmul %148, %4, %cst_52 {dimension_numbers = #tpu.dot_dimension_numbers<[1], [0], [0], [1], [0, 0, 1, 1], [], []>} : vector<8x32xbf16>, vector<32x128xbf16>, vector<8x128xf32> -> vector<8x128xf32>
    %150 = arith.addf %110, %149 : vector<8x128xf32>
    %151 = vector.extract_strided_slice %150 {offsets = [0, 0], sizes = [8, 32], strides = [1, 1]} : vector<8x128xf32> to vector<8x32xf32>
    %cst_53 = arith.constant 0.000000e+00 : f32
    %152 = vector.broadcast %cst_53 : f32 to vector<8x32xf32>
    %153 = arith.subf %152, %151 : vector<8x32xf32>
    %154 = math.exp %153 : vector<8x32xf32>
    %cst_54 = arith.constant 1.000000e+00 : f32
    %155 = vector.broadcast %cst_54 : f32 to vector<8x32xf32>
    %156 = arith.addf %155, %154 : vector<8x32xf32>
    %157 = tpu.reciprocal %156 {approx = true} : vector<8x32xf32> -> vector<8x32xf32>
    %158 = vector.extract_strided_slice %150 {offsets = [0, 32], sizes = [8, 32], strides = [1, 1]} : vector<8x128xf32> to vector<8x32xf32>
    %cst_55 = arith.constant 0.000000e+00 : f32
    %159 = vector.broadcast %cst_55 : f32 to vector<8x32xf32>
    %160 = arith.subf %159, %158 : vector<8x32xf32>
    %161 = math.exp %160 : vector<8x32xf32>
    %cst_56 = arith.constant 1.000000e+00 : f32
    %162 = vector.broadcast %cst_56 : f32 to vector<8x32xf32>
    %163 = arith.addf %162, %161 : vector<8x32xf32>
    %164 = tpu.reciprocal %163 {approx = true} : vector<8x32xf32> -> vector<8x32xf32>
    %165 = vector.extract_strided_slice %150 {offsets = [0, 64], sizes = [8, 32], strides = [1, 1]} : vector<8x128xf32> to vector<8x32xf32>
    %166 = math.tanh %165 : vector<8x32xf32>
    %167 = vector.extract_strided_slice %150 {offsets = [0, 96], sizes = [8, 32], strides = [1, 1]} : vector<8x128xf32> to vector<8x32xf32>
    %cst_57 = arith.constant 0.000000e+00 : f32
    %168 = vector.broadcast %cst_57 : f32 to vector<8x32xf32>
    %169 = arith.subf %168, %167 : vector<8x32xf32>
    %170 = math.exp %169 : vector<8x32xf32>
    %cst_58 = arith.constant 1.000000e+00 : f32
    %171 = vector.broadcast %cst_58 : f32 to vector<8x32xf32>
    %172 = arith.addf %171, %170 : vector<8x32xf32>
    %173 = tpu.reciprocal %172 {approx = true} : vector<8x32xf32> -> vector<8x32xf32>
    %174 = arith.mulf %164, %91 : vector<8x32xf32>
    %175 = arith.mulf %157, %166 : vector<8x32xf32>
    %176 = arith.addf %174, %175 : vector<8x32xf32>
    %177 = math.tanh %176 : vector<8x32xf32>
    %178 = arith.mulf %173, %177 : vector<8x32xf32>
    %179 = arith.select %147, %178, %90 : vector<8x32xi1>, vector<8x32xf32>
    %180 = arith.select %147, %176, %91 : vector<8x32xi1>, vector<8x32xf32>
    %181 = arith.index_cast %c1_i32 : i32 to index
    %c0_59 = arith.constant 0 : index
    %c0_60 = arith.constant 0 : index
    %182 = vector.load %arg6[%181, %c0_59, %c0_60] : memref<8x8x32xf32, #tpu.memory_space<vmem>>, vector<1x8x32xf32>
    %183 = vector.shape_cast %182 : vector<1x8x32xf32> to vector<8x32xf32>
    %184 = vector.shape_cast %144 : vector<8x32xf32> to vector<1x8x32xf32>
    tpu.vector_store %arg6[%181, %c0_59, %c0_60], %184 {strides = array<i32>} : memref<8x8x32xf32, #tpu.memory_space<vmem>>, vector<1x8x32xf32>,
    %c7_i32_61 = arith.constant 7 : i32
    %185 = arith.subi %c7_i32_61, %c1_i32 : i32
    %186 = arith.index_cast %185 : i32 to index
    %c0_62 = arith.constant 0 : index
    %c0_63 = arith.constant 0 : index
    %187 = vector.load %arg7[%186, %c0_62, %c0_63] : memref<8x8x32xf32, #tpu.memory_space<vmem>>, vector<1x8x32xf32>
    %188 = vector.shape_cast %187 : vector<1x8x32xf32> to vector<8x32xf32>
    %189 = vector.shape_cast %179 : vector<8x32xf32> to vector<1x8x32xf32>
    tpu.vector_store %arg7[%186, %c0_62, %c0_63], %189 {strides = array<i32>} : memref<8x8x32xf32, #tpu.memory_space<vmem>>, vector<1x8x32xf32>,
    %c2_i32 = arith.constant 2 : i32
    %c8_i32_64 = arith.constant 8 : i32
    %190 = arith.muli %arg0, %c8_i32_64 : i32
    %191 = arith.addi %190, %c2_i32 : i32
    %c7_i32_65 = arith.constant 7 : i32
    %192 = arith.subi %c7_i32_65, %191 : i32
    %193 = arith.index_cast %c2_i32 : i32 to index
    %c0_66 = arith.constant 0 : index
    %c0_67 = arith.constant 0 : index
    %194 = vector.load %arg2[%193, %c0_66, %c0_67] : memref<8x8x128xf32, #tpu.memory_space<vmem>>, vector<1x8x128xf32>
    %195 = vector.shape_cast %194 : vector<1x8x128xf32> to vector<8x128xf32>
    %c7_i32_68 = arith.constant 7 : i32
    %196 = arith.subi %c7_i32_68, %c2_i32 : i32
    %197 = arith.index_cast %196 : i32 to index
    %c0_69 = arith.constant 0 : index
    %c0_70 = arith.constant 0 : index
    %198 = vector.load %arg3[%197, %c0_69, %c0_70] : memref<8x8x128xf32, #tpu.memory_space<vmem>>, vector<1x8x128xf32>
    %199 = vector.shape_cast %198 : vector<1x8x128xf32> to vector<8x128xf32>
    %200 = vector.broadcast %191 : i32 to vector<8x32xi32>
    %201 = arith.cmpi slt, %200, %7 : vector<8x32xi32>
    %202 = arith.truncf %144 : vector<8x32xf32> to vector<8x32xbf16>
    %cst_71 = arith.constant dense<0.000000e+00> : vector<8x128xf32>
    %203 = tpu.matmul %202, %3, %cst_71 {dimension_numbers = #tpu.dot_dimension_numbers<[1], [0], [0], [1], [0, 0, 1, 1], [], []>} : vector<8x32xbf16>, vector<32x128xbf16>, vector<8x128xf32> -> vector<8x128xf32>
    %204 = arith.addf %195, %203 : vector<8x128xf32>
    %205 = vector.extract_strided_slice %204 {offsets = [0, 0], sizes = [8, 32], strides = [1, 1]} : vector<8x128xf32> to vector<8x32xf32>
    %cst_72 = arith.constant 0.000000e+00 : f32
    %206 = vector.broadcast %cst_72 : f32 to vector<8x32xf32>
    %207 = arith.subf %206, %205 : vector<8x32xf32>
    %208 = math.exp %207 : vector<8x32xf32>
    %cst_73 = arith.constant 1.000000e+00 : f32
    %209 = vector.broadcast %cst_73 : f32 to vector<8x32xf32>
    %210 = arith.addf %209, %208 : vector<8x32xf32>
    %211 = tpu.reciprocal %210 {approx = true} : vector<8x32xf32> -> vector<8x32xf32>
    %212 = vector.extract_strided_slice %204 {offsets = [0, 32], sizes = [8, 32], strides = [1, 1]} : vector<8x128xf32> to vector<8x32xf32>
    %cst_74 = arith.constant 0.000000e+00 : f32
    %213 = vector.broadcast %cst_74 : f32 to vector<8x32xf32>
    %214 = arith.subf %213, %212 : vector<8x32xf32>
    %215 = math.exp %214 : vector<8x32xf32>
    %cst_75 = arith.constant 1.000000e+00 : f32
    %216 = vector.broadcast %cst_75 : f32 to vector<8x32xf32>
    %217 = arith.addf %216, %215 : vector<8x32xf32>
    %218 = tpu.reciprocal %217 {approx = true} : vector<8x32xf32> -> vector<8x32xf32>
    %219 = vector.extract_strided_slice %204 {offsets = [0, 64], sizes = [8, 32], strides = [1, 1]} : vector<8x128xf32> to vector<8x32xf32>
    %220 = math.tanh %219 : vector<8x32xf32>
    %221 = vector.extract_strided_slice %204 {offsets = [0, 96], sizes = [8, 32], strides = [1, 1]} : vector<8x128xf32> to vector<8x32xf32>
    %cst_76 = arith.constant 0.000000e+00 : f32
    %222 = vector.broadcast %cst_76 : f32 to vector<8x32xf32>
    %223 = arith.subf %222, %221 : vector<8x32xf32>
    %224 = math.exp %223 : vector<8x32xf32>
    %cst_77 = arith.constant 1.000000e+00 : f32
    %225 = vector.broadcast %cst_77 : f32 to vector<8x32xf32>
    %226 = arith.addf %225, %224 : vector<8x32xf32>
    %227 = tpu.reciprocal %226 {approx = true} : vector<8x32xf32> -> vector<8x32xf32>
    %228 = arith.mulf %218, %145 : vector<8x32xf32>
    %229 = arith.mulf %211, %220 : vector<8x32xf32>
    %230 = arith.addf %228, %229 : vector<8x32xf32>
    %231 = math.tanh %230 : vector<8x32xf32>
    %232 = arith.mulf %227, %231 : vector<8x32xf32>
    %233 = arith.select %201, %232, %144 : vector<8x32xi1>, vector<8x32xf32>
    %234 = arith.select %201, %230, %145 : vector<8x32xi1>, vector<8x32xf32>
    %235 = vector.broadcast %192 : i32 to vector<8x32xi32>
    %236 = arith.cmpi slt, %235, %7 : vector<8x32xi32>
    %237 = arith.truncf %179 : vector<8x32xf32> to vector<8x32xbf16>
    %cst_78 = arith.constant dense<0.000000e+00> : vector<8x128xf32>
    %238 = tpu.matmul %237, %4, %cst_78 {dimension_numbers = #tpu.dot_dimension_numbers<[1], [0], [0], [1], [0, 0, 1, 1], [], []>} : vector<8x32xbf16>, vector<32x128xbf16>, vector<8x128xf32> -> vector<8x128xf32>
    %239 = arith.addf %199, %238 : vector<8x128xf32>
    %240 = vector.extract_strided_slice %239 {offsets = [0, 0], sizes = [8, 32], strides = [1, 1]} : vector<8x128xf32> to vector<8x32xf32>
    %cst_79 = arith.constant 0.000000e+00 : f32
    %241 = vector.broadcast %cst_79 : f32 to vector<8x32xf32>
    %242 = arith.subf %241, %240 : vector<8x32xf32>
    %243 = math.exp %242 : vector<8x32xf32>
    %cst_80 = arith.constant 1.000000e+00 : f32
    %244 = vector.broadcast %cst_80 : f32 to vector<8x32xf32>
    %245 = arith.addf %244, %243 : vector<8x32xf32>
    %246 = tpu.reciprocal %245 {approx = true} : vector<8x32xf32> -> vector<8x32xf32>
    %247 = vector.extract_strided_slice %239 {offsets = [0, 32], sizes = [8, 32], strides = [1, 1]} : vector<8x128xf32> to vector<8x32xf32>
    %cst_81 = arith.constant 0.000000e+00 : f32
    %248 = vector.broadcast %cst_81 : f32 to vector<8x32xf32>
    %249 = arith.subf %248, %247 : vector<8x32xf32>
    %250 = math.exp %249 : vector<8x32xf32>
    %cst_82 = arith.constant 1.000000e+00 : f32
    %251 = vector.broadcast %cst_82 : f32 to vector<8x32xf32>
    %252 = arith.addf %251, %250 : vector<8x32xf32>
    %253 = tpu.reciprocal %252 {approx = true} : vector<8x32xf32> -> vector<8x32xf32>
    %254 = vector.extract_strided_slice %239 {offsets = [0, 64], sizes = [8, 32], strides = [1, 1]} : vector<8x128xf32> to vector<8x32xf32>
    %255 = math.tanh %254 : vector<8x32xf32>
    %256 = vector.extract_strided_slice %239 {offsets = [0, 96], sizes = [8, 32], strides = [1, 1]} : vector<8x128xf32> to vector<8x32xf32>
    %cst_83 = arith.constant 0.000000e+00 : f32
    %257 = vector.broadcast %cst_83 : f32 to vector<8x32xf32>
    %258 = arith.subf %257, %256 : vector<8x32xf32>
    %259 = math.exp %258 : vector<8x32xf32>
    %cst_84 = arith.constant 1.000000e+00 : f32
    %260 = vector.broadcast %cst_84 : f32 to vector<8x32xf32>
    %261 = arith.addf %260, %259 : vector<8x32xf32>
    %262 = tpu.reciprocal %261 {approx = true} : vector<8x32xf32> -> vector<8x32xf32>
    %263 = arith.mulf %253, %180 : vector<8x32xf32>
    %264 = arith.mulf %246, %255 : vector<8x32xf32>
    %265 = arith.addf %263, %264 : vector<8x32xf32>
    %266 = math.tanh %265 : vector<8x32xf32>
    %267 = arith.mulf %262, %266 : vector<8x32xf32>
    %268 = arith.select %236, %267, %179 : vector<8x32xi1>, vector<8x32xf32>
    %269 = arith.select %236, %265, %180 : vector<8x32xi1>, vector<8x32xf32>
    %270 = arith.index_cast %c2_i32 : i32 to index
    %c0_85 = arith.constant 0 : index
    %c0_86 = arith.constant 0 : index
    %271 = vector.load %arg6[%270, %c0_85, %c0_86] : memref<8x8x32xf32, #tpu.memory_space<vmem>>, vector<1x8x32xf32>
    %272 = vector.shape_cast %271 : vector<1x8x32xf32> to vector<8x32xf32>
    %273 = vector.shape_cast %233 : vector<8x32xf32> to vector<1x8x32xf32>
    tpu.vector_store %arg6[%270, %c0_85, %c0_86], %273 {strides = array<i32>} : memref<8x8x32xf32, #tpu.memory_space<vmem>>, vector<1x8x32xf32>,
    %c7_i32_87 = arith.constant 7 : i32
    %274 = arith.subi %c7_i32_87, %c2_i32 : i32
    %275 = arith.index_cast %274 : i32 to index
    %c0_88 = arith.constant 0 : index
    %c0_89 = arith.constant 0 : index
    %276 = vector.load %arg7[%275, %c0_88, %c0_89] : memref<8x8x32xf32, #tpu.memory_space<vmem>>, vector<1x8x32xf32>
    %277 = vector.shape_cast %276 : vector<1x8x32xf32> to vector<8x32xf32>
    %278 = vector.shape_cast %268 : vector<8x32xf32> to vector<1x8x32xf32>
    tpu.vector_store %arg7[%275, %c0_88, %c0_89], %278 {strides = array<i32>} : memref<8x8x32xf32, #tpu.memory_space<vmem>>, vector<1x8x32xf32>,
    %c3_i32 = arith.constant 3 : i32
    %c8_i32_90 = arith.constant 8 : i32
    %279 = arith.muli %arg0, %c8_i32_90 : i32
    %280 = arith.addi %279, %c3_i32 : i32
    %c7_i32_91 = arith.constant 7 : i32
    %281 = arith.subi %c7_i32_91, %280 : i32
    %282 = arith.index_cast %c3_i32 : i32 to index
    %c0_92 = arith.constant 0 : index
    %c0_93 = arith.constant 0 : index
    %283 = vector.load %arg2[%282, %c0_92, %c0_93] : memref<8x8x128xf32, #tpu.memory_space<vmem>>, vector<1x8x128xf32>
    %284 = vector.shape_cast %283 : vector<1x8x128xf32> to vector<8x128xf32>
    %c7_i32_94 = arith.constant 7 : i32
    %285 = arith.subi %c7_i32_94, %c3_i32 : i32
    %286 = arith.index_cast %285 : i32 to index
    %c0_95 = arith.constant 0 : index
    %c0_96 = arith.constant 0 : index
    %287 = vector.load %arg3[%286, %c0_95, %c0_96] : memref<8x8x128xf32, #tpu.memory_space<vmem>>, vector<1x8x128xf32>
    %288 = vector.shape_cast %287 : vector<1x8x128xf32> to vector<8x128xf32>
    %289 = vector.broadcast %280 : i32 to vector<8x32xi32>
    %290 = arith.cmpi slt, %289, %7 : vector<8x32xi32>
    %291 = arith.truncf %233 : vector<8x32xf32> to vector<8x32xbf16>
    %cst_97 = arith.constant dense<0.000000e+00> : vector<8x128xf32>
    %292 = tpu.matmul %291, %3, %cst_97 {dimension_numbers = #tpu.dot_dimension_numbers<[1], [0], [0], [1], [0, 0, 1, 1], [], []>} : vector<8x32xbf16>, vector<32x128xbf16>, vector<8x128xf32> -> vector<8x128xf32>
    %293 = arith.addf %284, %292 : vector<8x128xf32>
    %294 = vector.extract_strided_slice %293 {offsets = [0, 0], sizes = [8, 32], strides = [1, 1]} : vector<8x128xf32> to vector<8x32xf32>
    %cst_98 = arith.constant 0.000000e+00 : f32
    %295 = vector.broadcast %cst_98 : f32 to vector<8x32xf32>
    %296 = arith.subf %295, %294 : vector<8x32xf32>
    %297 = math.exp %296 : vector<8x32xf32>
    %cst_99 = arith.constant 1.000000e+00 : f32
    %298 = vector.broadcast %cst_99 : f32 to vector<8x32xf32>
    %299 = arith.addf %298, %297 : vector<8x32xf32>
    %300 = tpu.reciprocal %299 {approx = true} : vector<8x32xf32> -> vector<8x32xf32>
    %301 = vector.extract_strided_slice %293 {offsets = [0, 32], sizes = [8, 32], strides = [1, 1]} : vector<8x128xf32> to vector<8x32xf32>
    %cst_100 = arith.constant 0.000000e+00 : f32
    %302 = vector.broadcast %cst_100 : f32 to vector<8x32xf32>
    %303 = arith.subf %302, %301 : vector<8x32xf32>
    %304 = math.exp %303 : vector<8x32xf32>
    %cst_101 = arith.constant 1.000000e+00 : f32
    %305 = vector.broadcast %cst_101 : f32 to vector<8x32xf32>
    %306 = arith.addf %305, %304 : vector<8x32xf32>
    %307 = tpu.reciprocal %306 {approx = true} : vector<8x32xf32> -> vector<8x32xf32>
    %308 = vector.extract_strided_slice %293 {offsets = [0, 64], sizes = [8, 32], strides = [1, 1]} : vector<8x128xf32> to vector<8x32xf32>
    %309 = math.tanh %308 : vector<8x32xf32>
    %310 = vector.extract_strided_slice %293 {offsets = [0, 96], sizes = [8, 32], strides = [1, 1]} : vector<8x128xf32> to vector<8x32xf32>
    %cst_102 = arith.constant 0.000000e+00 : f32
    %311 = vector.broadcast %cst_102 : f32 to vector<8x32xf32>
    %312 = arith.subf %311, %310 : vector<8x32xf32>
    %313 = math.exp %312 : vector<8x32xf32>
    %cst_103 = arith.constant 1.000000e+00 : f32
    %314 = vector.broadcast %cst_103 : f32 to vector<8x32xf32>
    %315 = arith.addf %314, %313 : vector<8x32xf32>
    %316 = tpu.reciprocal %315 {approx = true} : vector<8x32xf32> -> vector<8x32xf32>
    %317 = arith.mulf %307, %234 : vector<8x32xf32>
    %318 = arith.mulf %300, %309 : vector<8x32xf32>
    %319 = arith.addf %317, %318 : vector<8x32xf32>
    %320 = math.tanh %319 : vector<8x32xf32>
    %321 = arith.mulf %316, %320 : vector<8x32xf32>
    %322 = arith.select %290, %321, %233 : vector<8x32xi1>, vector<8x32xf32>
    %323 = arith.select %290, %319, %234 : vector<8x32xi1>, vector<8x32xf32>
    %324 = vector.broadcast %281 : i32 to vector<8x32xi32>
    %325 = arith.cmpi slt, %324, %7 : vector<8x32xi32>
    %326 = arith.truncf %268 : vector<8x32xf32> to vector<8x32xbf16>
    %cst_104 = arith.constant dense<0.000000e+00> : vector<8x128xf32>
    %327 = tpu.matmul %326, %4, %cst_104 {dimension_numbers = #tpu.dot_dimension_numbers<[1], [0], [0], [1], [0, 0, 1, 1], [], []>} : vector<8x32xbf16>, vector<32x128xbf16>, vector<8x128xf32> -> vector<8x128xf32>
    %328 = arith.addf %288, %327 : vector<8x128xf32>
    %329 = vector.extract_strided_slice %328 {offsets = [0, 0], sizes = [8, 32], strides = [1, 1]} : vector<8x128xf32> to vector<8x32xf32>
    %cst_105 = arith.constant 0.000000e+00 : f32
    %330 = vector.broadcast %cst_105 : f32 to vector<8x32xf32>
    %331 = arith.subf %330, %329 : vector<8x32xf32>
    %332 = math.exp %331 : vector<8x32xf32>
    %cst_106 = arith.constant 1.000000e+00 : f32
    %333 = vector.broadcast %cst_106 : f32 to vector<8x32xf32>
    %334 = arith.addf %333, %332 : vector<8x32xf32>
    %335 = tpu.reciprocal %334 {approx = true} : vector<8x32xf32> -> vector<8x32xf32>
    %336 = vector.extract_strided_slice %328 {offsets = [0, 32], sizes = [8, 32], strides = [1, 1]} : vector<8x128xf32> to vector<8x32xf32>
    %cst_107 = arith.constant 0.000000e+00 : f32
    %337 = vector.broadcast %cst_107 : f32 to vector<8x32xf32>
    %338 = arith.subf %337, %336 : vector<8x32xf32>
    %339 = math.exp %338 : vector<8x32xf32>
    %cst_108 = arith.constant 1.000000e+00 : f32
    %340 = vector.broadcast %cst_108 : f32 to vector<8x32xf32>
    %341 = arith.addf %340, %339 : vector<8x32xf32>
    %342 = tpu.reciprocal %341 {approx = true} : vector<8x32xf32> -> vector<8x32xf32>
    %343 = vector.extract_strided_slice %328 {offsets = [0, 64], sizes = [8, 32], strides = [1, 1]} : vector<8x128xf32> to vector<8x32xf32>
    %344 = math.tanh %343 : vector<8x32xf32>
    %345 = vector.extract_strided_slice %328 {offsets = [0, 96], sizes = [8, 32], strides = [1, 1]} : vector<8x128xf32> to vector<8x32xf32>
    %cst_109 = arith.constant 0.000000e+00 : f32
    %346 = vector.broadcast %cst_109 : f32 to vector<8x32xf32>
    %347 = arith.subf %346, %345 : vector<8x32xf32>
    %348 = math.exp %347 : vector<8x32xf32>
    %cst_110 = arith.constant 1.000000e+00 : f32
    %349 = vector.broadcast %cst_110 : f32 to vector<8x32xf32>
    %350 = arith.addf %349, %348 : vector<8x32xf32>
    %351 = tpu.reciprocal %350 {approx = true} : vector<8x32xf32> -> vector<8x32xf32>
    %352 = arith.mulf %342, %269 : vector<8x32xf32>
    %353 = arith.mulf %335, %344 : vector<8x32xf32>
    %354 = arith.addf %352, %353 : vector<8x32xf32>
    %355 = math.tanh %354 : vector<8x32xf32>
    %356 = arith.mulf %351, %355 : vector<8x32xf32>
    %357 = arith.select %325, %356, %268 : vector<8x32xi1>, vector<8x32xf32>
    %358 = arith.select %325, %354, %269 : vector<8x32xi1>, vector<8x32xf32>
    %359 = arith.index_cast %c3_i32 : i32 to index
    %c0_111 = arith.constant 0 : index
    %c0_112 = arith.constant 0 : index
    %360 = vector.load %arg6[%359, %c0_111, %c0_112] : memref<8x8x32xf32, #tpu.memory_space<vmem>>, vector<1x8x32xf32>
    %361 = vector.shape_cast %360 : vector<1x8x32xf32> to vector<8x32xf32>
    %362 = vector.shape_cast %322 : vector<8x32xf32> to vector<1x8x32xf32>
    tpu.vector_store %arg6[%359, %c0_111, %c0_112], %362 {strides = array<i32>} : memref<8x8x32xf32, #tpu.memory_space<vmem>>, vector<1x8x32xf32>,
    %c7_i32_113 = arith.constant 7 : i32
    %363 = arith.subi %c7_i32_113, %c3_i32 : i32
    %364 = arith.index_cast %363 : i32 to index
    %c0_114 = arith.constant 0 : index
    %c0_115 = arith.constant 0 : index
    %365 = vector.load %arg7[%364, %c0_114, %c0_115] : memref<8x8x32xf32, #tpu.memory_space<vmem>>, vector<1x8x32xf32>
    %366 = vector.shape_cast %365 : vector<1x8x32xf32> to vector<8x32xf32>
    %367 = vector.shape_cast %357 : vector<8x32xf32> to vector<1x8x32xf32>
    tpu.vector_store %arg7[%364, %c0_114, %c0_115], %367 {strides = array<i32>} : memref<8x8x32xf32, #tpu.memory_space<vmem>>, vector<1x8x32xf32>,
    %c4_i32 = arith.constant 4 : i32
    %c8_i32_116 = arith.constant 8 : i32
    %368 = arith.muli %arg0, %c8_i32_116 : i32
    %369 = arith.addi %368, %c4_i32 : i32
    %c7_i32_117 = arith.constant 7 : i32
    %370 = arith.subi %c7_i32_117, %369 : i32
    %371 = arith.index_cast %c4_i32 : i32 to index
    %c0_118 = arith.constant 0 : index
    %c0_119 = arith.constant 0 : index
    %372 = vector.load %arg2[%371, %c0_118, %c0_119] : memref<8x8x128xf32, #tpu.memory_space<vmem>>, vector<1x8x128xf32>
    %373 = vector.shape_cast %372 : vector<1x8x128xf32> to vector<8x128xf32>
    %c7_i32_120 = arith.constant 7 : i32
    %374 = arith.subi %c7_i32_120, %c4_i32 : i32
    %375 = arith.index_cast %374 : i32 to index
    %c0_121 = arith.constant 0 : index
    %c0_122 = arith.constant 0 : index
    %376 = vector.load %arg3[%375, %c0_121, %c0_122] : memref<8x8x128xf32, #tpu.memory_space<vmem>>, vector<1x8x128xf32>
    %377 = vector.shape_cast %376 : vector<1x8x128xf32> to vector<8x128xf32>
    %378 = vector.broadcast %369 : i32 to vector<8x32xi32>
    %379 = arith.cmpi slt, %378, %7 : vector<8x32xi32>
    %380 = arith.truncf %322 : vector<8x32xf32> to vector<8x32xbf16>
    %cst_123 = arith.constant dense<0.000000e+00> : vector<8x128xf32>
    %381 = tpu.matmul %380, %3, %cst_123 {dimension_numbers = #tpu.dot_dimension_numbers<[1], [0], [0], [1], [0, 0, 1, 1], [], []>} : vector<8x32xbf16>, vector<32x128xbf16>, vector<8x128xf32> -> vector<8x128xf32>
    %382 = arith.addf %373, %381 : vector<8x128xf32>
    %383 = vector.extract_strided_slice %382 {offsets = [0, 0], sizes = [8, 32], strides = [1, 1]} : vector<8x128xf32> to vector<8x32xf32>
    %cst_124 = arith.constant 0.000000e+00 : f32
    %384 = vector.broadcast %cst_124 : f32 to vector<8x32xf32>
    %385 = arith.subf %384, %383 : vector<8x32xf32>
    %386 = math.exp %385 : vector<8x32xf32>
    %cst_125 = arith.constant 1.000000e+00 : f32
    %387 = vector.broadcast %cst_125 : f32 to vector<8x32xf32>
    %388 = arith.addf %387, %386 : vector<8x32xf32>
    %389 = tpu.reciprocal %388 {approx = true} : vector<8x32xf32> -> vector<8x32xf32>
    %390 = vector.extract_strided_slice %382 {offsets = [0, 32], sizes = [8, 32], strides = [1, 1]} : vector<8x128xf32> to vector<8x32xf32>
    %cst_126 = arith.constant 0.000000e+00 : f32
    %391 = vector.broadcast %cst_126 : f32 to vector<8x32xf32>
    %392 = arith.subf %391, %390 : vector<8x32xf32>
    %393 = math.exp %392 : vector<8x32xf32>
    %cst_127 = arith.constant 1.000000e+00 : f32
    %394 = vector.broadcast %cst_127 : f32 to vector<8x32xf32>
    %395 = arith.addf %394, %393 : vector<8x32xf32>
    %396 = tpu.reciprocal %395 {approx = true} : vector<8x32xf32> -> vector<8x32xf32>
    %397 = vector.extract_strided_slice %382 {offsets = [0, 64], sizes = [8, 32], strides = [1, 1]} : vector<8x128xf32> to vector<8x32xf32>
    %398 = math.tanh %397 : vector<8x32xf32>
    %399 = vector.extract_strided_slice %382 {offsets = [0, 96], sizes = [8, 32], strides = [1, 1]} : vector<8x128xf32> to vector<8x32xf32>
    %cst_128 = arith.constant 0.000000e+00 : f32
    %400 = vector.broadcast %cst_128 : f32 to vector<8x32xf32>
    %401 = arith.subf %400, %399 : vector<8x32xf32>
    %402 = math.exp %401 : vector<8x32xf32>
    %cst_129 = arith.constant 1.000000e+00 : f32
    %403 = vector.broadcast %cst_129 : f32 to vector<8x32xf32>
    %404 = arith.addf %403, %402 : vector<8x32xf32>
    %405 = tpu.reciprocal %404 {approx = true} : vector<8x32xf32> -> vector<8x32xf32>
    %406 = arith.mulf %396, %323 : vector<8x32xf32>
    %407 = arith.mulf %389, %398 : vector<8x32xf32>
    %408 = arith.addf %406, %407 : vector<8x32xf32>
    %409 = math.tanh %408 : vector<8x32xf32>
    %410 = arith.mulf %405, %409 : vector<8x32xf32>
    %411 = arith.select %379, %410, %322 : vector<8x32xi1>, vector<8x32xf32>
    %412 = arith.select %379, %408, %323 : vector<8x32xi1>, vector<8x32xf32>
    %413 = vector.broadcast %370 : i32 to vector<8x32xi32>
    %414 = arith.cmpi slt, %413, %7 : vector<8x32xi32>
    %415 = arith.truncf %357 : vector<8x32xf32> to vector<8x32xbf16>
    %cst_130 = arith.constant dense<0.000000e+00> : vector<8x128xf32>
    %416 = tpu.matmul %415, %4, %cst_130 {dimension_numbers = #tpu.dot_dimension_numbers<[1], [0], [0], [1], [0, 0, 1, 1], [], []>} : vector<8x32xbf16>, vector<32x128xbf16>, vector<8x128xf32> -> vector<8x128xf32>
    %417 = arith.addf %377, %416 : vector<8x128xf32>
    %418 = vector.extract_strided_slice %417 {offsets = [0, 0], sizes = [8, 32], strides = [1, 1]} : vector<8x128xf32> to vector<8x32xf32>
    %cst_131 = arith.constant 0.000000e+00 : f32
    %419 = vector.broadcast %cst_131 : f32 to vector<8x32xf32>
    %420 = arith.subf %419, %418 : vector<8x32xf32>
    %421 = math.exp %420 : vector<8x32xf32>
    %cst_132 = arith.constant 1.000000e+00 : f32
    %422 = vector.broadcast %cst_132 : f32 to vector<8x32xf32>
    %423 = arith.addf %422, %421 : vector<8x32xf32>
    %424 = tpu.reciprocal %423 {approx = true} : vector<8x32xf32> -> vector<8x32xf32>
    %425 = vector.extract_strided_slice %417 {offsets = [0, 32], sizes = [8, 32], strides = [1, 1]} : vector<8x128xf32> to vector<8x32xf32>
    %cst_133 = arith.constant 0.000000e+00 : f32
    %426 = vector.broadcast %cst_133 : f32 to vector<8x32xf32>
    %427 = arith.subf %426, %425 : vector<8x32xf32>
    %428 = math.exp %427 : vector<8x32xf32>
    %cst_134 = arith.constant 1.000000e+00 : f32
    %429 = vector.broadcast %cst_134 : f32 to vector<8x32xf32>
    %430 = arith.addf %429, %428 : vector<8x32xf32>
    %431 = tpu.reciprocal %430 {approx = true} : vector<8x32xf32> -> vector<8x32xf32>
    %432 = vector.extract_strided_slice %417 {offsets = [0, 64], sizes = [8, 32], strides = [1, 1]} : vector<8x128xf32> to vector<8x32xf32>
    %433 = math.tanh %432 : vector<8x32xf32>
    %434 = vector.extract_strided_slice %417 {offsets = [0, 96], sizes = [8, 32], strides = [1, 1]} : vector<8x128xf32> to vector<8x32xf32>
    %cst_135 = arith.constant 0.000000e+00 : f32
    %435 = vector.broadcast %cst_135 : f32 to vector<8x32xf32>
    %436 = arith.subf %435, %434 : vector<8x32xf32>
    %437 = math.exp %436 : vector<8x32xf32>
    %cst_136 = arith.constant 1.000000e+00 : f32
    %438 = vector.broadcast %cst_136 : f32 to vector<8x32xf32>
    %439 = arith.addf %438, %437 : vector<8x32xf32>
    %440 = tpu.reciprocal %439 {approx = true} : vector<8x32xf32> -> vector<8x32xf32>
    %441 = arith.mulf %431, %358 : vector<8x32xf32>
    %442 = arith.mulf %424, %433 : vector<8x32xf32>
    %443 = arith.addf %441, %442 : vector<8x32xf32>
    %444 = math.tanh %443 : vector<8x32xf32>
    %445 = arith.mulf %440, %444 : vector<8x32xf32>
    %446 = arith.select %414, %445, %357 : vector<8x32xi1>, vector<8x32xf32>
    %447 = arith.select %414, %443, %358 : vector<8x32xi1>, vector<8x32xf32>
    %448 = arith.index_cast %c4_i32 : i32 to index
    %c0_137 = arith.constant 0 : index
    %c0_138 = arith.constant 0 : index
    %449 = vector.load %arg6[%448, %c0_137, %c0_138] : memref<8x8x32xf32, #tpu.memory_space<vmem>>, vector<1x8x32xf32>
    %450 = vector.shape_cast %449 : vector<1x8x32xf32> to vector<8x32xf32>
    %451 = vector.shape_cast %411 : vector<8x32xf32> to vector<1x8x32xf32>
    tpu.vector_store %arg6[%448, %c0_137, %c0_138], %451 {strides = array<i32>} : memref<8x8x32xf32, #tpu.memory_space<vmem>>, vector<1x8x32xf32>,
    %c7_i32_139 = arith.constant 7 : i32
    %452 = arith.subi %c7_i32_139, %c4_i32 : i32
    %453 = arith.index_cast %452 : i32 to index
    %c0_140 = arith.constant 0 : index
    %c0_141 = arith.constant 0 : index
    %454 = vector.load %arg7[%453, %c0_140, %c0_141] : memref<8x8x32xf32, #tpu.memory_space<vmem>>, vector<1x8x32xf32>
    %455 = vector.shape_cast %454 : vector<1x8x32xf32> to vector<8x32xf32>
    %456 = vector.shape_cast %446 : vector<8x32xf32> to vector<1x8x32xf32>
    tpu.vector_store %arg7[%453, %c0_140, %c0_141], %456 {strides = array<i32>} : memref<8x8x32xf32, #tpu.memory_space<vmem>>, vector<1x8x32xf32>,
    %c5_i32 = arith.constant 5 : i32
    %c8_i32_142 = arith.constant 8 : i32
    %457 = arith.muli %arg0, %c8_i32_142 : i32
    %458 = arith.addi %457, %c5_i32 : i32
    %c7_i32_143 = arith.constant 7 : i32
    %459 = arith.subi %c7_i32_143, %458 : i32
    %460 = arith.index_cast %c5_i32 : i32 to index
    %c0_144 = arith.constant 0 : index
    %c0_145 = arith.constant 0 : index
    %461 = vector.load %arg2[%460, %c0_144, %c0_145] : memref<8x8x128xf32, #tpu.memory_space<vmem>>, vector<1x8x128xf32>
    %462 = vector.shape_cast %461 : vector<1x8x128xf32> to vector<8x128xf32>
    %c7_i32_146 = arith.constant 7 : i32
    %463 = arith.subi %c7_i32_146, %c5_i32 : i32
    %464 = arith.index_cast %463 : i32 to index
    %c0_147 = arith.constant 0 : index
    %c0_148 = arith.constant 0 : index
    %465 = vector.load %arg3[%464, %c0_147, %c0_148] : memref<8x8x128xf32, #tpu.memory_space<vmem>>, vector<1x8x128xf32>
    %466 = vector.shape_cast %465 : vector<1x8x128xf32> to vector<8x128xf32>
    %467 = vector.broadcast %458 : i32 to vector<8x32xi32>
    %468 = arith.cmpi slt, %467, %7 : vector<8x32xi32>
    %469 = arith.truncf %411 : vector<8x32xf32> to vector<8x32xbf16>
    %cst_149 = arith.constant dense<0.000000e+00> : vector<8x128xf32>
    %470 = tpu.matmul %469, %3, %cst_149 {dimension_numbers = #tpu.dot_dimension_numbers<[1], [0], [0], [1], [0, 0, 1, 1], [], []>} : vector<8x32xbf16>, vector<32x128xbf16>, vector<8x128xf32> -> vector<8x128xf32>
    %471 = arith.addf %462, %470 : vector<8x128xf32>
    %472 = vector.extract_strided_slice %471 {offsets = [0, 0], sizes = [8, 32], strides = [1, 1]} : vector<8x128xf32> to vector<8x32xf32>
    %cst_150 = arith.constant 0.000000e+00 : f32
    %473 = vector.broadcast %cst_150 : f32 to vector<8x32xf32>
    %474 = arith.subf %473, %472 : vector<8x32xf32>
    %475 = math.exp %474 : vector<8x32xf32>
    %cst_151 = arith.constant 1.000000e+00 : f32
    %476 = vector.broadcast %cst_151 : f32 to vector<8x32xf32>
    %477 = arith.addf %476, %475 : vector<8x32xf32>
    %478 = tpu.reciprocal %477 {approx = true} : vector<8x32xf32> -> vector<8x32xf32>
    %479 = vector.extract_strided_slice %471 {offsets = [0, 32], sizes = [8, 32], strides = [1, 1]} : vector<8x128xf32> to vector<8x32xf32>
    %cst_152 = arith.constant 0.000000e+00 : f32
    %480 = vector.broadcast %cst_152 : f32 to vector<8x32xf32>
    %481 = arith.subf %480, %479 : vector<8x32xf32>
    %482 = math.exp %481 : vector<8x32xf32>
    %cst_153 = arith.constant 1.000000e+00 : f32
    %483 = vector.broadcast %cst_153 : f32 to vector<8x32xf32>
    %484 = arith.addf %483, %482 : vector<8x32xf32>
    %485 = tpu.reciprocal %484 {approx = true} : vector<8x32xf32> -> vector<8x32xf32>
    %486 = vector.extract_strided_slice %471 {offsets = [0, 64], sizes = [8, 32], strides = [1, 1]} : vector<8x128xf32> to vector<8x32xf32>
    %487 = math.tanh %486 : vector<8x32xf32>
    %488 = vector.extract_strided_slice %471 {offsets = [0, 96], sizes = [8, 32], strides = [1, 1]} : vector<8x128xf32> to vector<8x32xf32>
    %cst_154 = arith.constant 0.000000e+00 : f32
    %489 = vector.broadcast %cst_154 : f32 to vector<8x32xf32>
    %490 = arith.subf %489, %488 : vector<8x32xf32>
    %491 = math.exp %490 : vector<8x32xf32>
    %cst_155 = arith.constant 1.000000e+00 : f32
    %492 = vector.broadcast %cst_155 : f32 to vector<8x32xf32>
    %493 = arith.addf %492, %491 : vector<8x32xf32>
    %494 = tpu.reciprocal %493 {approx = true} : vector<8x32xf32> -> vector<8x32xf32>
    %495 = arith.mulf %485, %412 : vector<8x32xf32>
    %496 = arith.mulf %478, %487 : vector<8x32xf32>
    %497 = arith.addf %495, %496 : vector<8x32xf32>
    %498 = math.tanh %497 : vector<8x32xf32>
    %499 = arith.mulf %494, %498 : vector<8x32xf32>
    %500 = arith.select %468, %499, %411 : vector<8x32xi1>, vector<8x32xf32>
    %501 = arith.select %468, %497, %412 : vector<8x32xi1>, vector<8x32xf32>
    %502 = vector.broadcast %459 : i32 to vector<8x32xi32>
    %503 = arith.cmpi slt, %502, %7 : vector<8x32xi32>
    %504 = arith.truncf %446 : vector<8x32xf32> to vector<8x32xbf16>
    %cst_156 = arith.constant dense<0.000000e+00> : vector<8x128xf32>
    %505 = tpu.matmul %504, %4, %cst_156 {dimension_numbers = #tpu.dot_dimension_numbers<[1], [0], [0], [1], [0, 0, 1, 1], [], []>} : vector<8x32xbf16>, vector<32x128xbf16>, vector<8x128xf32> -> vector<8x128xf32>
    %506 = arith.addf %466, %505 : vector<8x128xf32>
    %507 = vector.extract_strided_slice %506 {offsets = [0, 0], sizes = [8, 32], strides = [1, 1]} : vector<8x128xf32> to vector<8x32xf32>
    %cst_157 = arith.constant 0.000000e+00 : f32
    %508 = vector.broadcast %cst_157 : f32 to vector<8x32xf32>
    %509 = arith.subf %508, %507 : vector<8x32xf32>
    %510 = math.exp %509 : vector<8x32xf32>
    %cst_158 = arith.constant 1.000000e+00 : f32
    %511 = vector.broadcast %cst_158 : f32 to vector<8x32xf32>
    %512 = arith.addf %511, %510 : vector<8x32xf32>
    %513 = tpu.reciprocal %512 {approx = true} : vector<8x32xf32> -> vector<8x32xf32>
    %514 = vector.extract_strided_slice %506 {offsets = [0, 32], sizes = [8, 32], strides = [1, 1]} : vector<8x128xf32> to vector<8x32xf32>
    %cst_159 = arith.constant 0.000000e+00 : f32
    %515 = vector.broadcast %cst_159 : f32 to vector<8x32xf32>
    %516 = arith.subf %515, %514 : vector<8x32xf32>
    %517 = math.exp %516 : vector<8x32xf32>
    %cst_160 = arith.constant 1.000000e+00 : f32
    %518 = vector.broadcast %cst_160 : f32 to vector<8x32xf32>
    %519 = arith.addf %518, %517 : vector<8x32xf32>
    %520 = tpu.reciprocal %519 {approx = true} : vector<8x32xf32> -> vector<8x32xf32>
    %521 = vector.extract_strided_slice %506 {offsets = [0, 64], sizes = [8, 32], strides = [1, 1]} : vector<8x128xf32> to vector<8x32xf32>
    %522 = math.tanh %521 : vector<8x32xf32>
    %523 = vector.extract_strided_slice %506 {offsets = [0, 96], sizes = [8, 32], strides = [1, 1]} : vector<8x128xf32> to vector<8x32xf32>
    %cst_161 = arith.constant 0.000000e+00 : f32
    %524 = vector.broadcast %cst_161 : f32 to vector<8x32xf32>
    %525 = arith.subf %524, %523 : vector<8x32xf32>
    %526 = math.exp %525 : vector<8x32xf32>
    %cst_162 = arith.constant 1.000000e+00 : f32
    %527 = vector.broadcast %cst_162 : f32 to vector<8x32xf32>
    %528 = arith.addf %527, %526 : vector<8x32xf32>
    %529 = tpu.reciprocal %528 {approx = true} : vector<8x32xf32> -> vector<8x32xf32>
    %530 = arith.mulf %520, %447 : vector<8x32xf32>
    %531 = arith.mulf %513, %522 : vector<8x32xf32>
    %532 = arith.addf %530, %531 : vector<8x32xf32>
    %533 = math.tanh %532 : vector<8x32xf32>
    %534 = arith.mulf %529, %533 : vector<8x32xf32>
    %535 = arith.select %503, %534, %446 : vector<8x32xi1>, vector<8x32xf32>
    %536 = arith.select %503, %532, %447 : vector<8x32xi1>, vector<8x32xf32>
    %537 = arith.index_cast %c5_i32 : i32 to index
    %c0_163 = arith.constant 0 : index
    %c0_164 = arith.constant 0 : index
    %538 = vector.load %arg6[%537, %c0_163, %c0_164] : memref<8x8x32xf32, #tpu.memory_space<vmem>>, vector<1x8x32xf32>
    %539 = vector.shape_cast %538 : vector<1x8x32xf32> to vector<8x32xf32>
    %540 = vector.shape_cast %500 : vector<8x32xf32> to vector<1x8x32xf32>
    tpu.vector_store %arg6[%537, %c0_163, %c0_164], %540 {strides = array<i32>} : memref<8x8x32xf32, #tpu.memory_space<vmem>>, vector<1x8x32xf32>,
    %c7_i32_165 = arith.constant 7 : i32
    %541 = arith.subi %c7_i32_165, %c5_i32 : i32
    %542 = arith.index_cast %541 : i32 to index
    %c0_166 = arith.constant 0 : index
    %c0_167 = arith.constant 0 : index
    %543 = vector.load %arg7[%542, %c0_166, %c0_167] : memref<8x8x32xf32, #tpu.memory_space<vmem>>, vector<1x8x32xf32>
    %544 = vector.shape_cast %543 : vector<1x8x32xf32> to vector<8x32xf32>
    %545 = vector.shape_cast %535 : vector<8x32xf32> to vector<1x8x32xf32>
    tpu.vector_store %arg7[%542, %c0_166, %c0_167], %545 {strides = array<i32>} : memref<8x8x32xf32, #tpu.memory_space<vmem>>, vector<1x8x32xf32>,
    %c6_i32 = arith.constant 6 : i32
    %c8_i32_168 = arith.constant 8 : i32
    %546 = arith.muli %arg0, %c8_i32_168 : i32
    %547 = arith.addi %546, %c6_i32 : i32
    %c7_i32_169 = arith.constant 7 : i32
    %548 = arith.subi %c7_i32_169, %547 : i32
    %549 = arith.index_cast %c6_i32 : i32 to index
    %c0_170 = arith.constant 0 : index
    %c0_171 = arith.constant 0 : index
    %550 = vector.load %arg2[%549, %c0_170, %c0_171] : memref<8x8x128xf32, #tpu.memory_space<vmem>>, vector<1x8x128xf32>
    %551 = vector.shape_cast %550 : vector<1x8x128xf32> to vector<8x128xf32>
    %c7_i32_172 = arith.constant 7 : i32
    %552 = arith.subi %c7_i32_172, %c6_i32 : i32
    %553 = arith.index_cast %552 : i32 to index
    %c0_173 = arith.constant 0 : index
    %c0_174 = arith.constant 0 : index
    %554 = vector.load %arg3[%553, %c0_173, %c0_174] : memref<8x8x128xf32, #tpu.memory_space<vmem>>, vector<1x8x128xf32>
    %555 = vector.shape_cast %554 : vector<1x8x128xf32> to vector<8x128xf32>
    %556 = vector.broadcast %547 : i32 to vector<8x32xi32>
    %557 = arith.cmpi slt, %556, %7 : vector<8x32xi32>
    %558 = arith.truncf %500 : vector<8x32xf32> to vector<8x32xbf16>
    %cst_175 = arith.constant dense<0.000000e+00> : vector<8x128xf32>
    %559 = tpu.matmul %558, %3, %cst_175 {dimension_numbers = #tpu.dot_dimension_numbers<[1], [0], [0], [1], [0, 0, 1, 1], [], []>} : vector<8x32xbf16>, vector<32x128xbf16>, vector<8x128xf32> -> vector<8x128xf32>
    %560 = arith.addf %551, %559 : vector<8x128xf32>
    %561 = vector.extract_strided_slice %560 {offsets = [0, 0], sizes = [8, 32], strides = [1, 1]} : vector<8x128xf32> to vector<8x32xf32>
    %cst_176 = arith.constant 0.000000e+00 : f32
    %562 = vector.broadcast %cst_176 : f32 to vector<8x32xf32>
    %563 = arith.subf %562, %561 : vector<8x32xf32>
    %564 = math.exp %563 : vector<8x32xf32>
    %cst_177 = arith.constant 1.000000e+00 : f32
    %565 = vector.broadcast %cst_177 : f32 to vector<8x32xf32>
    %566 = arith.addf %565, %564 : vector<8x32xf32>
    %567 = tpu.reciprocal %566 {approx = true} : vector<8x32xf32> -> vector<8x32xf32>
    %568 = vector.extract_strided_slice %560 {offsets = [0, 32], sizes = [8, 32], strides = [1, 1]} : vector<8x128xf32> to vector<8x32xf32>
    %cst_178 = arith.constant 0.000000e+00 : f32
    %569 = vector.broadcast %cst_178 : f32 to vector<8x32xf32>
    %570 = arith.subf %569, %568 : vector<8x32xf32>
    %571 = math.exp %570 : vector<8x32xf32>
    %cst_179 = arith.constant 1.000000e+00 : f32
    %572 = vector.broadcast %cst_179 : f32 to vector<8x32xf32>
    %573 = arith.addf %572, %571 : vector<8x32xf32>
    %574 = tpu.reciprocal %573 {approx = true} : vector<8x32xf32> -> vector<8x32xf32>
    %575 = vector.extract_strided_slice %560 {offsets = [0, 64], sizes = [8, 32], strides = [1, 1]} : vector<8x128xf32> to vector<8x32xf32>
    %576 = math.tanh %575 : vector<8x32xf32>
    %577 = vector.extract_strided_slice %560 {offsets = [0, 96], sizes = [8, 32], strides = [1, 1]} : vector<8x128xf32> to vector<8x32xf32>
    %cst_180 = arith.constant 0.000000e+00 : f32
    %578 = vector.broadcast %cst_180 : f32 to vector<8x32xf32>
    %579 = arith.subf %578, %577 : vector<8x32xf32>
    %580 = math.exp %579 : vector<8x32xf32>
    %cst_181 = arith.constant 1.000000e+00 : f32
    %581 = vector.broadcast %cst_181 : f32 to vector<8x32xf32>
    %582 = arith.addf %581, %580 : vector<8x32xf32>
    %583 = tpu.reciprocal %582 {approx = true} : vector<8x32xf32> -> vector<8x32xf32>
    %584 = arith.mulf %574, %501 : vector<8x32xf32>
    %585 = arith.mulf %567, %576 : vector<8x32xf32>
    %586 = arith.addf %584, %585 : vector<8x32xf32>
    %587 = math.tanh %586 : vector<8x32xf32>
    %588 = arith.mulf %583, %587 : vector<8x32xf32>
    %589 = arith.select %557, %588, %500 : vector<8x32xi1>, vector<8x32xf32>
    %590 = arith.select %557, %586, %501 : vector<8x32xi1>, vector<8x32xf32>
    %591 = vector.broadcast %548 : i32 to vector<8x32xi32>
    %592 = arith.cmpi slt, %591, %7 : vector<8x32xi32>
    %593 = arith.truncf %535 : vector<8x32xf32> to vector<8x32xbf16>
    %cst_182 = arith.constant dense<0.000000e+00> : vector<8x128xf32>
    %594 = tpu.matmul %593, %4, %cst_182 {dimension_numbers = #tpu.dot_dimension_numbers<[1], [0], [0], [1], [0, 0, 1, 1], [], []>} : vector<8x32xbf16>, vector<32x128xbf16>, vector<8x128xf32> -> vector<8x128xf32>
    %595 = arith.addf %555, %594 : vector<8x128xf32>
    %596 = vector.extract_strided_slice %595 {offsets = [0, 0], sizes = [8, 32], strides = [1, 1]} : vector<8x128xf32> to vector<8x32xf32>
    %cst_183 = arith.constant 0.000000e+00 : f32
    %597 = vector.broadcast %cst_183 : f32 to vector<8x32xf32>
    %598 = arith.subf %597, %596 : vector<8x32xf32>
    %599 = math.exp %598 : vector<8x32xf32>
    %cst_184 = arith.constant 1.000000e+00 : f32
    %600 = vector.broadcast %cst_184 : f32 to vector<8x32xf32>
    %601 = arith.addf %600, %599 : vector<8x32xf32>
    %602 = tpu.reciprocal %601 {approx = true} : vector<8x32xf32> -> vector<8x32xf32>
    %603 = vector.extract_strided_slice %595 {offsets = [0, 32], sizes = [8, 32], strides = [1, 1]} : vector<8x128xf32> to vector<8x32xf32>
    %cst_185 = arith.constant 0.000000e+00 : f32
    %604 = vector.broadcast %cst_185 : f32 to vector<8x32xf32>
    %605 = arith.subf %604, %603 : vector<8x32xf32>
    %606 = math.exp %605 : vector<8x32xf32>
    %cst_186 = arith.constant 1.000000e+00 : f32
    %607 = vector.broadcast %cst_186 : f32 to vector<8x32xf32>
    %608 = arith.addf %607, %606 : vector<8x32xf32>
    %609 = tpu.reciprocal %608 {approx = true} : vector<8x32xf32> -> vector<8x32xf32>
    %610 = vector.extract_strided_slice %595 {offsets = [0, 64], sizes = [8, 32], strides = [1, 1]} : vector<8x128xf32> to vector<8x32xf32>
    %611 = math.tanh %610 : vector<8x32xf32>
    %612 = vector.extract_strided_slice %595 {offsets = [0, 96], sizes = [8, 32], strides = [1, 1]} : vector<8x128xf32> to vector<8x32xf32>
    %cst_187 = arith.constant 0.000000e+00 : f32
    %613 = vector.broadcast %cst_187 : f32 to vector<8x32xf32>
    %614 = arith.subf %613, %612 : vector<8x32xf32>
    %615 = math.exp %614 : vector<8x32xf32>
    %cst_188 = arith.constant 1.000000e+00 : f32
    %616 = vector.broadcast %cst_188 : f32 to vector<8x32xf32>
    %617 = arith.addf %616, %615 : vector<8x32xf32>
    %618 = tpu.reciprocal %617 {approx = true} : vector<8x32xf32> -> vector<8x32xf32>
    %619 = arith.mulf %609, %536 : vector<8x32xf32>
    %620 = arith.mulf %602, %611 : vector<8x32xf32>
    %621 = arith.addf %619, %620 : vector<8x32xf32>
    %622 = math.tanh %621 : vector<8x32xf32>
    %623 = arith.mulf %618, %622 : vector<8x32xf32>
    %624 = arith.select %592, %623, %535 : vector<8x32xi1>, vector<8x32xf32>
    %625 = arith.select %592, %621, %536 : vector<8x32xi1>, vector<8x32xf32>
    %626 = arith.index_cast %c6_i32 : i32 to index
    %c0_189 = arith.constant 0 : index
    %c0_190 = arith.constant 0 : index
    %627 = vector.load %arg6[%626, %c0_189, %c0_190] : memref<8x8x32xf32, #tpu.memory_space<vmem>>, vector<1x8x32xf32>
    %628 = vector.shape_cast %627 : vector<1x8x32xf32> to vector<8x32xf32>
    %629 = vector.shape_cast %589 : vector<8x32xf32> to vector<1x8x32xf32>
    tpu.vector_store %arg6[%626, %c0_189, %c0_190], %629 {strides = array<i32>} : memref<8x8x32xf32, #tpu.memory_space<vmem>>, vector<1x8x32xf32>,
    %c7_i32_191 = arith.constant 7 : i32
    %630 = arith.subi %c7_i32_191, %c6_i32 : i32
    %631 = arith.index_cast %630 : i32 to index
    %c0_192 = arith.constant 0 : index
    %c0_193 = arith.constant 0 : index
    %632 = vector.load %arg7[%631, %c0_192, %c0_193] : memref<8x8x32xf32, #tpu.memory_space<vmem>>, vector<1x8x32xf32>
    %633 = vector.shape_cast %632 : vector<1x8x32xf32> to vector<8x32xf32>
    %634 = vector.shape_cast %624 : vector<8x32xf32> to vector<1x8x32xf32>
    tpu.vector_store %arg7[%631, %c0_192, %c0_193], %634 {strides = array<i32>} : memref<8x8x32xf32, #tpu.memory_space<vmem>>, vector<1x8x32xf32>,
    %c7_i32_194 = arith.constant 7 : i32
    %c8_i32_195 = arith.constant 8 : i32
    %635 = arith.muli %arg0, %c8_i32_195 : i32
    %636 = arith.addi %635, %c7_i32_194 : i32
    %c7_i32_196 = arith.constant 7 : i32
    %637 = arith.subi %c7_i32_196, %636 : i32
    %638 = arith.index_cast %c7_i32_194 : i32 to index
    %c0_197 = arith.constant 0 : index
    %c0_198 = arith.constant 0 : index
    %639 = vector.load %arg2[%638, %c0_197, %c0_198] : memref<8x8x128xf32, #tpu.memory_space<vmem>>, vector<1x8x128xf32>
    %640 = vector.shape_cast %639 : vector<1x8x128xf32> to vector<8x128xf32>
    %c7_i32_199 = arith.constant 7 : i32
    %641 = arith.subi %c7_i32_199, %c7_i32_194 : i32
    %642 = arith.index_cast %641 : i32 to index
    %c0_200 = arith.constant 0 : index
    %c0_201 = arith.constant 0 : index
    %643 = vector.load %arg3[%642, %c0_200, %c0_201] : memref<8x8x128xf32, #tpu.memory_space<vmem>>, vector<1x8x128xf32>
    %644 = vector.shape_cast %643 : vector<1x8x128xf32> to vector<8x128xf32>
    %645 = vector.broadcast %636 : i32 to vector<8x32xi32>
    %646 = arith.cmpi slt, %645, %7 : vector<8x32xi32>
    %647 = arith.truncf %589 : vector<8x32xf32> to vector<8x32xbf16>
    %cst_202 = arith.constant dense<0.000000e+00> : vector<8x128xf32>
    %648 = tpu.matmul %647, %3, %cst_202 {dimension_numbers = #tpu.dot_dimension_numbers<[1], [0], [0], [1], [0, 0, 1, 1], [], []>} : vector<8x32xbf16>, vector<32x128xbf16>, vector<8x128xf32> -> vector<8x128xf32>
    %649 = arith.addf %640, %648 : vector<8x128xf32>
    %650 = vector.extract_strided_slice %649 {offsets = [0, 0], sizes = [8, 32], strides = [1, 1]} : vector<8x128xf32> to vector<8x32xf32>
    %cst_203 = arith.constant 0.000000e+00 : f32
    %651 = vector.broadcast %cst_203 : f32 to vector<8x32xf32>
    %652 = arith.subf %651, %650 : vector<8x32xf32>
    %653 = math.exp %652 : vector<8x32xf32>
    %cst_204 = arith.constant 1.000000e+00 : f32
    %654 = vector.broadcast %cst_204 : f32 to vector<8x32xf32>
    %655 = arith.addf %654, %653 : vector<8x32xf32>
    %656 = tpu.reciprocal %655 {approx = true} : vector<8x32xf32> -> vector<8x32xf32>
    %657 = vector.extract_strided_slice %649 {offsets = [0, 32], sizes = [8, 32], strides = [1, 1]} : vector<8x128xf32> to vector<8x32xf32>
    %cst_205 = arith.constant 0.000000e+00 : f32
    %658 = vector.broadcast %cst_205 : f32 to vector<8x32xf32>
    %659 = arith.subf %658, %657 : vector<8x32xf32>
    %660 = math.exp %659 : vector<8x32xf32>
    %cst_206 = arith.constant 1.000000e+00 : f32
    %661 = vector.broadcast %cst_206 : f32 to vector<8x32xf32>
    %662 = arith.addf %661, %660 : vector<8x32xf32>
    %663 = tpu.reciprocal %662 {approx = true} : vector<8x32xf32> -> vector<8x32xf32>
    %664 = vector.extract_strided_slice %649 {offsets = [0, 64], sizes = [8, 32], strides = [1, 1]} : vector<8x128xf32> to vector<8x32xf32>
    %665 = math.tanh %664 : vector<8x32xf32>
    %666 = vector.extract_strided_slice %649 {offsets = [0, 96], sizes = [8, 32], strides = [1, 1]} : vector<8x128xf32> to vector<8x32xf32>
    %cst_207 = arith.constant 0.000000e+00 : f32
    %667 = vector.broadcast %cst_207 : f32 to vector<8x32xf32>
    %668 = arith.subf %667, %666 : vector<8x32xf32>
    %669 = math.exp %668 : vector<8x32xf32>
    %cst_208 = arith.constant 1.000000e+00 : f32
    %670 = vector.broadcast %cst_208 : f32 to vector<8x32xf32>
    %671 = arith.addf %670, %669 : vector<8x32xf32>
    %672 = tpu.reciprocal %671 {approx = true} : vector<8x32xf32> -> vector<8x32xf32>
    %673 = arith.mulf %663, %590 : vector<8x32xf32>
    %674 = arith.mulf %656, %665 : vector<8x32xf32>
    %675 = arith.addf %673, %674 : vector<8x32xf32>
    %676 = math.tanh %675 : vector<8x32xf32>
    %677 = arith.mulf %672, %676 : vector<8x32xf32>
    %678 = arith.select %646, %677, %589 : vector<8x32xi1>, vector<8x32xf32>
    %679 = arith.select %646, %675, %590 : vector<8x32xi1>, vector<8x32xf32>
    %680 = vector.broadcast %637 : i32 to vector<8x32xi32>
    %681 = arith.cmpi slt, %680, %7 : vector<8x32xi32>
    %682 = arith.truncf %624 : vector<8x32xf32> to vector<8x32xbf16>
    %cst_209 = arith.constant dense<0.000000e+00> : vector<8x128xf32>
    %683 = tpu.matmul %682, %4, %cst_209 {dimension_numbers = #tpu.dot_dimension_numbers<[1], [0], [0], [1], [0, 0, 1, 1], [], []>} : vector<8x32xbf16>, vector<32x128xbf16>, vector<8x128xf32> -> vector<8x128xf32>
    %684 = arith.addf %644, %683 : vector<8x128xf32>
    %685 = vector.extract_strided_slice %684 {offsets = [0, 0], sizes = [8, 32], strides = [1, 1]} : vector<8x128xf32> to vector<8x32xf32>
    %cst_210 = arith.constant 0.000000e+00 : f32
    %686 = vector.broadcast %cst_210 : f32 to vector<8x32xf32>
    %687 = arith.subf %686, %685 : vector<8x32xf32>
    %688 = math.exp %687 : vector<8x32xf32>
    %cst_211 = arith.constant 1.000000e+00 : f32
    %689 = vector.broadcast %cst_211 : f32 to vector<8x32xf32>
    %690 = arith.addf %689, %688 : vector<8x32xf32>
    %691 = tpu.reciprocal %690 {approx = true} : vector<8x32xf32> -> vector<8x32xf32>
    %692 = vector.extract_strided_slice %684 {offsets = [0, 32], sizes = [8, 32], strides = [1, 1]} : vector<8x128xf32> to vector<8x32xf32>
    %cst_212 = arith.constant 0.000000e+00 : f32
    %693 = vector.broadcast %cst_212 : f32 to vector<8x32xf32>
    %694 = arith.subf %693, %692 : vector<8x32xf32>
    %695 = math.exp %694 : vector<8x32xf32>
    %cst_213 = arith.constant 1.000000e+00 : f32
    %696 = vector.broadcast %cst_213 : f32 to vector<8x32xf32>
    %697 = arith.addf %696, %695 : vector<8x32xf32>
    %698 = tpu.reciprocal %697 {approx = true} : vector<8x32xf32> -> vector<8x32xf32>
    %699 = vector.extract_strided_slice %684 {offsets = [0, 64], sizes = [8, 32], strides = [1, 1]} : vector<8x128xf32> to vector<8x32xf32>
    %700 = math.tanh %699 : vector<8x32xf32>
    %701 = vector.extract_strided_slice %684 {offsets = [0, 96], sizes = [8, 32], strides = [1, 1]} : vector<8x128xf32> to vector<8x32xf32>
    %cst_214 = arith.constant 0.000000e+00 : f32
    %702 = vector.broadcast %cst_214 : f32 to vector<8x32xf32>
    %703 = arith.subf %702, %701 : vector<8x32xf32>
    %704 = math.exp %703 : vector<8x32xf32>
    %cst_215 = arith.constant 1.000000e+00 : f32
    %705 = vector.broadcast %cst_215 : f32 to vector<8x32xf32>
    %706 = arith.addf %705, %704 : vector<8x32xf32>
    %707 = tpu.reciprocal %706 {approx = true} : vector<8x32xf32> -> vector<8x32xf32>
    %708 = arith.mulf %698, %625 : vector<8x32xf32>
    %709 = arith.mulf %691, %700 : vector<8x32xf32>
    %710 = arith.addf %708, %709 : vector<8x32xf32>
    %711 = math.tanh %710 : vector<8x32xf32>
    %712 = arith.mulf %707, %711 : vector<8x32xf32>
    %713 = arith.select %681, %712, %624 : vector<8x32xi1>, vector<8x32xf32>
    %714 = arith.select %681, %710, %625 : vector<8x32xi1>, vector<8x32xf32>
    %715 = arith.index_cast %c7_i32_194 : i32 to index
    %c0_216 = arith.constant 0 : index
    %c0_217 = arith.constant 0 : index
    %716 = vector.load %arg6[%715, %c0_216, %c0_217] : memref<8x8x32xf32, #tpu.memory_space<vmem>>, vector<1x8x32xf32>
    %717 = vector.shape_cast %716 : vector<1x8x32xf32> to vector<8x32xf32>
    %718 = vector.shape_cast %678 : vector<8x32xf32> to vector<1x8x32xf32>
    tpu.vector_store %arg6[%715, %c0_216, %c0_217], %718 {strides = array<i32>} : memref<8x8x32xf32, #tpu.memory_space<vmem>>, vector<1x8x32xf32>,
    %c7_i32_218 = arith.constant 7 : i32
    %719 = arith.subi %c7_i32_218, %c7_i32_194 : i32
    %720 = arith.index_cast %719 : i32 to index
    %c0_219 = arith.constant 0 : index
    %c0_220 = arith.constant 0 : index
    %721 = vector.load %arg7[%720, %c0_219, %c0_220] : memref<8x8x32xf32, #tpu.memory_space<vmem>>, vector<1x8x32xf32>
    %722 = vector.shape_cast %721 : vector<1x8x32xf32> to vector<8x32xf32>
    %723 = vector.shape_cast %713 : vector<8x32xf32> to vector<1x8x32xf32>
    tpu.vector_store %arg7[%720, %c0_219, %c0_220], %723 {strides = array<i32>} : memref<8x8x32xf32, #tpu.memory_space<vmem>>, vector<1x8x32xf32>,
    %c8_i32_221 = arith.constant 8 : i32
    %c0_222 = arith.constant 0 : index
    %c0_223 = arith.constant 0 : index
    %724 = vector.load %arg10[%c0_222, %c0_223] : memref<8x32xf32, #tpu.memory_space<vmem>>, vector<8x32xf32>
    tpu.vector_store %arg10[%c0_222, %c0_223], %678 {strides = array<i32>} : memref<8x32xf32, #tpu.memory_space<vmem>>, vector<8x32xf32>,
    %c0_224 = arith.constant 0 : index
    %c0_225 = arith.constant 0 : index
    %725 = vector.load %arg11[%c0_224, %c0_225] : memref<8x32xf32, #tpu.memory_space<vmem>>, vector<8x32xf32>
    tpu.vector_store %arg11[%c0_224, %c0_225], %679 {strides = array<i32>} : memref<8x32xf32, #tpu.memory_space<vmem>>, vector<8x32xf32>,
    %c0_226 = arith.constant 0 : index
    %c0_227 = arith.constant 0 : index
    %726 = vector.load %arg12[%c0_226, %c0_227] : memref<8x32xf32, #tpu.memory_space<vmem>>, vector<8x32xf32>
    tpu.vector_store %arg12[%c0_226, %c0_227], %713 {strides = array<i32>} : memref<8x32xf32, #tpu.memory_space<vmem>>, vector<8x32xf32>,
    %c0_228 = arith.constant 0 : index
    %c0_229 = arith.constant 0 : index
    %727 = vector.load %arg13[%c0_228, %c0_229] : memref<8x32xf32, #tpu.memory_space<vmem>>, vector<8x32xf32>
    tpu.vector_store %arg13[%c0_228, %c0_229], %714 {strides = array<i32>} : memref<8x32xf32, #tpu.memory_space<vmem>>, vector<8x32xf32>,
    %c0_i32_230 = arith.constant 0 : i32
    %728 = arith.cmpi eq, %arg0, %c0_i32_230 : i32
    %729 = arith.extui %728 : i1 to i32
    %c0_i32_231 = arith.constant 0 : i32
    %730 = arith.cmpi ne, %729, %c0_i32_231 : i32
    scf.if %730 {
      %c0_232 = arith.constant 0 : index
      %c0_233 = arith.constant 0 : index
      %c0_234 = arith.constant 0 : index
      %731 = vector.load %arg8[%c0_232, %c0_233, %c0_234] : memref<2x8x32xf32, #tpu.memory_space<vmem>>, vector<1x8x32xf32>
      %732 = vector.shape_cast %731 : vector<1x8x32xf32> to vector<8x32xf32>
      %733 = vector.shape_cast %678 : vector<8x32xf32> to vector<1x8x32xf32>
      tpu.vector_store %arg8[%c0_232, %c0_233, %c0_234], %733 {strides = array<i32>} : memref<2x8x32xf32, #tpu.memory_space<vmem>>, vector<1x8x32xf32>,
      %c1 = arith.constant 1 : index
      %c0_235 = arith.constant 0 : index
      %c0_236 = arith.constant 0 : index
      %734 = vector.load %arg8[%c1, %c0_235, %c0_236] : memref<2x8x32xf32, #tpu.memory_space<vmem>>, vector<1x8x32xf32>
      %735 = vector.shape_cast %734 : vector<1x8x32xf32> to vector<8x32xf32>
      %736 = vector.shape_cast %713 : vector<8x32xf32> to vector<1x8x32xf32>
      tpu.vector_store %arg8[%c1, %c0_235, %c0_236], %736 {strides = array<i32>} : memref<2x8x32xf32, #tpu.memory_space<vmem>>, vector<1x8x32xf32>,
      %c0_237 = arith.constant 0 : index
      %c0_238 = arith.constant 0 : index
      %c0_239 = arith.constant 0 : index
      %737 = vector.load %arg9[%c0_237, %c0_238, %c0_239] : memref<2x8x32xf32, #tpu.memory_space<vmem>>, vector<1x8x32xf32>
      %738 = vector.shape_cast %737 : vector<1x8x32xf32> to vector<8x32xf32>
      %739 = vector.shape_cast %679 : vector<8x32xf32> to vector<1x8x32xf32>
      tpu.vector_store %arg9[%c0_237, %c0_238, %c0_239], %739 {strides = array<i32>} : memref<2x8x32xf32, #tpu.memory_space<vmem>>, vector<1x8x32xf32>,
      %c1_240 = arith.constant 1 : index
      %c0_241 = arith.constant 0 : index
      %c0_242 = arith.constant 0 : index
      %740 = vector.load %arg9[%c1_240, %c0_241, %c0_242] : memref<2x8x32xf32, #tpu.memory_space<vmem>>, vector<1x8x32xf32>
      %741 = vector.shape_cast %740 : vector<1x8x32xf32> to vector<8x32xf32>
      %742 = vector.shape_cast %714 : vector<8x32xf32> to vector<1x8x32xf32>
      tpu.vector_store %arg9[%c1_240, %c0_241, %c0_242], %742 {strides = array<i32>} : memref<2x8x32xf32, #tpu.memory_space<vmem>>, vector<1x8x32xf32>,
    } else {
    }
    return
  }
  func.func @transform_0(%arg0: i32) -> (i32, i32) {
    %c0_i32 = arith.constant 0 : i32
    %c0_i32_0 = arith.constant 0 : i32
    %c0_i32_1 = arith.constant 0 : i32
    return %c0_i32, %c0_i32_0 : i32, i32
  }
  func.func @transform_1(%arg0: i32) -> (i32, i32, i32) {
    %c0_i32 = arith.constant 0 : i32
    %c0_i32_0 = arith.constant 0 : i32
    %c0_i32_1 = arith.constant 0 : i32
    return %arg0, %c0_i32, %c0_i32_0 : i32, i32, i32
  }
  func.func @transform_2(%arg0: i32) -> (i32, i32, i32) {
    %c0_i32 = arith.constant 0 : i32
    %0 = arith.subi %c0_i32, %arg0 : i32
    %c0_i32_0 = arith.constant 0 : i32
    %c0_i32_1 = arith.constant 0 : i32
    %c0_i32_2 = arith.constant 0 : i32
    return %0, %c0_i32_0, %c0_i32_1 : i32, i32, i32
  }
  func.func @transform_3(%arg0: i32) -> (i32, i32) {
    %c0_i32 = arith.constant 0 : i32
    %c0_i32_0 = arith.constant 0 : i32
    %c0_i32_1 = arith.constant 0 : i32
    return %c0_i32, %c0_i32_0 : i32, i32
  }
  func.func @transform_4(%arg0: i32) -> (i32, i32) {
    %c0_i32 = arith.constant 0 : i32
    %c0_i32_0 = arith.constant 0 : i32
    %c0_i32_1 = arith.constant 0 : i32
    return %c0_i32, %c0_i32_0 : i32, i32
  }
  func.func @transform_5(%arg0: i32) -> (i32, i32, i32) {
    %c0_i32 = arith.constant 0 : i32
    %c0_i32_0 = arith.constant 0 : i32
    %c0_i32_1 = arith.constant 0 : i32
    return %arg0, %c0_i32, %c0_i32_0 : i32, i32, i32
  }
  func.func @transform_6(%arg0: i32) -> (i32, i32, i32) {
    %c0_i32 = arith.constant 0 : i32
    %0 = arith.subi %c0_i32, %arg0 : i32
    %c0_i32_0 = arith.constant 0 : i32
    %c0_i32_1 = arith.constant 0 : i32
    %c0_i32_2 = arith.constant 0 : i32
    return %0, %c0_i32_0, %c0_i32_1 : i32, i32, i32
  }
  func.func @transform_7(%arg0: i32) -> (i32, i32, i32) {
    %c0_i32 = arith.constant 0 : i32
    %c0_i32_0 = arith.constant 0 : i32
    %c0_i32_1 = arith.constant 0 : i32
    %c0_i32_2 = arith.constant 0 : i32
    return %c0_i32, %c0_i32_0, %c0_i32_1 : i32, i32, i32
  }
  func.func @transform_8(%arg0: i32) -> (i32, i32, i32) {
    %c0_i32 = arith.constant 0 : i32
    %c0_i32_0 = arith.constant 0 : i32
    %c0_i32_1 = arith.constant 0 : i32
    %c0_i32_2 = arith.constant 0 : i32
    return %c0_i32, %c0_i32_0, %c0_i32_1 : i32, i32, i32
  }
}

module attributes {stable_mosaic.version = 11 : i64} {
  func.func @_bilstm_block_kernel(%arg0: i32, %arg1: memref<8x1xi32, #tpu.memory_space<vmem>>, %arg2: memref<8x8x128xf32, #tpu.memory_space<vmem>>, %arg3: memref<8x8x128xf32, #tpu.memory_space<vmem>>, %arg4: memref<32x128xbf16, #tpu.memory_space<vmem>>, %arg5: memref<32x128xbf16, #tpu.memory_space<vmem>>, %arg6: memref<8x8x32xf32, #tpu.memory_space<vmem>>, %arg7: memref<8x8x32xf32, #tpu.memory_space<vmem>>, %arg8: memref<2x8x32xf32, #tpu.memory_space<vmem>>, %arg9: memref<2x8x32xf32, #tpu.memory_space<vmem>>, %arg10: memref<8x32xf32, #tpu.memory_space<vmem>>, %arg11: memref<8x32xf32, #tpu.memory_space<vmem>>, %arg12: memref<8x32xf32, #tpu.memory_space<vmem>>, %arg13: memref<8x32xf32, #tpu.memory_space<vmem>>) attributes {dimension_semantics = [#tpu.dimension_semantics<arbitrary>], iteration_bounds = array<i64: 1>, scalar_prefetch = 0 : i64, scratch_operands = 4 : i64, tpu.core_type = #tpu.core_type<tc>, window_params = [{pipeline_mode = #tpu.pipeline_mode<synchronous>, transform_indices = @transform_0, window_bounds = array<i64: 8, 1>}, {transform_indices = @transform_1, window_bounds = array<i64: 8, 8, 128>}, {transform_indices = @transform_2, window_bounds = array<i64: 8, 8, 128>}, {pipeline_mode = #tpu.pipeline_mode<synchronous>, transform_indices = @transform_3, window_bounds = array<i64: 32, 128>}, {pipeline_mode = #tpu.pipeline_mode<synchronous>, transform_indices = @transform_4, window_bounds = array<i64: 32, 128>}, {transform_indices = @transform_5, window_bounds = array<i64: 8, 8, 32>}, {transform_indices = @transform_6, window_bounds = array<i64: 8, 8, 32>}, {pipeline_mode = #tpu.pipeline_mode<synchronous>, transform_indices = @transform_7, window_bounds = array<i64: 2, 8, 32>}, {pipeline_mode = #tpu.pipeline_mode<synchronous>, transform_indices = @transform_8, window_bounds = array<i64: 2, 8, 32>}]} {
    %c0_i32 = arith.constant 0 : i32
    %0 = arith.cmpi eq, %arg0, %c0_i32 : i32
    %1 = arith.extui %0 : i1 to i32
    %c0_i32_0 = arith.constant 0 : i32
    %2 = arith.cmpi ne, %1, %c0_i32_0 : i32
    scf.if %2 {
      %cst_232 = arith.constant 0.000000e+00 : f32
      %731 = vector.broadcast %cst_232 : f32 to vector<8x32xf32>
      %c0_233 = arith.constant 0 : index
      %c0_234 = arith.constant 0 : index
      %732 = vector.load %arg10[%c0_233, %c0_234] : memref<8x32xf32, #tpu.memory_space<vmem>>, vector<8x32xf32>
      tpu.vector_store %arg10[%c0_233, %c0_234], %731 {strides = array<i32>} : memref<8x32xf32, #tpu.memory_space<vmem>>, vector<8x32xf32>,
      %cst_235 = arith.constant 0.000000e+00 : f32
      %733 = vector.broadcast %cst_235 : f32 to vector<8x32xf32>
      %c0_236 = arith.constant 0 : index
      %c0_237 = arith.constant 0 : index
      %734 = vector.load %arg11[%c0_236, %c0_237] : memref<8x32xf32, #tpu.memory_space<vmem>>, vector<8x32xf32>
      tpu.vector_store %arg11[%c0_236, %c0_237], %733 {strides = array<i32>} : memref<8x32xf32, #tpu.memory_space<vmem>>, vector<8x32xf32>,
      %cst_238 = arith.constant 0.000000e+00 : f32
      %735 = vector.broadcast %cst_238 : f32 to vector<8x32xf32>
      %c0_239 = arith.constant 0 : index
      %c0_240 = arith.constant 0 : index
      %736 = vector.load %arg12[%c0_239, %c0_240] : memref<8x32xf32, #tpu.memory_space<vmem>>, vector<8x32xf32>
      tpu.vector_store %arg12[%c0_239, %c0_240], %735 {strides = array<i32>} : memref<8x32xf32, #tpu.memory_space<vmem>>, vector<8x32xf32>,
      %cst_241 = arith.constant 0.000000e+00 : f32
      %737 = vector.broadcast %cst_241 : f32 to vector<8x32xf32>
      %c0_242 = arith.constant 0 : index
      %c0_243 = arith.constant 0 : index
      %738 = vector.load %arg13[%c0_242, %c0_243] : memref<8x32xf32, #tpu.memory_space<vmem>>, vector<8x32xf32>
      tpu.vector_store %arg13[%c0_242, %c0_243], %737 {strides = array<i32>} : memref<8x32xf32, #tpu.memory_space<vmem>>, vector<8x32xf32>,
    } else {
    }
    %c0 = arith.constant 0 : index
    %c0_1 = arith.constant 0 : index
    %3 = vector.load %arg4[%c0, %c0_1] : memref<32x128xbf16, #tpu.memory_space<vmem>>, vector<32x128xbf16>
    %c0_2 = arith.constant 0 : index
    %c0_3 = arith.constant 0 : index
    %4 = vector.load %arg5[%c0_2, %c0_3] : memref<32x128xbf16, #tpu.memory_space<vmem>>, vector<32x128xbf16>
    %c0_4 = arith.constant 0 : index
    %c0_5 = arith.constant 0 : index
    %5 = vector.load %arg1[%c0_4, %c0_5] : memref<8x1xi32, #tpu.memory_space<vmem>>, vector<8x1xi32>
    %6 = vector.shape_cast %5 : vector<8x1xi32> to vector<8x1xi32>
    %7 = vector.broadcast %6 : vector<8x1xi32> to vector<8x32xi32>
    %c0_6 = arith.constant 0 : index
    %c0_7 = arith.constant 0 : index
    %8 = vector.load %arg10[%c0_6, %c0_7] : memref<8x32xf32, #tpu.memory_space<vmem>>, vector<8x32xf32>
    %c0_8 = arith.constant 0 : index
    %c0_9 = arith.constant 0 : index
    %9 = vector.load %arg11[%c0_8, %c0_9] : memref<8x32xf32, #tpu.memory_space<vmem>>, vector<8x32xf32>
    %c0_10 = arith.constant 0 : index
    %c0_11 = arith.constant 0 : index
    %10 = vector.load %arg12[%c0_10, %c0_11] : memref<8x32xf32, #tpu.memory_space<vmem>>, vector<8x32xf32>
    %c0_12 = arith.constant 0 : index
    %c0_13 = arith.constant 0 : index
    %11 = vector.load %arg13[%c0_12, %c0_13] : memref<8x32xf32, #tpu.memory_space<vmem>>, vector<8x32xf32>
    %c0_i32_14 = arith.constant 0 : i32
    %c8_i32 = arith.constant 8 : i32
    %12 = arith.muli %arg0, %c8_i32 : i32
    %13 = arith.addi %12, %c0_i32_14 : i32
    %c7_i32 = arith.constant 7 : i32
    %14 = arith.subi %c7_i32, %13 : i32
    %15 = arith.index_cast %c0_i32_14 : i32 to index
    %c0_15 = arith.constant 0 : index
    %c0_16 = arith.constant 0 : index
    %16 = vector.load %arg2[%15, %c0_15, %c0_16] : memref<8x8x128xf32, #tpu.memory_space<vmem>>, vector<1x8x128xf32>
    %17 = vector.shape_cast %16 : vector<1x8x128xf32> to vector<8x128xf32>
    %c7_i32_17 = arith.constant 7 : i32
    %18 = arith.subi %c7_i32_17, %c0_i32_14 : i32
    %19 = arith.index_cast %18 : i32 to index
    %c0_18 = arith.constant 0 : index
    %c0_19 = arith.constant 0 : index
    %20 = vector.load %arg3[%19, %c0_18, %c0_19] : memref<8x8x128xf32, #tpu.memory_space<vmem>>, vector<1x8x128xf32>
    %21 = vector.shape_cast %20 : vector<1x8x128xf32> to vector<8x128xf32>
    %22 = vector.broadcast %13 : i32 to vector<8x32xi32>
    %23 = arith.cmpi slt, %22, %7 : vector<8x32xi32>
    %24 = arith.truncf %8 : vector<8x32xf32> to vector<8x32xbf16>
    %cst = arith.constant dense<0.000000e+00> : vector<8x128xf32>
    %25 = tpu.matmul %24, %3, %cst {dimension_numbers = #tpu.dot_dimension_numbers<[1], [0], [0], [1], [0, 0, 1, 1], [], []>} : vector<8x32xbf16>, vector<32x128xbf16>, vector<8x128xf32> -> vector<8x128xf32>
    %26 = arith.addf %17, %25 : vector<8x128xf32>
    %27 = vector.extract_strided_slice %26 {offsets = [0, 0], sizes = [8, 32], strides = [1, 1]} : vector<8x128xf32> to vector<8x32xf32>
    %cst_20 = arith.constant 0.000000e+00 : f32
    %28 = vector.broadcast %cst_20 : f32 to vector<8x32xf32>
    %29 = arith.subf %28, %27 : vector<8x32xf32>
    %30 = math.exp %29 : vector<8x32xf32>
    %cst_21 = arith.constant 1.000000e+00 : f32
    %31 = vector.broadcast %cst_21 : f32 to vector<8x32xf32>
    %32 = arith.addf %31, %30 : vector<8x32xf32>
    %33 = tpu.reciprocal %32 {approx = true} : vector<8x32xf32> -> vector<8x32xf32>
    %34 = vector.extract_strided_slice %26 {offsets = [0, 32], sizes = [8, 32], strides = [1, 1]} : vector<8x128xf32> to vector<8x32xf32>
    %cst_22 = arith.constant 0.000000e+00 : f32
    %35 = vector.broadcast %cst_22 : f32 to vector<8x32xf32>
    %36 = arith.subf %35, %34 : vector<8x32xf32>
    %37 = math.exp %36 : vector<8x32xf32>
    %cst_23 = arith.constant 1.000000e+00 : f32
    %38 = vector.broadcast %cst_23 : f32 to vector<8x32xf32>
    %39 = arith.addf %38, %37 : vector<8x32xf32>
    %40 = tpu.reciprocal %39 {approx = true} : vector<8x32xf32> -> vector<8x32xf32>
    %41 = vector.extract_strided_slice %26 {offsets = [0, 64], sizes = [8, 32], strides = [1, 1]} : vector<8x128xf32> to vector<8x32xf32>
    %42 = math.tanh %41 : vector<8x32xf32>
    %43 = vector.extract_strided_slice %26 {offsets = [0, 96], sizes = [8, 32], strides = [1, 1]} : vector<8x128xf32> to vector<8x32xf32>
    %cst_24 = arith.constant 0.000000e+00 : f32
    %44 = vector.broadcast %cst_24 : f32 to vector<8x32xf32>
    %45 = arith.subf %44, %43 : vector<8x32xf32>
    %46 = math.exp %45 : vector<8x32xf32>
    %cst_25 = arith.constant 1.000000e+00 : f32
    %47 = vector.broadcast %cst_25 : f32 to vector<8x32xf32>
    %48 = arith.addf %47, %46 : vector<8x32xf32>
    %49 = tpu.reciprocal %48 {approx = true} : vector<8x32xf32> -> vector<8x32xf32>
    %50 = arith.mulf %40, %9 : vector<8x32xf32>
    %51 = arith.mulf %33, %42 : vector<8x32xf32>
    %52 = arith.addf %50, %51 : vector<8x32xf32>
    %53 = math.tanh %52 : vector<8x32xf32>
    %54 = arith.mulf %49, %53 : vector<8x32xf32>
    %55 = arith.select %23, %54, %8 : vector<8x32xi1>, vector<8x32xf32>
    %56 = arith.select %23, %52, %9 : vector<8x32xi1>, vector<8x32xf32>
    %57 = vector.broadcast %14 : i32 to vector<8x32xi32>
    %58 = arith.cmpi slt, %57, %7 : vector<8x32xi32>
    %59 = arith.truncf %10 : vector<8x32xf32> to vector<8x32xbf16>
    %cst_26 = arith.constant dense<0.000000e+00> : vector<8x128xf32>
    %60 = tpu.matmul %59, %4, %cst_26 {dimension_numbers = #tpu.dot_dimension_numbers<[1], [0], [0], [1], [0, 0, 1, 1], [], []>} : vector<8x32xbf16>, vector<32x128xbf16>, vector<8x128xf32> -> vector<8x128xf32>
    %61 = arith.addf %21, %60 : vector<8x128xf32>
    %62 = vector.extract_strided_slice %61 {offsets = [0, 0], sizes = [8, 32], strides = [1, 1]} : vector<8x128xf32> to vector<8x32xf32>
    %cst_27 = arith.constant 0.000000e+00 : f32
    %63 = vector.broadcast %cst_27 : f32 to vector<8x32xf32>
    %64 = arith.subf %63, %62 : vector<8x32xf32>
    %65 = math.exp %64 : vector<8x32xf32>
    %cst_28 = arith.constant 1.000000e+00 : f32
    %66 = vector.broadcast %cst_28 : f32 to vector<8x32xf32>
    %67 = arith.addf %66, %65 : vector<8x32xf32>
    %68 = tpu.reciprocal %67 {approx = true} : vector<8x32xf32> -> vector<8x32xf32>
    %69 = vector.extract_strided_slice %61 {offsets = [0, 32], sizes = [8, 32], strides = [1, 1]} : vector<8x128xf32> to vector<8x32xf32>
    %cst_29 = arith.constant 0.000000e+00 : f32
    %70 = vector.broadcast %cst_29 : f32 to vector<8x32xf32>
    %71 = arith.subf %70, %69 : vector<8x32xf32>
    %72 = math.exp %71 : vector<8x32xf32>
    %cst_30 = arith.constant 1.000000e+00 : f32
    %73 = vector.broadcast %cst_30 : f32 to vector<8x32xf32>
    %74 = arith.addf %73, %72 : vector<8x32xf32>
    %75 = tpu.reciprocal %74 {approx = true} : vector<8x32xf32> -> vector<8x32xf32>
    %76 = vector.extract_strided_slice %61 {offsets = [0, 64], sizes = [8, 32], strides = [1, 1]} : vector<8x128xf32> to vector<8x32xf32>
    %77 = math.tanh %76 : vector<8x32xf32>
    %78 = vector.extract_strided_slice %61 {offsets = [0, 96], sizes = [8, 32], strides = [1, 1]} : vector<8x128xf32> to vector<8x32xf32>
    %cst_31 = arith.constant 0.000000e+00 : f32
    %79 = vector.broadcast %cst_31 : f32 to vector<8x32xf32>
    %80 = arith.subf %79, %78 : vector<8x32xf32>
    %81 = math.exp %80 : vector<8x32xf32>
    %cst_32 = arith.constant 1.000000e+00 : f32
    %82 = vector.broadcast %cst_32 : f32 to vector<8x32xf32>
    %83 = arith.addf %82, %81 : vector<8x32xf32>
    %84 = tpu.reciprocal %83 {approx = true} : vector<8x32xf32> -> vector<8x32xf32>
    %85 = arith.mulf %75, %11 : vector<8x32xf32>
    %86 = arith.mulf %68, %77 : vector<8x32xf32>
    %87 = arith.addf %85, %86 : vector<8x32xf32>
    %88 = math.tanh %87 : vector<8x32xf32>
    %89 = arith.mulf %84, %88 : vector<8x32xf32>
    %90 = arith.select %58, %89, %10 : vector<8x32xi1>, vector<8x32xf32>
    %91 = arith.select %58, %87, %11 : vector<8x32xi1>, vector<8x32xf32>
    %92 = arith.index_cast %c0_i32_14 : i32 to index
    %c0_33 = arith.constant 0 : index
    %c0_34 = arith.constant 0 : index
    %93 = vector.load %arg6[%92, %c0_33, %c0_34] : memref<8x8x32xf32, #tpu.memory_space<vmem>>, vector<1x8x32xf32>
    %94 = vector.shape_cast %93 : vector<1x8x32xf32> to vector<8x32xf32>
    %95 = vector.shape_cast %55 : vector<8x32xf32> to vector<1x8x32xf32>
    tpu.vector_store %arg6[%92, %c0_33, %c0_34], %95 {strides = array<i32>} : memref<8x8x32xf32, #tpu.memory_space<vmem>>, vector<1x8x32xf32>,
    %c7_i32_35 = arith.constant 7 : i32
    %96 = arith.subi %c7_i32_35, %c0_i32_14 : i32
    %97 = arith.index_cast %96 : i32 to index
    %c0_36 = arith.constant 0 : index
    %c0_37 = arith.constant 0 : index
    %98 = vector.load %arg7[%97, %c0_36, %c0_37] : memref<8x8x32xf32, #tpu.memory_space<vmem>>, vector<1x8x32xf32>
    %99 = vector.shape_cast %98 : vector<1x8x32xf32> to vector<8x32xf32>
    %100 = vector.shape_cast %90 : vector<8x32xf32> to vector<1x8x32xf32>
    tpu.vector_store %arg7[%97, %c0_36, %c0_37], %100 {strides = array<i32>} : memref<8x8x32xf32, #tpu.memory_space<vmem>>, vector<1x8x32xf32>,
    %c1_i32 = arith.constant 1 : i32
    %c8_i32_38 = arith.constant 8 : i32
    %101 = arith.muli %arg0, %c8_i32_38 : i32
    %102 = arith.addi %101, %c1_i32 : i32
    %c7_i32_39 = arith.constant 7 : i32
    %103 = arith.subi %c7_i32_39, %102 : i32
    %104 = arith.index_cast %c1_i32 : i32 to index
    %c0_40 = arith.constant 0 : index
    %c0_41 = arith.constant 0 : index
    %105 = vector.load %arg2[%104, %c0_40, %c0_41] : memref<8x8x128xf32, #tpu.memory_space<vmem>>, vector<1x8x128xf32>
    %106 = vector.shape_cast %105 : vector<1x8x128xf32> to vector<8x128xf32>
    %c7_i32_42 = arith.constant 7 : i32
    %107 = arith.subi %c7_i32_42, %c1_i32 : i32
    %108 = arith.index_cast %107 : i32 to index
    %c0_43 = arith.constant 0 : index
    %c0_44 = arith.constant 0 : index
    %109 = vector.load %arg3[%108, %c0_43, %c0_44] : memref<8x8x128xf32, #tpu.memory_space<vmem>>, vector<1x8x128xf32>
    %110 = vector.shape_cast %109 : vector<1x8x128xf32> to vector<8x128xf32>
    %111 = vector.broadcast %102 : i32 to vector<8x32xi32>
    %112 = arith.cmpi slt, %111, %7 : vector<8x32xi32>
    %113 = arith.truncf %55 : vector<8x32xf32> to vector<8x32xbf16>
    %cst_45 = arith.constant dense<0.000000e+00> : vector<8x128xf32>
    %114 = tpu.matmul %113, %3, %cst_45 {dimension_numbers = #tpu.dot_dimension_numbers<[1], [0], [0], [1], [0, 0, 1, 1], [], []>} : vector<8x32xbf16>, vector<32x128xbf16>, vector<8x128xf32> -> vector<8x128xf32>
    %115 = arith.addf %106, %114 : vector<8x128xf32>
    %116 = vector.extract_strided_slice %115 {offsets = [0, 0], sizes = [8, 32], strides = [1, 1]} : vector<8x128xf32> to vector<8x32xf32>
    %cst_46 = arith.constant 0.000000e+00 : f32
    %117 = vector.broadcast %cst_46 : f32 to vector<8x32xf32>
    %118 = arith.subf %117, %116 : vector<8x32xf32>
    %119 = math.exp %118 : vector<8x32xf32>
    %cst_47 = arith.constant 1.000000e+00 : f32
    %120 = vector.broadcast %cst_47 : f32 to vector<8x32xf32>
    %121 = arith.addf %120, %119 : vector<8x32xf32>
    %122 = tpu.reciprocal %121 {approx = true} : vector<8x32xf32> -> vector<8x32xf32>
    %123 = vector.extract_strided_slice %115 {offsets = [0, 32], sizes = [8, 32], strides = [1, 1]} : vector<8x128xf32> to vector<8x32xf32>
    %cst_48 = arith.constant 0.000000e+00 : f32
    %124 = vector.broadcast %cst_48 : f32 to vector<8x32xf32>
    %125 = arith.subf %124, %123 : vector<8x32xf32>
    %126 = math.exp %125 : vector<8x32xf32>
    %cst_49 = arith.constant 1.000000e+00 : f32
    %127 = vector.broadcast %cst_49 : f32 to vector<8x32xf32>
    %128 = arith.addf %127, %126 : vector<8x32xf32>
    %129 = tpu.reciprocal %128 {approx = true} : vector<8x32xf32> -> vector<8x32xf32>
    %130 = vector.extract_strided_slice %115 {offsets = [0, 64], sizes = [8, 32], strides = [1, 1]} : vector<8x128xf32> to vector<8x32xf32>
    %131 = math.tanh %130 : vector<8x32xf32>
    %132 = vector.extract_strided_slice %115 {offsets = [0, 96], sizes = [8, 32], strides = [1, 1]} : vector<8x128xf32> to vector<8x32xf32>
    %cst_50 = arith.constant 0.000000e+00 : f32
    %133 = vector.broadcast %cst_50 : f32 to vector<8x32xf32>
    %134 = arith.subf %133, %132 : vector<8x32xf32>
    %135 = math.exp %134 : vector<8x32xf32>
    %cst_51 = arith.constant 1.000000e+00 : f32
    %136 = vector.broadcast %cst_51 : f32 to vector<8x32xf32>
    %137 = arith.addf %136, %135 : vector<8x32xf32>
    %138 = tpu.reciprocal %137 {approx = true} : vector<8x32xf32> -> vector<8x32xf32>
    %139 = arith.mulf %129, %56 : vector<8x32xf32>
    %140 = arith.mulf %122, %131 : vector<8x32xf32>
    %141 = arith.addf %139, %140 : vector<8x32xf32>
    %142 = math.tanh %141 : vector<8x32xf32>
    %143 = arith.mulf %138, %142 : vector<8x32xf32>
    %144 = arith.select %112, %143, %55 : vector<8x32xi1>, vector<8x32xf32>
    %145 = arith.select %112, %141, %56 : vector<8x32xi1>, vector<8x32xf32>
    %146 = vector.broadcast %103 : i32 to vector<8x32xi32>
    %147 = arith.cmpi slt, %146, %7 : vector<8x32xi32>
    %148 = arith.truncf %90 : vector<8x32xf32> to vector<8x32xbf16>
    %cst_52 = arith.constant dense<0.000000e+00> : vector<8x128xf32>
    %149 = tpu.matmul %148, %4, %cst_52 {dimension_numbers = #tpu.dot_dimension_numbers<[1], [0], [0], [1], [0, 0, 1, 1], [], []>} : vector<8x32xbf16>, vector<32x128xbf16>, vector<8x128xf32> -> vector<8x128xf32>
    %150 = arith.addf %110, %149 : vector<8x128xf32>
    %151 = vector.extract_strided_slice %150 {offsets = [0, 0], sizes = [8, 32], strides = [1, 1]} : vector<8x128xf32> to vector<8x32xf32>
    %cst_53 = arith.constant 0.000000e+00 : f32
    %152 = vector.broadcast %cst_53 : f32 to vector<8x32xf32>
    %153 = arith.subf %152, %151 : vector<8x32xf32>
    %154 = math.exp %153 : vector<8x32xf32>
    %cst_54 = arith.constant 1.000000e+00 : f32
    %155 = vector.broadcast %cst_54 : f32 to vector<8x32xf32>
    %156 = arith.addf %155, %154 : vector<8x32xf32>
    %157 = tpu.reciprocal %156 {approx = true} : vector<8x32xf32> -> vector<8x32xf32>
    %158 = vector.extract_strided_slice %150 {offsets = [0, 32], sizes = [8, 32], strides = [1, 1]} : vector<8x128xf32> to vector<8x32xf32>
    %cst_55 = arith.constant 0.000000e+00 : f32
    %159 = vector.broadcast %cst_55 : f32 to vector<8x32xf32>
    %160 = arith.subf %159, %158 : vector<8x32xf32>
    %161 = math.exp %160 : vector<8x32xf32>
    %cst_56 = arith.constant 1.000000e+00 : f32
    %162 = vector.broadcast %cst_56 : f32 to vector<8x32xf32>
    %163 = arith.addf %162, %161 : vector<8x32xf32>
    %164 = tpu.reciprocal %163 {approx = true} : vector<8x32xf32> -> vector<8x32xf32>
    %165 = vector.extract_strided_slice %150 {offsets = [0, 64], sizes = [8, 32], strides = [1, 1]} : vector<8x128xf32> to vector<8x32xf32>
    %166 = math.tanh %165 : vector<8x32xf32>
    %167 = vector.extract_strided_slice %150 {offsets = [0, 96], sizes = [8, 32], strides = [1, 1]} : vector<8x128xf32> to vector<8x32xf32>
    %cst_57 = arith.constant 0.000000e+00 : f32
    %168 = vector.broadcast %cst_57 : f32 to vector<8x32xf32>
    %169 = arith.subf %168, %167 : vector<8x32xf32>
    %170 = math.exp %169 : vector<8x32xf32>
    %cst_58 = arith.constant 1.000000e+00 : f32
    %171 = vector.broadcast %cst_58 : f32 to vector<8x32xf32>
    %172 = arith.addf %171, %170 : vector<8x32xf32>
    %173 = tpu.reciprocal %172 {approx = true} : vector<8x32xf32> -> vector<8x32xf32>
    %174 = arith.mulf %164, %91 : vector<8x32xf32>
    %175 = arith.mulf %157, %166 : vector<8x32xf32>
    %176 = arith.addf %174, %175 : vector<8x32xf32>
    %177 = math.tanh %176 : vector<8x32xf32>
    %178 = arith.mulf %173, %177 : vector<8x32xf32>
    %179 = arith.select %147, %178, %90 : vector<8x32xi1>, vector<8x32xf32>
    %180 = arith.select %147, %176, %91 : vector<8x32xi1>, vector<8x32xf32>
    %181 = arith.index_cast %c1_i32 : i32 to index
    %c0_59 = arith.constant 0 : index
    %c0_60 = arith.constant 0 : index
    %182 = vector.load %arg6[%181, %c0_59, %c0_60] : memref<8x8x32xf32, #tpu.memory_space<vmem>>, vector<1x8x32xf32>
    %183 = vector.shape_cast %182 : vector<1x8x32xf32> to vector<8x32xf32>
    %184 = vector.shape_cast %144 : vector<8x32xf32> to vector<1x8x32xf32>
    tpu.vector_store %arg6[%181, %c0_59, %c0_60], %184 {strides = array<i32>} : memref<8x8x32xf32, #tpu.memory_space<vmem>>, vector<1x8x32xf32>,
    %c7_i32_61 = arith.constant 7 : i32
    %185 = arith.subi %c7_i32_61, %c1_i32 : i32
    %186 = arith.index_cast %185 : i32 to index
    %c0_62 = arith.constant 0 : index
    %c0_63 = arith.constant 0 : index
    %187 = vector.load %arg7[%186, %c0_62, %c0_63] : memref<8x8x32xf32, #tpu.memory_space<vmem>>, vector<1x8x32xf32>
    %188 = vector.shape_cast %187 : vector<1x8x32xf32> to vector<8x32xf32>
    %189 = vector.shape_cast %179 : vector<8x32xf32> to vector<1x8x32xf32>
    tpu.vector_store %arg7[%186, %c0_62, %c0_63], %189 {strides = array<i32>} : memref<8x8x32xf32, #tpu.memory_space<vmem>>, vector<1x8x32xf32>,
    %c2_i32 = arith.constant 2 : i32
    %c8_i32_64 = arith.constant 8 : i32
    %190 = arith.muli %arg0, %c8_i32_64 : i32
    %191 = arith.addi %190, %c2_i32 : i32
    %c7_i32_65 = arith.constant 7 : i32
    %192 = arith.subi %c7_i32_65, %191 : i32
    %193 = arith.index_cast %c2_i32 : i32 to index
    %c0_66 = arith.constant 0 : index
    %c0_67 = arith.constant 0 : index
    %194 = vector.load %arg2[%193, %c0_66, %c0_67] : memref<8x8x128xf32, #tpu.memory_space<vmem>>, vector<1x8x128xf32>
    %195 = vector.shape_cast %194 : vector<1x8x128xf32> to vector<8x128xf32>
    %c7_i32_68 = arith.constant 7 : i32
    %196 = arith.subi %c7_i32_68, %c2_i32 : i32
    %197 = arith.index_cast %196 : i32 to index
    %c0_69 = arith.constant 0 : index
    %c0_70 = arith.constant 0 : index
    %198 = vector.load %arg3[%197, %c0_69, %c0_70] : memref<8x8x128xf32, #tpu.memory_space<vmem>>, vector<1x8x128xf32>
    %199 = vector.shape_cast %198 : vector<1x8x128xf32> to vector<8x128xf32>
    %200 = vector.broadcast %191 : i32 to vector<8x32xi32>
    %201 = arith.cmpi slt, %200, %7 : vector<8x32xi32>
    %202 = arith.truncf %144 : vector<8x32xf32> to vector<8x32xbf16>
    %cst_71 = arith.constant dense<0.000000e+00> : vector<8x128xf32>
    %203 = tpu.matmul %202, %3, %cst_71 {dimension_numbers = #tpu.dot_dimension_numbers<[1], [0], [0], [1], [0, 0, 1, 1], [], []>} : vector<8x32xbf16>, vector<32x128xbf16>, vector<8x128xf32> -> vector<8x128xf32>
    %204 = arith.addf %195, %203 : vector<8x128xf32>
    %205 = vector.extract_strided_slice %204 {offsets = [0, 0], sizes = [8, 32], strides = [1, 1]} : vector<8x128xf32> to vector<8x32xf32>
    %cst_72 = arith.constant 0.000000e+00 : f32
    %206 = vector.broadcast %cst_72 : f32 to vector<8x32xf32>
    %207 = arith.subf %206, %205 : vector<8x32xf32>
    %208 = math.exp %207 : vector<8x32xf32>
    %cst_73 = arith.constant 1.000000e+00 : f32
    %209 = vector.broadcast %cst_73 : f32 to vector<8x32xf32>
    %210 = arith.addf %209, %208 : vector<8x32xf32>
    %211 = tpu.reciprocal %210 {approx = true} : vector<8x32xf32> -> vector<8x32xf32>
    %212 = vector.extract_strided_slice %204 {offsets = [0, 32], sizes = [8, 32], strides = [1, 1]} : vector<8x128xf32> to vector<8x32xf32>
    %cst_74 = arith.constant 0.000000e+00 : f32
    %213 = vector.broadcast %cst_74 : f32 to vector<8x32xf32>
    %214 = arith.subf %213, %212 : vector<8x32xf32>
    %215 = math.exp %214 : vector<8x32xf32>
    %cst_75 = arith.constant 1.000000e+00 : f32
    %216 = vector.broadcast %cst_75 : f32 to vector<8x32xf32>
    %217 = arith.addf %216, %215 : vector<8x32xf32>
    %218 = tpu.reciprocal %217 {approx = true} : vector<8x32xf32> -> vector<8x32xf32>
    %219 = vector.extract_strided_slice %204 {offsets = [0, 64], sizes = [8, 32], strides = [1, 1]} : vector<8x128xf32> to vector<8x32xf32>
    %220 = math.tanh %219 : vector<8x32xf32>
    %221 = vector.extract_strided_slice %204 {offsets = [0, 96], sizes = [8, 32], strides = [1, 1]} : vector<8x128xf32> to vector<8x32xf32>
    %cst_76 = arith.constant 0.000000e+00 : f32
    %222 = vector.broadcast %cst_76 : f32 to vector<8x32xf32>
    %223 = arith.subf %222, %221 : vector<8x32xf32>
    %224 = math.exp %223 : vector<8x32xf32>
    %cst_77 = arith.constant 1.000000e+00 : f32
    %225 = vector.broadcast %cst_77 : f32 to vector<8x32xf32>
    %226 = arith.addf %225, %224 : vector<8x32xf32>
    %227 = tpu.reciprocal %226 {approx = true} : vector<8x32xf32> -> vector<8x32xf32>
    %228 = arith.mulf %218, %145 : vector<8x32xf32>
    %229 = arith.mulf %211, %220 : vector<8x32xf32>
    %230 = arith.addf %228, %229 : vector<8x32xf32>
    %231 = math.tanh %230 : vector<8x32xf32>
    %232 = arith.mulf %227, %231 : vector<8x32xf32>
    %233 = arith.select %201, %232, %144 : vector<8x32xi1>, vector<8x32xf32>
    %234 = arith.select %201, %230, %145 : vector<8x32xi1>, vector<8x32xf32>
    %235 = vector.broadcast %192 : i32 to vector<8x32xi32>
    %236 = arith.cmpi slt, %235, %7 : vector<8x32xi32>
    %237 = arith.truncf %179 : vector<8x32xf32> to vector<8x32xbf16>
    %cst_78 = arith.constant dense<0.000000e+00> : vector<8x128xf32>
    %238 = tpu.matmul %237, %4, %cst_78 {dimension_numbers = #tpu.dot_dimension_numbers<[1], [0], [0], [1], [0, 0, 1, 1], [], []>} : vector<8x32xbf16>, vector<32x128xbf16>, vector<8x128xf32> -> vector<8x128xf32>
    %239 = arith.addf %199, %238 : vector<8x128xf32>
    %240 = vector.extract_strided_slice %239 {offsets = [0, 0], sizes = [8, 32], strides = [1, 1]} : vector<8x128xf32> to vector<8x32xf32>
    %cst_79 = arith.constant 0.000000e+00 : f32
    %241 = vector.broadcast %cst_79 : f32 to vector<8x32xf32>
    %242 = arith.subf %241, %240 : vector<8x32xf32>
    %243 = math.exp %242 : vector<8x32xf32>
    %cst_80 = arith.constant 1.000000e+00 : f32
    %244 = vector.broadcast %cst_80 : f32 to vector<8x32xf32>
    %245 = arith.addf %244, %243 : vector<8x32xf32>
    %246 = tpu.reciprocal %245 {approx = true} : vector<8x32xf32> -> vector<8x32xf32>
    %247 = vector.extract_strided_slice %239 {offsets = [0, 32], sizes = [8, 32], strides = [1, 1]} : vector<8x128xf32> to vector<8x32xf32>
    %cst_81 = arith.constant 0.000000e+00 : f32
    %248 = vector.broadcast %cst_81 : f32 to vector<8x32xf32>
    %249 = arith.subf %248, %247 : vector<8x32xf32>
    %250 = math.exp %249 : vector<8x32xf32>
    %cst_82 = arith.constant 1.000000e+00 : f32
    %251 = vector.broadcast %cst_82 : f32 to vector<8x32xf32>
    %252 = arith.addf %251, %250 : vector<8x32xf32>
    %253 = tpu.reciprocal %252 {approx = true} : vector<8x32xf32> -> vector<8x32xf32>
    %254 = vector.extract_strided_slice %239 {offsets = [0, 64], sizes = [8, 32], strides = [1, 1]} : vector<8x128xf32> to vector<8x32xf32>
    %255 = math.tanh %254 : vector<8x32xf32>
    %256 = vector.extract_strided_slice %239 {offsets = [0, 96], sizes = [8, 32], strides = [1, 1]} : vector<8x128xf32> to vector<8x32xf32>
    %cst_83 = arith.constant 0.000000e+00 : f32
    %257 = vector.broadcast %cst_83 : f32 to vector<8x32xf32>
    %258 = arith.subf %257, %256 : vector<8x32xf32>
    %259 = math.exp %258 : vector<8x32xf32>
    %cst_84 = arith.constant 1.000000e+00 : f32
    %260 = vector.broadcast %cst_84 : f32 to vector<8x32xf32>
    %261 = arith.addf %260, %259 : vector<8x32xf32>
    %262 = tpu.reciprocal %261 {approx = true} : vector<8x32xf32> -> vector<8x32xf32>
    %263 = arith.mulf %253, %180 : vector<8x32xf32>
    %264 = arith.mulf %246, %255 : vector<8x32xf32>
    %265 = arith.addf %263, %264 : vector<8x32xf32>
    %266 = math.tanh %265 : vector<8x32xf32>
    %267 = arith.mulf %262, %266 : vector<8x32xf32>
    %268 = arith.select %236, %267, %179 : vector<8x32xi1>, vector<8x32xf32>
    %269 = arith.select %236, %265, %180 : vector<8x32xi1>, vector<8x32xf32>
    %270 = arith.index_cast %c2_i32 : i32 to index
    %c0_85 = arith.constant 0 : index
    %c0_86 = arith.constant 0 : index
    %271 = vector.load %arg6[%270, %c0_85, %c0_86] : memref<8x8x32xf32, #tpu.memory_space<vmem>>, vector<1x8x32xf32>
    %272 = vector.shape_cast %271 : vector<1x8x32xf32> to vector<8x32xf32>
    %273 = vector.shape_cast %233 : vector<8x32xf32> to vector<1x8x32xf32>
    tpu.vector_store %arg6[%270, %c0_85, %c0_86], %273 {strides = array<i32>} : memref<8x8x32xf32, #tpu.memory_space<vmem>>, vector<1x8x32xf32>,
    %c7_i32_87 = arith.constant 7 : i32
    %274 = arith.subi %c7_i32_87, %c2_i32 : i32
    %275 = arith.index_cast %274 : i32 to index
    %c0_88 = arith.constant 0 : index
    %c0_89 = arith.constant 0 : index
    %276 = vector.load %arg7[%275, %c0_88, %c0_89] : memref<8x8x32xf32, #tpu.memory_space<vmem>>, vector<1x8x32xf32>
    %277 = vector.shape_cast %276 : vector<1x8x32xf32> to vector<8x32xf32>
    %278 = vector.shape_cast %268 : vector<8x32xf32> to vector<1x8x32xf32>
    tpu.vector_store %arg7[%275, %c0_88, %c0_89], %278 {strides = array<i32>} : memref<8x8x32xf32, #tpu.memory_space<vmem>>, vector<1x8x32xf32>,
    %c3_i32 = arith.constant 3 : i32
    %c8_i32_90 = arith.constant 8 : i32
    %279 = arith.muli %arg0, %c8_i32_90 : i32
    %280 = arith.addi %279, %c3_i32 : i32
    %c7_i32_91 = arith.constant 7 : i32
    %281 = arith.subi %c7_i32_91, %280 : i32
    %282 = arith.index_cast %c3_i32 : i32 to index
    %c0_92 = arith.constant 0 : index
    %c0_93 = arith.constant 0 : index
    %283 = vector.load %arg2[%282, %c0_92, %c0_93] : memref<8x8x128xf32, #tpu.memory_space<vmem>>, vector<1x8x128xf32>
    %284 = vector.shape_cast %283 : vector<1x8x128xf32> to vector<8x128xf32>
    %c7_i32_94 = arith.constant 7 : i32
    %285 = arith.subi %c7_i32_94, %c3_i32 : i32
    %286 = arith.index_cast %285 : i32 to index
    %c0_95 = arith.constant 0 : index
    %c0_96 = arith.constant 0 : index
    %287 = vector.load %arg3[%286, %c0_95, %c0_96] : memref<8x8x128xf32, #tpu.memory_space<vmem>>, vector<1x8x128xf32>
    %288 = vector.shape_cast %287 : vector<1x8x128xf32> to vector<8x128xf32>
    %289 = vector.broadcast %280 : i32 to vector<8x32xi32>
    %290 = arith.cmpi slt, %289, %7 : vector<8x32xi32>
    %291 = arith.truncf %233 : vector<8x32xf32> to vector<8x32xbf16>
    %cst_97 = arith.constant dense<0.000000e+00> : vector<8x128xf32>
    %292 = tpu.matmul %291, %3, %cst_97 {dimension_numbers = #tpu.dot_dimension_numbers<[1], [0], [0], [1], [0, 0, 1, 1], [], []>} : vector<8x32xbf16>, vector<32x128xbf16>, vector<8x128xf32> -> vector<8x128xf32>
    %293 = arith.addf %284, %292 : vector<8x128xf32>
    %294 = vector.extract_strided_slice %293 {offsets = [0, 0], sizes = [8, 32], strides = [1, 1]} : vector<8x128xf32> to vector<8x32xf32>
    %cst_98 = arith.constant 0.000000e+00 : f32
    %295 = vector.broadcast %cst_98 : f32 to vector<8x32xf32>
    %296 = arith.subf %295, %294 : vector<8x32xf32>
    %297 = math.exp %296 : vector<8x32xf32>
    %cst_99 = arith.constant 1.000000e+00 : f32
    %298 = vector.broadcast %cst_99 : f32 to vector<8x32xf32>
    %299 = arith.addf %298, %297 : vector<8x32xf32>
    %300 = tpu.reciprocal %299 {approx = true} : vector<8x32xf32> -> vector<8x32xf32>
    %301 = vector.extract_strided_slice %293 {offsets = [0, 32], sizes = [8, 32], strides = [1, 1]} : vector<8x128xf32> to vector<8x32xf32>
    %cst_100 = arith.constant 0.000000e+00 : f32
    %302 = vector.broadcast %cst_100 : f32 to vector<8x32xf32>
    %303 = arith.subf %302, %301 : vector<8x32xf32>
    %304 = math.exp %303 : vector<8x32xf32>
    %cst_101 = arith.constant 1.000000e+00 : f32
    %305 = vector.broadcast %cst_101 : f32 to vector<8x32xf32>
    %306 = arith.addf %305, %304 : vector<8x32xf32>
    %307 = tpu.reciprocal %306 {approx = true} : vector<8x32xf32> -> vector<8x32xf32>
    %308 = vector.extract_strided_slice %293 {offsets = [0, 64], sizes = [8, 32], strides = [1, 1]} : vector<8x128xf32> to vector<8x32xf32>
    %309 = math.tanh %308 : vector<8x32xf32>
    %310 = vector.extract_strided_slice %293 {offsets = [0, 96], sizes = [8, 32], strides = [1, 1]} : vector<8x128xf32> to vector<8x32xf32>
    %cst_102 = arith.constant 0.000000e+00 : f32
    %311 = vector.broadcast %cst_102 : f32 to vector<8x32xf32>
    %312 = arith.subf %311, %310 : vector<8x32xf32>
    %313 = math.exp %312 : vector<8x32xf32>
    %cst_103 = arith.constant 1.000000e+00 : f32
    %314 = vector.broadcast %cst_103 : f32 to vector<8x32xf32>
    %315 = arith.addf %314, %313 : vector<8x32xf32>
    %316 = tpu.reciprocal %315 {approx = true} : vector<8x32xf32> -> vector<8x32xf32>
    %317 = arith.mulf %307, %234 : vector<8x32xf32>
    %318 = arith.mulf %300, %309 : vector<8x32xf32>
    %319 = arith.addf %317, %318 : vector<8x32xf32>
    %320 = math.tanh %319 : vector<8x32xf32>
    %321 = arith.mulf %316, %320 : vector<8x32xf32>
    %322 = arith.select %290, %321, %233 : vector<8x32xi1>, vector<8x32xf32>
    %323 = arith.select %290, %319, %234 : vector<8x32xi1>, vector<8x32xf32>
    %324 = vector.broadcast %281 : i32 to vector<8x32xi32>
    %325 = arith.cmpi slt, %324, %7 : vector<8x32xi32>
    %326 = arith.truncf %268 : vector<8x32xf32> to vector<8x32xbf16>
    %cst_104 = arith.constant dense<0.000000e+00> : vector<8x128xf32>
    %327 = tpu.matmul %326, %4, %cst_104 {dimension_numbers = #tpu.dot_dimension_numbers<[1], [0], [0], [1], [0, 0, 1, 1], [], []>} : vector<8x32xbf16>, vector<32x128xbf16>, vector<8x128xf32> -> vector<8x128xf32>
    %328 = arith.addf %288, %327 : vector<8x128xf32>
    %329 = vector.extract_strided_slice %328 {offsets = [0, 0], sizes = [8, 32], strides = [1, 1]} : vector<8x128xf32> to vector<8x32xf32>
    %cst_105 = arith.constant 0.000000e+00 : f32
    %330 = vector.broadcast %cst_105 : f32 to vector<8x32xf32>
    %331 = arith.subf %330, %329 : vector<8x32xf32>
    %332 = math.exp %331 : vector<8x32xf32>
    %cst_106 = arith.constant 1.000000e+00 : f32
    %333 = vector.broadcast %cst_106 : f32 to vector<8x32xf32>
    %334 = arith.addf %333, %332 : vector<8x32xf32>
    %335 = tpu.reciprocal %334 {approx = true} : vector<8x32xf32> -> vector<8x32xf32>
    %336 = vector.extract_strided_slice %328 {offsets = [0, 32], sizes = [8, 32], strides = [1, 1]} : vector<8x128xf32> to vector<8x32xf32>
    %cst_107 = arith.constant 0.000000e+00 : f32
    %337 = vector.broadcast %cst_107 : f32 to vector<8x32xf32>
    %338 = arith.subf %337, %336 : vector<8x32xf32>
    %339 = math.exp %338 : vector<8x32xf32>
    %cst_108 = arith.constant 1.000000e+00 : f32
    %340 = vector.broadcast %cst_108 : f32 to vector<8x32xf32>
    %341 = arith.addf %340, %339 : vector<8x32xf32>
    %342 = tpu.reciprocal %341 {approx = true} : vector<8x32xf32> -> vector<8x32xf32>
    %343 = vector.extract_strided_slice %328 {offsets = [0, 64], sizes = [8, 32], strides = [1, 1]} : vector<8x128xf32> to vector<8x32xf32>
    %344 = math.tanh %343 : vector<8x32xf32>
    %345 = vector.extract_strided_slice %328 {offsets = [0, 96], sizes = [8, 32], strides = [1, 1]} : vector<8x128xf32> to vector<8x32xf32>
    %cst_109 = arith.constant 0.000000e+00 : f32
    %346 = vector.broadcast %cst_109 : f32 to vector<8x32xf32>
    %347 = arith.subf %346, %345 : vector<8x32xf32>
    %348 = math.exp %347 : vector<8x32xf32>
    %cst_110 = arith.constant 1.000000e+00 : f32
    %349 = vector.broadcast %cst_110 : f32 to vector<8x32xf32>
    %350 = arith.addf %349, %348 : vector<8x32xf32>
    %351 = tpu.reciprocal %350 {approx = true} : vector<8x32xf32> -> vector<8x32xf32>
    %352 = arith.mulf %342, %269 : vector<8x32xf32>
    %353 = arith.mulf %335, %344 : vector<8x32xf32>
    %354 = arith.addf %352, %353 : vector<8x32xf32>
    %355 = math.tanh %354 : vector<8x32xf32>
    %356 = arith.mulf %351, %355 : vector<8x32xf32>
    %357 = arith.select %325, %356, %268 : vector<8x32xi1>, vector<8x32xf32>
    %358 = arith.select %325, %354, %269 : vector<8x32xi1>, vector<8x32xf32>
    %359 = arith.index_cast %c3_i32 : i32 to index
    %c0_111 = arith.constant 0 : index
    %c0_112 = arith.constant 0 : index
    %360 = vector.load %arg6[%359, %c0_111, %c0_112] : memref<8x8x32xf32, #tpu.memory_space<vmem>>, vector<1x8x32xf32>
    %361 = vector.shape_cast %360 : vector<1x8x32xf32> to vector<8x32xf32>
    %362 = vector.shape_cast %322 : vector<8x32xf32> to vector<1x8x32xf32>
    tpu.vector_store %arg6[%359, %c0_111, %c0_112], %362 {strides = array<i32>} : memref<8x8x32xf32, #tpu.memory_space<vmem>>, vector<1x8x32xf32>,
    %c7_i32_113 = arith.constant 7 : i32
    %363 = arith.subi %c7_i32_113, %c3_i32 : i32
    %364 = arith.index_cast %363 : i32 to index
    %c0_114 = arith.constant 0 : index
    %c0_115 = arith.constant 0 : index
    %365 = vector.load %arg7[%364, %c0_114, %c0_115] : memref<8x8x32xf32, #tpu.memory_space<vmem>>, vector<1x8x32xf32>
    %366 = vector.shape_cast %365 : vector<1x8x32xf32> to vector<8x32xf32>
    %367 = vector.shape_cast %357 : vector<8x32xf32> to vector<1x8x32xf32>
    tpu.vector_store %arg7[%364, %c0_114, %c0_115], %367 {strides = array<i32>} : memref<8x8x32xf32, #tpu.memory_space<vmem>>, vector<1x8x32xf32>,
    %c4_i32 = arith.constant 4 : i32
    %c8_i32_116 = arith.constant 8 : i32
    %368 = arith.muli %arg0, %c8_i32_116 : i32
    %369 = arith.addi %368, %c4_i32 : i32
    %c7_i32_117 = arith.constant 7 : i32
    %370 = arith.subi %c7_i32_117, %369 : i32
    %371 = arith.index_cast %c4_i32 : i32 to index
    %c0_118 = arith.constant 0 : index
    %c0_119 = arith.constant 0 : index
    %372 = vector.load %arg2[%371, %c0_118, %c0_119] : memref<8x8x128xf32, #tpu.memory_space<vmem>>, vector<1x8x128xf32>
    %373 = vector.shape_cast %372 : vector<1x8x128xf32> to vector<8x128xf32>
    %c7_i32_120 = arith.constant 7 : i32
    %374 = arith.subi %c7_i32_120, %c4_i32 : i32
    %375 = arith.index_cast %374 : i32 to index
    %c0_121 = arith.constant 0 : index
    %c0_122 = arith.constant 0 : index
    %376 = vector.load %arg3[%375, %c0_121, %c0_122] : memref<8x8x128xf32, #tpu.memory_space<vmem>>, vector<1x8x128xf32>
    %377 = vector.shape_cast %376 : vector<1x8x128xf32> to vector<8x128xf32>
    %378 = vector.broadcast %369 : i32 to vector<8x32xi32>
    %379 = arith.cmpi slt, %378, %7 : vector<8x32xi32>
    %380 = arith.truncf %322 : vector<8x32xf32> to vector<8x32xbf16>
    %cst_123 = arith.constant dense<0.000000e+00> : vector<8x128xf32>
    %381 = tpu.matmul %380, %3, %cst_123 {dimension_numbers = #tpu.dot_dimension_numbers<[1], [0], [0], [1], [0, 0, 1, 1], [], []>} : vector<8x32xbf16>, vector<32x128xbf16>, vector<8x128xf32> -> vector<8x128xf32>
    %382 = arith.addf %373, %381 : vector<8x128xf32>
    %383 = vector.extract_strided_slice %382 {offsets = [0, 0], sizes = [8, 32], strides = [1, 1]} : vector<8x128xf32> to vector<8x32xf32>
    %cst_124 = arith.constant 0.000000e+00 : f32
    %384 = vector.broadcast %cst_124 : f32 to vector<8x32xf32>
    %385 = arith.subf %384, %383 : vector<8x32xf32>
    %386 = math.exp %385 : vector<8x32xf32>
    %cst_125 = arith.constant 1.000000e+00 : f32
    %387 = vector.broadcast %cst_125 : f32 to vector<8x32xf32>
    %388 = arith.addf %387, %386 : vector<8x32xf32>
    %389 = tpu.reciprocal %388 {approx = true} : vector<8x32xf32> -> vector<8x32xf32>
    %390 = vector.extract_strided_slice %382 {offsets = [0, 32], sizes = [8, 32], strides = [1, 1]} : vector<8x128xf32> to vector<8x32xf32>
    %cst_126 = arith.constant 0.000000e+00 : f32
    %391 = vector.broadcast %cst_126 : f32 to vector<8x32xf32>
    %392 = arith.subf %391, %390 : vector<8x32xf32>
    %393 = math.exp %392 : vector<8x32xf32>
    %cst_127 = arith.constant 1.000000e+00 : f32
    %394 = vector.broadcast %cst_127 : f32 to vector<8x32xf32>
    %395 = arith.addf %394, %393 : vector<8x32xf32>
    %396 = tpu.reciprocal %395 {approx = true} : vector<8x32xf32> -> vector<8x32xf32>
    %397 = vector.extract_strided_slice %382 {offsets = [0, 64], sizes = [8, 32], strides = [1, 1]} : vector<8x128xf32> to vector<8x32xf32>
    %398 = math.tanh %397 : vector<8x32xf32>
    %399 = vector.extract_strided_slice %382 {offsets = [0, 96], sizes = [8, 32], strides = [1, 1]} : vector<8x128xf32> to vector<8x32xf32>
    %cst_128 = arith.constant 0.000000e+00 : f32
    %400 = vector.broadcast %cst_128 : f32 to vector<8x32xf32>
    %401 = arith.subf %400, %399 : vector<8x32xf32>
    %402 = math.exp %401 : vector<8x32xf32>
    %cst_129 = arith.constant 1.000000e+00 : f32
    %403 = vector.broadcast %cst_129 : f32 to vector<8x32xf32>
    %404 = arith.addf %403, %402 : vector<8x32xf32>
    %405 = tpu.reciprocal %404 {approx = true} : vector<8x32xf32> -> vector<8x32xf32>
    %406 = arith.mulf %396, %323 : vector<8x32xf32>
    %407 = arith.mulf %389, %398 : vector<8x32xf32>
    %408 = arith.addf %406, %407 : vector<8x32xf32>
    %409 = math.tanh %408 : vector<8x32xf32>
    %410 = arith.mulf %405, %409 : vector<8x32xf32>
    %411 = arith.select %379, %410, %322 : vector<8x32xi1>, vector<8x32xf32>
    %412 = arith.select %379, %408, %323 : vector<8x32xi1>, vector<8x32xf32>
    %413 = vector.broadcast %370 : i32 to vector<8x32xi32>
    %414 = arith.cmpi slt, %413, %7 : vector<8x32xi32>
    %415 = arith.truncf %357 : vector<8x32xf32> to vector<8x32xbf16>
    %cst_130 = arith.constant dense<0.000000e+00> : vector<8x128xf32>
    %416 = tpu.matmul %415, %4, %cst_130 {dimension_numbers = #tpu.dot_dimension_numbers<[1], [0], [0], [1], [0, 0, 1, 1], [], []>} : vector<8x32xbf16>, vector<32x128xbf16>, vector<8x128xf32> -> vector<8x128xf32>
    %417 = arith.addf %377, %416 : vector<8x128xf32>
    %418 = vector.extract_strided_slice %417 {offsets = [0, 0], sizes = [8, 32], strides = [1, 1]} : vector<8x128xf32> to vector<8x32xf32>
    %cst_131 = arith.constant 0.000000e+00 : f32
    %419 = vector.broadcast %cst_131 : f32 to vector<8x32xf32>
    %420 = arith.subf %419, %418 : vector<8x32xf32>
    %421 = math.exp %420 : vector<8x32xf32>
    %cst_132 = arith.constant 1.000000e+00 : f32
    %422 = vector.broadcast %cst_132 : f32 to vector<8x32xf32>
    %423 = arith.addf %422, %421 : vector<8x32xf32>
    %424 = tpu.reciprocal %423 {approx = true} : vector<8x32xf32> -> vector<8x32xf32>
    %425 = vector.extract_strided_slice %417 {offsets = [0, 32], sizes = [8, 32], strides = [1, 1]} : vector<8x128xf32> to vector<8x32xf32>
    %cst_133 = arith.constant 0.000000e+00 : f32
    %426 = vector.broadcast %cst_133 : f32 to vector<8x32xf32>
    %427 = arith.subf %426, %425 : vector<8x32xf32>
    %428 = math.exp %427 : vector<8x32xf32>
    %cst_134 = arith.constant 1.000000e+00 : f32
    %429 = vector.broadcast %cst_134 : f32 to vector<8x32xf32>
    %430 = arith.addf %429, %428 : vector<8x32xf32>
    %431 = tpu.reciprocal %430 {approx = true} : vector<8x32xf32> -> vector<8x32xf32>
    %432 = vector.extract_strided_slice %417 {offsets = [0, 64], sizes = [8, 32], strides = [1, 1]} : vector<8x128xf32> to vector<8x32xf32>
    %433 = math.tanh %432 : vector<8x32xf32>
    %434 = vector.extract_strided_slice %417 {offsets = [0, 96], sizes = [8, 32], strides = [1, 1]} : vector<8x128xf32> to vector<8x32xf32>
    %cst_135 = arith.constant 0.000000e+00 : f32
    %435 = vector.broadcast %cst_135 : f32 to vector<8x32xf32>
    %436 = arith.subf %435, %434 : vector<8x32xf32>
    %437 = math.exp %436 : vector<8x32xf32>
    %cst_136 = arith.constant 1.000000e+00 : f32
    %438 = vector.broadcast %cst_136 : f32 to vector<8x32xf32>
    %439 = arith.addf %438, %437 : vector<8x32xf32>
    %440 = tpu.reciprocal %439 {approx = true} : vector<8x32xf32> -> vector<8x32xf32>
    %441 = arith.mulf %431, %358 : vector<8x32xf32>
    %442 = arith.mulf %424, %433 : vector<8x32xf32>
    %443 = arith.addf %441, %442 : vector<8x32xf32>
    %444 = math.tanh %443 : vector<8x32xf32>
    %445 = arith.mulf %440, %444 : vector<8x32xf32>
    %446 = arith.select %414, %445, %357 : vector<8x32xi1>, vector<8x32xf32>
    %447 = arith.select %414, %443, %358 : vector<8x32xi1>, vector<8x32xf32>
    %448 = arith.index_cast %c4_i32 : i32 to index
    %c0_137 = arith.constant 0 : index
    %c0_138 = arith.constant 0 : index
    %449 = vector.load %arg6[%448, %c0_137, %c0_138] : memref<8x8x32xf32, #tpu.memory_space<vmem>>, vector<1x8x32xf32>
    %450 = vector.shape_cast %449 : vector<1x8x32xf32> to vector<8x32xf32>
    %451 = vector.shape_cast %411 : vector<8x32xf32> to vector<1x8x32xf32>
    tpu.vector_store %arg6[%448, %c0_137, %c0_138], %451 {strides = array<i32>} : memref<8x8x32xf32, #tpu.memory_space<vmem>>, vector<1x8x32xf32>,
    %c7_i32_139 = arith.constant 7 : i32
    %452 = arith.subi %c7_i32_139, %c4_i32 : i32
    %453 = arith.index_cast %452 : i32 to index
    %c0_140 = arith.constant 0 : index
    %c0_141 = arith.constant 0 : index
    %454 = vector.load %arg7[%453, %c0_140, %c0_141] : memref<8x8x32xf32, #tpu.memory_space<vmem>>, vector<1x8x32xf32>
    %455 = vector.shape_cast %454 : vector<1x8x32xf32> to vector<8x32xf32>
    %456 = vector.shape_cast %446 : vector<8x32xf32> to vector<1x8x32xf32>
    tpu.vector_store %arg7[%453, %c0_140, %c0_141], %456 {strides = array<i32>} : memref<8x8x32xf32, #tpu.memory_space<vmem>>, vector<1x8x32xf32>,
    %c5_i32 = arith.constant 5 : i32
    %c8_i32_142 = arith.constant 8 : i32
    %457 = arith.muli %arg0, %c8_i32_142 : i32
    %458 = arith.addi %457, %c5_i32 : i32
    %c7_i32_143 = arith.constant 7 : i32
    %459 = arith.subi %c7_i32_143, %458 : i32
    %460 = arith.index_cast %c5_i32 : i32 to index
    %c0_144 = arith.constant 0 : index
    %c0_145 = arith.constant 0 : index
    %461 = vector.load %arg2[%460, %c0_144, %c0_145] : memref<8x8x128xf32, #tpu.memory_space<vmem>>, vector<1x8x128xf32>
    %462 = vector.shape_cast %461 : vector<1x8x128xf32> to vector<8x128xf32>
    %c7_i32_146 = arith.constant 7 : i32
    %463 = arith.subi %c7_i32_146, %c5_i32 : i32
    %464 = arith.index_cast %463 : i32 to index
    %c0_147 = arith.constant 0 : index
    %c0_148 = arith.constant 0 : index
    %465 = vector.load %arg3[%464, %c0_147, %c0_148] : memref<8x8x128xf32, #tpu.memory_space<vmem>>, vector<1x8x128xf32>
    %466 = vector.shape_cast %465 : vector<1x8x128xf32> to vector<8x128xf32>
    %467 = vector.broadcast %458 : i32 to vector<8x32xi32>
    %468 = arith.cmpi slt, %467, %7 : vector<8x32xi32>
    %469 = arith.truncf %411 : vector<8x32xf32> to vector<8x32xbf16>
    %cst_149 = arith.constant dense<0.000000e+00> : vector<8x128xf32>
    %470 = tpu.matmul %469, %3, %cst_149 {dimension_numbers = #tpu.dot_dimension_numbers<[1], [0], [0], [1], [0, 0, 1, 1], [], []>} : vector<8x32xbf16>, vector<32x128xbf16>, vector<8x128xf32> -> vector<8x128xf32>
    %471 = arith.addf %462, %470 : vector<8x128xf32>
    %472 = vector.extract_strided_slice %471 {offsets = [0, 0], sizes = [8, 32], strides = [1, 1]} : vector<8x128xf32> to vector<8x32xf32>
    %cst_150 = arith.constant 0.000000e+00 : f32
    %473 = vector.broadcast %cst_150 : f32 to vector<8x32xf32>
    %474 = arith.subf %473, %472 : vector<8x32xf32>
    %475 = math.exp %474 : vector<8x32xf32>
    %cst_151 = arith.constant 1.000000e+00 : f32
    %476 = vector.broadcast %cst_151 : f32 to vector<8x32xf32>
    %477 = arith.addf %476, %475 : vector<8x32xf32>
    %478 = tpu.reciprocal %477 {approx = true} : vector<8x32xf32> -> vector<8x32xf32>
    %479 = vector.extract_strided_slice %471 {offsets = [0, 32], sizes = [8, 32], strides = [1, 1]} : vector<8x128xf32> to vector<8x32xf32>
    %cst_152 = arith.constant 0.000000e+00 : f32
    %480 = vector.broadcast %cst_152 : f32 to vector<8x32xf32>
    %481 = arith.subf %480, %479 : vector<8x32xf32>
    %482 = math.exp %481 : vector<8x32xf32>
    %cst_153 = arith.constant 1.000000e+00 : f32
    %483 = vector.broadcast %cst_153 : f32 to vector<8x32xf32>
    %484 = arith.addf %483, %482 : vector<8x32xf32>
    %485 = tpu.reciprocal %484 {approx = true} : vector<8x32xf32> -> vector<8x32xf32>
    %486 = vector.extract_strided_slice %471 {offsets = [0, 64], sizes = [8, 32], strides = [1, 1]} : vector<8x128xf32> to vector<8x32xf32>
    %487 = math.tanh %486 : vector<8x32xf32>
    %488 = vector.extract_strided_slice %471 {offsets = [0, 96], sizes = [8, 32], strides = [1, 1]} : vector<8x128xf32> to vector<8x32xf32>
    %cst_154 = arith.constant 0.000000e+00 : f32
    %489 = vector.broadcast %cst_154 : f32 to vector<8x32xf32>
    %490 = arith.subf %489, %488 : vector<8x32xf32>
    %491 = math.exp %490 : vector<8x32xf32>
    %cst_155 = arith.constant 1.000000e+00 : f32
    %492 = vector.broadcast %cst_155 : f32 to vector<8x32xf32>
    %493 = arith.addf %492, %491 : vector<8x32xf32>
    %494 = tpu.reciprocal %493 {approx = true} : vector<8x32xf32> -> vector<8x32xf32>
    %495 = arith.mulf %485, %412 : vector<8x32xf32>
    %496 = arith.mulf %478, %487 : vector<8x32xf32>
    %497 = arith.addf %495, %496 : vector<8x32xf32>
    %498 = math.tanh %497 : vector<8x32xf32>
    %499 = arith.mulf %494, %498 : vector<8x32xf32>
    %500 = arith.select %468, %499, %411 : vector<8x32xi1>, vector<8x32xf32>
    %501 = arith.select %468, %497, %412 : vector<8x32xi1>, vector<8x32xf32>
    %502 = vector.broadcast %459 : i32 to vector<8x32xi32>
    %503 = arith.cmpi slt, %502, %7 : vector<8x32xi32>
    %504 = arith.truncf %446 : vector<8x32xf32> to vector<8x32xbf16>
    %cst_156 = arith.constant dense<0.000000e+00> : vector<8x128xf32>
    %505 = tpu.matmul %504, %4, %cst_156 {dimension_numbers = #tpu.dot_dimension_numbers<[1], [0], [0], [1], [0, 0, 1, 1], [], []>} : vector<8x32xbf16>, vector<32x128xbf16>, vector<8x128xf32> -> vector<8x128xf32>
    %506 = arith.addf %466, %505 : vector<8x128xf32>
    %507 = vector.extract_strided_slice %506 {offsets = [0, 0], sizes = [8, 32], strides = [1, 1]} : vector<8x128xf32> to vector<8x32xf32>
    %cst_157 = arith.constant 0.000000e+00 : f32
    %508 = vector.broadcast %cst_157 : f32 to vector<8x32xf32>
    %509 = arith.subf %508, %507 : vector<8x32xf32>
    %510 = math.exp %509 : vector<8x32xf32>
    %cst_158 = arith.constant 1.000000e+00 : f32
    %511 = vector.broadcast %cst_158 : f32 to vector<8x32xf32>
    %512 = arith.addf %511, %510 : vector<8x32xf32>
    %513 = tpu.reciprocal %512 {approx = true} : vector<8x32xf32> -> vector<8x32xf32>
    %514 = vector.extract_strided_slice %506 {offsets = [0, 32], sizes = [8, 32], strides = [1, 1]} : vector<8x128xf32> to vector<8x32xf32>
    %cst_159 = arith.constant 0.000000e+00 : f32
    %515 = vector.broadcast %cst_159 : f32 to vector<8x32xf32>
    %516 = arith.subf %515, %514 : vector<8x32xf32>
    %517 = math.exp %516 : vector<8x32xf32>
    %cst_160 = arith.constant 1.000000e+00 : f32
    %518 = vector.broadcast %cst_160 : f32 to vector<8x32xf32>
    %519 = arith.addf %518, %517 : vector<8x32xf32>
    %520 = tpu.reciprocal %519 {approx = true} : vector<8x32xf32> -> vector<8x32xf32>
    %521 = vector.extract_strided_slice %506 {offsets = [0, 64], sizes = [8, 32], strides = [1, 1]} : vector<8x128xf32> to vector<8x32xf32>
    %522 = math.tanh %521 : vector<8x32xf32>
    %523 = vector.extract_strided_slice %506 {offsets = [0, 96], sizes = [8, 32], strides = [1, 1]} : vector<8x128xf32> to vector<8x32xf32>
    %cst_161 = arith.constant 0.000000e+00 : f32
    %524 = vector.broadcast %cst_161 : f32 to vector<8x32xf32>
    %525 = arith.subf %524, %523 : vector<8x32xf32>
    %526 = math.exp %525 : vector<8x32xf32>
    %cst_162 = arith.constant 1.000000e+00 : f32
    %527 = vector.broadcast %cst_162 : f32 to vector<8x32xf32>
    %528 = arith.addf %527, %526 : vector<8x32xf32>
    %529 = tpu.reciprocal %528 {approx = true} : vector<8x32xf32> -> vector<8x32xf32>
    %530 = arith.mulf %520, %447 : vector<8x32xf32>
    %531 = arith.mulf %513, %522 : vector<8x32xf32>
    %532 = arith.addf %530, %531 : vector<8x32xf32>
    %533 = math.tanh %532 : vector<8x32xf32>
    %534 = arith.mulf %529, %533 : vector<8x32xf32>
    %535 = arith.select %503, %534, %446 : vector<8x32xi1>, vector<8x32xf32>
    %536 = arith.select %503, %532, %447 : vector<8x32xi1>, vector<8x32xf32>
    %537 = arith.index_cast %c5_i32 : i32 to index
    %c0_163 = arith.constant 0 : index
    %c0_164 = arith.constant 0 : index
    %538 = vector.load %arg6[%537, %c0_163, %c0_164] : memref<8x8x32xf32, #tpu.memory_space<vmem>>, vector<1x8x32xf32>
    %539 = vector.shape_cast %538 : vector<1x8x32xf32> to vector<8x32xf32>
    %540 = vector.shape_cast %500 : vector<8x32xf32> to vector<1x8x32xf32>
    tpu.vector_store %arg6[%537, %c0_163, %c0_164], %540 {strides = array<i32>} : memref<8x8x32xf32, #tpu.memory_space<vmem>>, vector<1x8x32xf32>,
    %c7_i32_165 = arith.constant 7 : i32
    %541 = arith.subi %c7_i32_165, %c5_i32 : i32
    %542 = arith.index_cast %541 : i32 to index
    %c0_166 = arith.constant 0 : index
    %c0_167 = arith.constant 0 : index
    %543 = vector.load %arg7[%542, %c0_166, %c0_167] : memref<8x8x32xf32, #tpu.memory_space<vmem>>, vector<1x8x32xf32>
    %544 = vector.shape_cast %543 : vector<1x8x32xf32> to vector<8x32xf32>
    %545 = vector.shape_cast %535 : vector<8x32xf32> to vector<1x8x32xf32>
    tpu.vector_store %arg7[%542, %c0_166, %c0_167], %545 {strides = array<i32>} : memref<8x8x32xf32, #tpu.memory_space<vmem>>, vector<1x8x32xf32>,
    %c6_i32 = arith.constant 6 : i32
    %c8_i32_168 = arith.constant 8 : i32
    %546 = arith.muli %arg0, %c8_i32_168 : i32
    %547 = arith.addi %546, %c6_i32 : i32
    %c7_i32_169 = arith.constant 7 : i32
    %548 = arith.subi %c7_i32_169, %547 : i32
    %549 = arith.index_cast %c6_i32 : i32 to index
    %c0_170 = arith.constant 0 : index
    %c0_171 = arith.constant 0 : index
    %550 = vector.load %arg2[%549, %c0_170, %c0_171] : memref<8x8x128xf32, #tpu.memory_space<vmem>>, vector<1x8x128xf32>
    %551 = vector.shape_cast %550 : vector<1x8x128xf32> to vector<8x128xf32>
    %c7_i32_172 = arith.constant 7 : i32
    %552 = arith.subi %c7_i32_172, %c6_i32 : i32
    %553 = arith.index_cast %552 : i32 to index
    %c0_173 = arith.constant 0 : index
    %c0_174 = arith.constant 0 : index
    %554 = vector.load %arg3[%553, %c0_173, %c0_174] : memref<8x8x128xf32, #tpu.memory_space<vmem>>, vector<1x8x128xf32>
    %555 = vector.shape_cast %554 : vector<1x8x128xf32> to vector<8x128xf32>
    %556 = vector.broadcast %547 : i32 to vector<8x32xi32>
    %557 = arith.cmpi slt, %556, %7 : vector<8x32xi32>
    %558 = arith.truncf %500 : vector<8x32xf32> to vector<8x32xbf16>
    %cst_175 = arith.constant dense<0.000000e+00> : vector<8x128xf32>
    %559 = tpu.matmul %558, %3, %cst_175 {dimension_numbers = #tpu.dot_dimension_numbers<[1], [0], [0], [1], [0, 0, 1, 1], [], []>} : vector<8x32xbf16>, vector<32x128xbf16>, vector<8x128xf32> -> vector<8x128xf32>
    %560 = arith.addf %551, %559 : vector<8x128xf32>
    %561 = vector.extract_strided_slice %560 {offsets = [0, 0], sizes = [8, 32], strides = [1, 1]} : vector<8x128xf32> to vector<8x32xf32>
    %cst_176 = arith.constant 0.000000e+00 : f32
    %562 = vector.broadcast %cst_176 : f32 to vector<8x32xf32>
    %563 = arith.subf %562, %561 : vector<8x32xf32>
    %564 = math.exp %563 : vector<8x32xf32>
    %cst_177 = arith.constant 1.000000e+00 : f32
    %565 = vector.broadcast %cst_177 : f32 to vector<8x32xf32>
    %566 = arith.addf %565, %564 : vector<8x32xf32>
    %567 = tpu.reciprocal %566 {approx = true} : vector<8x32xf32> -> vector<8x32xf32>
    %568 = vector.extract_strided_slice %560 {offsets = [0, 32], sizes = [8, 32], strides = [1, 1]} : vector<8x128xf32> to vector<8x32xf32>
    %cst_178 = arith.constant 0.000000e+00 : f32
    %569 = vector.broadcast %cst_178 : f32 to vector<8x32xf32>
    %570 = arith.subf %569, %568 : vector<8x32xf32>
    %571 = math.exp %570 : vector<8x32xf32>
    %cst_179 = arith.constant 1.000000e+00 : f32
    %572 = vector.broadcast %cst_179 : f32 to vector<8x32xf32>
    %573 = arith.addf %572, %571 : vector<8x32xf32>
    %574 = tpu.reciprocal %573 {approx = true} : vector<8x32xf32> -> vector<8x32xf32>
    %575 = vector.extract_strided_slice %560 {offsets = [0, 64], sizes = [8, 32], strides = [1, 1]} : vector<8x128xf32> to vector<8x32xf32>
    %576 = math.tanh %575 : vector<8x32xf32>
    %577 = vector.extract_strided_slice %560 {offsets = [0, 96], sizes = [8, 32], strides = [1, 1]} : vector<8x128xf32> to vector<8x32xf32>
    %cst_180 = arith.constant 0.000000e+00 : f32
    %578 = vector.broadcast %cst_180 : f32 to vector<8x32xf32>
    %579 = arith.subf %578, %577 : vector<8x32xf32>
    %580 = math.exp %579 : vector<8x32xf32>
    %cst_181 = arith.constant 1.000000e+00 : f32
    %581 = vector.broadcast %cst_181 : f32 to vector<8x32xf32>
    %582 = arith.addf %581, %580 : vector<8x32xf32>
    %583 = tpu.reciprocal %582 {approx = true} : vector<8x32xf32> -> vector<8x32xf32>
    %584 = arith.mulf %574, %501 : vector<8x32xf32>
    %585 = arith.mulf %567, %576 : vector<8x32xf32>
    %586 = arith.addf %584, %585 : vector<8x32xf32>
    %587 = math.tanh %586 : vector<8x32xf32>
    %588 = arith.mulf %583, %587 : vector<8x32xf32>
    %589 = arith.select %557, %588, %500 : vector<8x32xi1>, vector<8x32xf32>
    %590 = arith.select %557, %586, %501 : vector<8x32xi1>, vector<8x32xf32>
    %591 = vector.broadcast %548 : i32 to vector<8x32xi32>
    %592 = arith.cmpi slt, %591, %7 : vector<8x32xi32>
    %593 = arith.truncf %535 : vector<8x32xf32> to vector<8x32xbf16>
    %cst_182 = arith.constant dense<0.000000e+00> : vector<8x128xf32>
    %594 = tpu.matmul %593, %4, %cst_182 {dimension_numbers = #tpu.dot_dimension_numbers<[1], [0], [0], [1], [0, 0, 1, 1], [], []>} : vector<8x32xbf16>, vector<32x128xbf16>, vector<8x128xf32> -> vector<8x128xf32>
    %595 = arith.addf %555, %594 : vector<8x128xf32>
    %596 = vector.extract_strided_slice %595 {offsets = [0, 0], sizes = [8, 32], strides = [1, 1]} : vector<8x128xf32> to vector<8x32xf32>
    %cst_183 = arith.constant 0.000000e+00 : f32
    %597 = vector.broadcast %cst_183 : f32 to vector<8x32xf32>
    %598 = arith.subf %597, %596 : vector<8x32xf32>
    %599 = math.exp %598 : vector<8x32xf32>
    %cst_184 = arith.constant 1.000000e+00 : f32
    %600 = vector.broadcast %cst_184 : f32 to vector<8x32xf32>
    %601 = arith.addf %600, %599 : vector<8x32xf32>
    %602 = tpu.reciprocal %601 {approx = true} : vector<8x32xf32> -> vector<8x32xf32>
    %603 = vector.extract_strided_slice %595 {offsets = [0, 32], sizes = [8, 32], strides = [1, 1]} : vector<8x128xf32> to vector<8x32xf32>
    %cst_185 = arith.constant 0.000000e+00 : f32
    %604 = vector.broadcast %cst_185 : f32 to vector<8x32xf32>
    %605 = arith.subf %604, %603 : vector<8x32xf32>
    %606 = math.exp %605 : vector<8x32xf32>
    %cst_186 = arith.constant 1.000000e+00 : f32
    %607 = vector.broadcast %cst_186 : f32 to vector<8x32xf32>
    %608 = arith.addf %607, %606 : vector<8x32xf32>
    %609 = tpu.reciprocal %608 {approx = true} : vector<8x32xf32> -> vector<8x32xf32>
    %610 = vector.extract_strided_slice %595 {offsets = [0, 64], sizes = [8, 32], strides = [1, 1]} : vector<8x128xf32> to vector<8x32xf32>
    %611 = math.tanh %610 : vector<8x32xf32>
    %612 = vector.extract_strided_slice %595 {offsets = [0, 96], sizes = [8, 32], strides = [1, 1]} : vector<8x128xf32> to vector<8x32xf32>
    %cst_187 = arith.constant 0.000000e+00 : f32
    %613 = vector.broadcast %cst_187 : f32 to vector<8x32xf32>
    %614 = arith.subf %613, %612 : vector<8x32xf32>
    %615 = math.exp %614 : vector<8x32xf32>
    %cst_188 = arith.constant 1.000000e+00 : f32
    %616 = vector.broadcast %cst_188 : f32 to vector<8x32xf32>
    %617 = arith.addf %616, %615 : vector<8x32xf32>
    %618 = tpu.reciprocal %617 {approx = true} : vector<8x32xf32> -> vector<8x32xf32>
    %619 = arith.mulf %609, %536 : vector<8x32xf32>
    %620 = arith.mulf %602, %611 : vector<8x32xf32>
    %621 = arith.addf %619, %620 : vector<8x32xf32>
    %622 = math.tanh %621 : vector<8x32xf32>
    %623 = arith.mulf %618, %622 : vector<8x32xf32>
    %624 = arith.select %592, %623, %535 : vector<8x32xi1>, vector<8x32xf32>
    %625 = arith.select %592, %621, %536 : vector<8x32xi1>, vector<8x32xf32>
    %626 = arith.index_cast %c6_i32 : i32 to index
    %c0_189 = arith.constant 0 : index
    %c0_190 = arith.constant 0 : index
    %627 = vector.load %arg6[%626, %c0_189, %c0_190] : memref<8x8x32xf32, #tpu.memory_space<vmem>>, vector<1x8x32xf32>
    %628 = vector.shape_cast %627 : vector<1x8x32xf32> to vector<8x32xf32>
    %629 = vector.shape_cast %589 : vector<8x32xf32> to vector<1x8x32xf32>
    tpu.vector_store %arg6[%626, %c0_189, %c0_190], %629 {strides = array<i32>} : memref<8x8x32xf32, #tpu.memory_space<vmem>>, vector<1x8x32xf32>,
    %c7_i32_191 = arith.constant 7 : i32
    %630 = arith.subi %c7_i32_191, %c6_i32 : i32
    %631 = arith.index_cast %630 : i32 to index
    %c0_192 = arith.constant 0 : index
    %c0_193 = arith.constant 0 : index
    %632 = vector.load %arg7[%631, %c0_192, %c0_193] : memref<8x8x32xf32, #tpu.memory_space<vmem>>, vector<1x8x32xf32>
    %633 = vector.shape_cast %632 : vector<1x8x32xf32> to vector<8x32xf32>
    %634 = vector.shape_cast %624 : vector<8x32xf32> to vector<1x8x32xf32>
    tpu.vector_store %arg7[%631, %c0_192, %c0_193], %634 {strides = array<i32>} : memref<8x8x32xf32, #tpu.memory_space<vmem>>, vector<1x8x32xf32>,
    %c7_i32_194 = arith.constant 7 : i32
    %c8_i32_195 = arith.constant 8 : i32
    %635 = arith.muli %arg0, %c8_i32_195 : i32
    %636 = arith.addi %635, %c7_i32_194 : i32
    %c7_i32_196 = arith.constant 7 : i32
    %637 = arith.subi %c7_i32_196, %636 : i32
    %638 = arith.index_cast %c7_i32_194 : i32 to index
    %c0_197 = arith.constant 0 : index
    %c0_198 = arith.constant 0 : index
    %639 = vector.load %arg2[%638, %c0_197, %c0_198] : memref<8x8x128xf32, #tpu.memory_space<vmem>>, vector<1x8x128xf32>
    %640 = vector.shape_cast %639 : vector<1x8x128xf32> to vector<8x128xf32>
    %c7_i32_199 = arith.constant 7 : i32
    %641 = arith.subi %c7_i32_199, %c7_i32_194 : i32
    %642 = arith.index_cast %641 : i32 to index
    %c0_200 = arith.constant 0 : index
    %c0_201 = arith.constant 0 : index
    %643 = vector.load %arg3[%642, %c0_200, %c0_201] : memref<8x8x128xf32, #tpu.memory_space<vmem>>, vector<1x8x128xf32>
    %644 = vector.shape_cast %643 : vector<1x8x128xf32> to vector<8x128xf32>
    %645 = vector.broadcast %636 : i32 to vector<8x32xi32>
    %646 = arith.cmpi slt, %645, %7 : vector<8x32xi32>
    %647 = arith.truncf %589 : vector<8x32xf32> to vector<8x32xbf16>
    %cst_202 = arith.constant dense<0.000000e+00> : vector<8x128xf32>
    %648 = tpu.matmul %647, %3, %cst_202 {dimension_numbers = #tpu.dot_dimension_numbers<[1], [0], [0], [1], [0, 0, 1, 1], [], []>} : vector<8x32xbf16>, vector<32x128xbf16>, vector<8x128xf32> -> vector<8x128xf32>
    %649 = arith.addf %640, %648 : vector<8x128xf32>
    %650 = vector.extract_strided_slice %649 {offsets = [0, 0], sizes = [8, 32], strides = [1, 1]} : vector<8x128xf32> to vector<8x32xf32>
    %cst_203 = arith.constant 0.000000e+00 : f32
    %651 = vector.broadcast %cst_203 : f32 to vector<8x32xf32>
    %652 = arith.subf %651, %650 : vector<8x32xf32>
    %653 = math.exp %652 : vector<8x32xf32>
    %cst_204 = arith.constant 1.000000e+00 : f32
    %654 = vector.broadcast %cst_204 : f32 to vector<8x32xf32>
    %655 = arith.addf %654, %653 : vector<8x32xf32>
    %656 = tpu.reciprocal %655 {approx = true} : vector<8x32xf32> -> vector<8x32xf32>
    %657 = vector.extract_strided_slice %649 {offsets = [0, 32], sizes = [8, 32], strides = [1, 1]} : vector<8x128xf32> to vector<8x32xf32>
    %cst_205 = arith.constant 0.000000e+00 : f32
    %658 = vector.broadcast %cst_205 : f32 to vector<8x32xf32>
    %659 = arith.subf %658, %657 : vector<8x32xf32>
    %660 = math.exp %659 : vector<8x32xf32>
    %cst_206 = arith.constant 1.000000e+00 : f32
    %661 = vector.broadcast %cst_206 : f32 to vector<8x32xf32>
    %662 = arith.addf %661, %660 : vector<8x32xf32>
    %663 = tpu.reciprocal %662 {approx = true} : vector<8x32xf32> -> vector<8x32xf32>
    %664 = vector.extract_strided_slice %649 {offsets = [0, 64], sizes = [8, 32], strides = [1, 1]} : vector<8x128xf32> to vector<8x32xf32>
    %665 = math.tanh %664 : vector<8x32xf32>
    %666 = vector.extract_strided_slice %649 {offsets = [0, 96], sizes = [8, 32], strides = [1, 1]} : vector<8x128xf32> to vector<8x32xf32>
    %cst_207 = arith.constant 0.000000e+00 : f32
    %667 = vector.broadcast %cst_207 : f32 to vector<8x32xf32>
    %668 = arith.subf %667, %666 : vector<8x32xf32>
    %669 = math.exp %668 : vector<8x32xf32>
    %cst_208 = arith.constant 1.000000e+00 : f32
    %670 = vector.broadcast %cst_208 : f32 to vector<8x32xf32>
    %671 = arith.addf %670, %669 : vector<8x32xf32>
    %672 = tpu.reciprocal %671 {approx = true} : vector<8x32xf32> -> vector<8x32xf32>
    %673 = arith.mulf %663, %590 : vector<8x32xf32>
    %674 = arith.mulf %656, %665 : vector<8x32xf32>
    %675 = arith.addf %673, %674 : vector<8x32xf32>
    %676 = math.tanh %675 : vector<8x32xf32>
    %677 = arith.mulf %672, %676 : vector<8x32xf32>
    %678 = arith.select %646, %677, %589 : vector<8x32xi1>, vector<8x32xf32>
    %679 = arith.select %646, %675, %590 : vector<8x32xi1>, vector<8x32xf32>
    %680 = vector.broadcast %637 : i32 to vector<8x32xi32>
    %681 = arith.cmpi slt, %680, %7 : vector<8x32xi32>
    %682 = arith.truncf %624 : vector<8x32xf32> to vector<8x32xbf16>
    %cst_209 = arith.constant dense<0.000000e+00> : vector<8x128xf32>
    %683 = tpu.matmul %682, %4, %cst_209 {dimension_numbers = #tpu.dot_dimension_numbers<[1], [0], [0], [1], [0, 0, 1, 1], [], []>} : vector<8x32xbf16>, vector<32x128xbf16>, vector<8x128xf32> -> vector<8x128xf32>
    %684 = arith.addf %644, %683 : vector<8x128xf32>
    %685 = vector.extract_strided_slice %684 {offsets = [0, 0], sizes = [8, 32], strides = [1, 1]} : vector<8x128xf32> to vector<8x32xf32>
    %cst_210 = arith.constant 0.000000e+00 : f32
    %686 = vector.broadcast %cst_210 : f32 to vector<8x32xf32>
    %687 = arith.subf %686, %685 : vector<8x32xf32>
    %688 = math.exp %687 : vector<8x32xf32>
    %cst_211 = arith.constant 1.000000e+00 : f32
    %689 = vector.broadcast %cst_211 : f32 to vector<8x32xf32>
    %690 = arith.addf %689, %688 : vector<8x32xf32>
    %691 = tpu.reciprocal %690 {approx = true} : vector<8x32xf32> -> vector<8x32xf32>
    %692 = vector.extract_strided_slice %684 {offsets = [0, 32], sizes = [8, 32], strides = [1, 1]} : vector<8x128xf32> to vector<8x32xf32>
    %cst_212 = arith.constant 0.000000e+00 : f32
    %693 = vector.broadcast %cst_212 : f32 to vector<8x32xf32>
    %694 = arith.subf %693, %692 : vector<8x32xf32>
    %695 = math.exp %694 : vector<8x32xf32>
    %cst_213 = arith.constant 1.000000e+00 : f32
    %696 = vector.broadcast %cst_213 : f32 to vector<8x32xf32>
    %697 = arith.addf %696, %695 : vector<8x32xf32>
    %698 = tpu.reciprocal %697 {approx = true} : vector<8x32xf32> -> vector<8x32xf32>
    %699 = vector.extract_strided_slice %684 {offsets = [0, 64], sizes = [8, 32], strides = [1, 1]} : vector<8x128xf32> to vector<8x32xf32>
    %700 = math.tanh %699 : vector<8x32xf32>
    %701 = vector.extract_strided_slice %684 {offsets = [0, 96], sizes = [8, 32], strides = [1, 1]} : vector<8x128xf32> to vector<8x32xf32>
    %cst_214 = arith.constant 0.000000e+00 : f32
    %702 = vector.broadcast %cst_214 : f32 to vector<8x32xf32>
    %703 = arith.subf %702, %701 : vector<8x32xf32>
    %704 = math.exp %703 : vector<8x32xf32>
    %cst_215 = arith.constant 1.000000e+00 : f32
    %705 = vector.broadcast %cst_215 : f32 to vector<8x32xf32>
    %706 = arith.addf %705, %704 : vector<8x32xf32>
    %707 = tpu.reciprocal %706 {approx = true} : vector<8x32xf32> -> vector<8x32xf32>
    %708 = arith.mulf %698, %625 : vector<8x32xf32>
    %709 = arith.mulf %691, %700 : vector<8x32xf32>
    %710 = arith.addf %708, %709 : vector<8x32xf32>
    %711 = math.tanh %710 : vector<8x32xf32>
    %712 = arith.mulf %707, %711 : vector<8x32xf32>
    %713 = arith.select %681, %712, %624 : vector<8x32xi1>, vector<8x32xf32>
    %714 = arith.select %681, %710, %625 : vector<8x32xi1>, vector<8x32xf32>
    %715 = arith.index_cast %c7_i32_194 : i32 to index
    %c0_216 = arith.constant 0 : index
    %c0_217 = arith.constant 0 : index
    %716 = vector.load %arg6[%715, %c0_216, %c0_217] : memref<8x8x32xf32, #tpu.memory_space<vmem>>, vector<1x8x32xf32>
    %717 = vector.shape_cast %716 : vector<1x8x32xf32> to vector<8x32xf32>
    %718 = vector.shape_cast %678 : vector<8x32xf32> to vector<1x8x32xf32>
    tpu.vector_store %arg6[%715, %c0_216, %c0_217], %718 {strides = array<i32>} : memref<8x8x32xf32, #tpu.memory_space<vmem>>, vector<1x8x32xf32>,
    %c7_i32_218 = arith.constant 7 : i32
    %719 = arith.subi %c7_i32_218, %c7_i32_194 : i32
    %720 = arith.index_cast %719 : i32 to index
    %c0_219 = arith.constant 0 : index
    %c0_220 = arith.constant 0 : index
    %721 = vector.load %arg7[%720, %c0_219, %c0_220] : memref<8x8x32xf32, #tpu.memory_space<vmem>>, vector<1x8x32xf32>
    %722 = vector.shape_cast %721 : vector<1x8x32xf32> to vector<8x32xf32>
    %723 = vector.shape_cast %713 : vector<8x32xf32> to vector<1x8x32xf32>
    tpu.vector_store %arg7[%720, %c0_219, %c0_220], %723 {strides = array<i32>} : memref<8x8x32xf32, #tpu.memory_space<vmem>>, vector<1x8x32xf32>,
    %c8_i32_221 = arith.constant 8 : i32
    %c0_222 = arith.constant 0 : index
    %c0_223 = arith.constant 0 : index
    %724 = vector.load %arg10[%c0_222, %c0_223] : memref<8x32xf32, #tpu.memory_space<vmem>>, vector<8x32xf32>
    tpu.vector_store %arg10[%c0_222, %c0_223], %678 {strides = array<i32>} : memref<8x32xf32, #tpu.memory_space<vmem>>, vector<8x32xf32>,
    %c0_224 = arith.constant 0 : index
    %c0_225 = arith.constant 0 : index
    %725 = vector.load %arg11[%c0_224, %c0_225] : memref<8x32xf32, #tpu.memory_space<vmem>>, vector<8x32xf32>
    tpu.vector_store %arg11[%c0_224, %c0_225], %679 {strides = array<i32>} : memref<8x32xf32, #tpu.memory_space<vmem>>, vector<8x32xf32>,
    %c0_226 = arith.constant 0 : index
    %c0_227 = arith.constant 0 : index
    %726 = vector.load %arg12[%c0_226, %c0_227] : memref<8x32xf32, #tpu.memory_space<vmem>>, vector<8x32xf32>
    tpu.vector_store %arg12[%c0_226, %c0_227], %713 {strides = array<i32>} : memref<8x32xf32, #tpu.memory_space<vmem>>, vector<8x32xf32>,
    %c0_228 = arith.constant 0 : index
    %c0_229 = arith.constant 0 : index
    %727 = vector.load %arg13[%c0_228, %c0_229] : memref<8x32xf32, #tpu.memory_space<vmem>>, vector<8x32xf32>
    tpu.vector_store %arg13[%c0_228, %c0_229], %714 {strides = array<i32>} : memref<8x32xf32, #tpu.memory_space<vmem>>, vector<8x32xf32>,
    %c0_i32_230 = arith.constant 0 : i32
    %728 = arith.cmpi eq, %arg0, %c0_i32_230 : i32
    %729 = arith.extui %728 : i1 to i32
    %c0_i32_231 = arith.constant 0 : i32
    %730 = arith.cmpi ne, %729, %c0_i32_231 : i32
    scf.if %730 {
      %c0_232 = arith.constant 0 : index
      %c0_233 = arith.constant 0 : index
      %c0_234 = arith.constant 0 : index
      %731 = vector.load %arg8[%c0_232, %c0_233, %c0_234] : memref<2x8x32xf32, #tpu.memory_space<vmem>>, vector<1x8x32xf32>
      %732 = vector.shape_cast %731 : vector<1x8x32xf32> to vector<8x32xf32>
      %733 = vector.shape_cast %678 : vector<8x32xf32> to vector<1x8x32xf32>
      tpu.vector_store %arg8[%c0_232, %c0_233, %c0_234], %733 {strides = array<i32>} : memref<2x8x32xf32, #tpu.memory_space<vmem>>, vector<1x8x32xf32>,
      %c1 = arith.constant 1 : index
      %c0_235 = arith.constant 0 : index
      %c0_236 = arith.constant 0 : index
      %734 = vector.load %arg8[%c1, %c0_235, %c0_236] : memref<2x8x32xf32, #tpu.memory_space<vmem>>, vector<1x8x32xf32>
      %735 = vector.shape_cast %734 : vector<1x8x32xf32> to vector<8x32xf32>
      %736 = vector.shape_cast %713 : vector<8x32xf32> to vector<1x8x32xf32>
      tpu.vector_store %arg8[%c1, %c0_235, %c0_236], %736 {strides = array<i32>} : memref<2x8x32xf32, #tpu.memory_space<vmem>>, vector<1x8x32xf32>,
      %c0_237 = arith.constant 0 : index
      %c0_238 = arith.constant 0 : index
      %c0_239 = arith.constant 0 : index
      %737 = vector.load %arg9[%c0_237, %c0_238, %c0_239] : memref<2x8x32xf32, #tpu.memory_space<vmem>>, vector<1x8x32xf32>
      %738 = vector.shape_cast %737 : vector<1x8x32xf32> to vector<8x32xf32>
      %739 = vector.shape_cast %679 : vector<8x32xf32> to vector<1x8x32xf32>
      tpu.vector_store %arg9[%c0_237, %c0_238, %c0_239], %739 {strides = array<i32>} : memref<2x8x32xf32, #tpu.memory_space<vmem>>, vector<1x8x32xf32>,
      %c1_240 = arith.constant 1 : index
      %c0_241 = arith.constant 0 : index
      %c0_242 = arith.constant 0 : index
      %740 = vector.load %arg9[%c1_240, %c0_241, %c0_242] : memref<2x8x32xf32, #tpu.memory_space<vmem>>, vector<1x8x32xf32>
      %741 = vector.shape_cast %740 : vector<1x8x32xf32> to vector<8x32xf32>
      %742 = vector.shape_cast %714 : vector<8x32xf32> to vector<1x8x32xf32>
      tpu.vector_store %arg9[%c1_240, %c0_241, %c0_242], %742 {strides = array<i32>} : memref<2x8x32xf32, #tpu.memory_space<vmem>>, vector<1x8x32xf32>,
    } else {
    }
    return
  }
  func.func @transform_0(%arg0: i32) -> (i32, i32) {
    %c0_i32 = arith.constant 0 : i32
    %c0_i32_0 = arith.constant 0 : i32
    %c0_i32_1 = arith.constant 0 : i32
    return %c0_i32, %c0_i32_0 : i32, i32
  }
  func.func @transform_1(%arg0: i32) -> (i32, i32, i32) {
    %c0_i32 = arith.constant 0 : i32
    %c0_i32_0 = arith.constant 0 : i32
    %c0_i32_1 = arith.constant 0 : i32
    return %arg0, %c0_i32, %c0_i32_0 : i32, i32, i32
  }
  func.func @transform_2(%arg0: i32) -> (i32, i32, i32) {
    %c0_i32 = arith.constant 0 : i32
    %0 = arith.subi %c0_i32, %arg0 : i32
    %c0_i32_0 = arith.constant 0 : i32
    %c0_i32_1 = arith.constant 0 : i32
    %c0_i32_2 = arith.constant 0 : i32
    return %0, %c0_i32_0, %c0_i32_1 : i32, i32, i32
  }
  func.func @transform_3(%arg0: i32) -> (i32, i32) {
    %c0_i32 = arith.constant 0 : i32
    %c0_i32_0 = arith.constant 0 : i32
    %c0_i32_1 = arith.constant 0 : i32
    return %c0_i32, %c0_i32_0 : i32, i32
  }
  func.func @transform_4(%arg0: i32) -> (i32, i32) {
    %c0_i32 = arith.constant 0 : i32
    %c0_i32_0 = arith.constant 0 : i32
    %c0_i32_1 = arith.constant 0 : i32
    return %c0_i32, %c0_i32_0 : i32, i32
  }
  func.func @transform_5(%arg0: i32) -> (i32, i32, i32) {
    %c0_i32 = arith.constant 0 : i32
    %c0_i32_0 = arith.constant 0 : i32
    %c0_i32_1 = arith.constant 0 : i32
    return %arg0, %c0_i32, %c0_i32_0 : i32, i32, i32
  }
  func.func @transform_6(%arg0: i32) -> (i32, i32, i32) {
    %c0_i32 = arith.constant 0 : i32
    %0 = arith.subi %c0_i32, %arg0 : i32
    %c0_i32_0 = arith.constant 0 : i32
    %c0_i32_1 = arith.constant 0 : i32
    %c0_i32_2 = arith.constant 0 : i32
    return %0, %c0_i32_0, %c0_i32_1 : i32, i32, i32
  }
  func.func @transform_7(%arg0: i32) -> (i32, i32, i32) {
    %c0_i32 = arith.constant 0 : i32
    %c0_i32_0 = arith.constant 0 : i32
    %c0_i32_1 = arith.constant 0 : i32
    %c0_i32_2 = arith.constant 0 : i32
    return %c0_i32, %c0_i32_0, %c0_i32_1 : i32, i32, i32
  }
  func.func @transform_8(%arg0: i32) -> (i32, i32, i32) {
    %c0_i32 = arith.constant 0 : i32
    %c0_i32_0 = arith.constant 0 : i32
    %c0_i32_1 = arith.constant 0 : i32
    %c0_i32_2 = arith.constant 0 : i32
    return %c0_i32, %c0_i32_0, %c0_i32_1 : i32, i32, i32
  }
}

</mosaic_0001>

<bundles_post_ra>
// kernel: encoder_forward.2
= control target key start
LH: loop header
LB: loop body
LE: loop exit
PB: predicated region body
PF: predicated region fallthrough
CT: control target
= control target key end

     0   :  { %14 = vsyncpa [#allocation7], 0  ;;  %vm67_vm0 = vcmask 261120   ;;  %v1395_v2 = vmov 0.0   ;;  %s1988_s0 = inlined_call_operand.vmem [shape: s32[8,1], index: 0, kind: input, shape index: {}]   ;;  %s1989_s1 = inlined_call_operand.vmem [shape: f32[8,8,128], index: 1, kind: input, shape index: {}]   ;;  %s1990_s2 = inlined_call_operand.vmem [shape: f32[8,8,128], index: 2, kind: input, shape index: {}]   ;;  %s1991_s3 = inlined_call_operand.vmem [shape: bf16[32,128], index: 3, kind: input, shape index: {}]   ;;  %s1992_s4 = inlined_call_operand.vmem [shape: bf16[32,128], index: 4, kind: input, shape index: {}]   ;;  %s1993_s5 = inlined_call_operand.vmem [shape: f32[8,8,32], index: 5, kind: output, shape index: {0}]   ;;  %s1994_s6 = inlined_call_operand.vmem [shape: f32[8,8,32], index: 6, kind: output, shape index: {1}]   ;;  %s1995_s7 = inlined_call_operand.hbm [shape: f32[2,8,32], index: 7, kind: output, shape index: {2}]   ;;  %s1996_s8 = inlined_call_operand.hbm [shape: f32[2,8,32], index: 8, kind: output, shape index: {3}]  }
   0x1   :  { %v1452_v0 = vld [vmem:[%s1991_s3 + $0x8] sm:$0xff]  ;;  %68 = vst.msk [vmem:[#allocation2] sm:$0xff] %vm67_vm0, %v1395_v2 }
   0x2   :  { %v1457_v1 = vld [vmem:[%s1992_s4 + $0x8] sm:$0xff] }
   0x3   :  { %15 = vsyncpa [#allocation9], 0  ;;  %118 = vmatpush.bf16.msra.mxu0 %v1452_v0  ;;  %183 = vmatpush.bf16.msra.mxu1 %v1457_v1  ;;  %v1465_v3 = vld [vmem:[%s1991_s3] sm:$0xff]  ;;  %69 = vst.msk [vmem:[#allocation3] sm:$0xff] %vm67_vm0, %v1395_v2  ;;  %s1396_s3 = smov 32   ;;  %v1124_v14 = vld [vmem:[%s1990_s2 + $0x38] sm:$0xff] }
   0x4   :  { %v1470_v4 = vld [vmem:[%s1992_s4] sm:$0xff]  ;;  %70 = vst.msk [vmem:[#allocation4] sm:$0xff] %vm67_vm0, %v1395_v2  ;;  %256 = vmatpush.bf16.msra.mxu2 %v1452_v0  ;;  %304 = vmatpush.bf16.msra.mxu3 %v1457_v1  ;;  %s1397_s16 = smov 64   ;;  %v1398_v23 = vmov 0   ;;  %v1146_v60 = vld [vmem:[%s1989_s1 + $0x8] sm:$0xff]  ;;  %s1400_s11 = smov [#allocation8]  }
   0x5   :  { %71 = vst.msk [vmem:[#allocation5] sm:$0xff] %vm67_vm0, %v1395_v2  ;;  %v90_v11 = vld [vmem:[%s1989_s1] sm:$0xff]  ;;  %1213 = vset.pattern.permute.xlu2 %v1398_v23  ;;  %1214 = vset.pattern.permute.xlu0 %v1398_v23  ;;  %s1081_s12 = sshll.u32 %s1400_s11, 4  ;;  %s1083_s14 = sshll.u32 %s1996_s8, 4  ;;  %s1082_s12 = int_to_ptr.vmem [resolvable:$true] %s1081_s12  ;;  %s1084_s14 = int_to_ptr.hbm [resolvable:$true] %s1083_s14 }
   0x6   :  { %v80_v36 = vld [vmem:[%s1988_s0] sm:$0xff]  ;;  %s1399_s0 = smov 96   ;;  %s1401_s18 = smov 128  }
   0x7   :  { %119 = vmatpush.bf16.msra.mxu0 %v1465_v3  ;;  %184 = vmatpush.bf16.msra.mxu1 %v1470_v4  ;;  %s1402_s19 = smov 8   ;;  %s1403_s28 = smov [#allocation6]  }
   0x8   :  { %257 = vmatpush.bf16.msra.mxu2 %v1465_v3  ;;  %305 = vmatpush.bf16.msra.mxu3 %v1470_v4  ;;  %v1481_v5 = vld [vmem:[#allocation2] sm:$0xff]  ;;  %s1068_s29 = sshll.u32 %s1403_s28, 4  ;;  %s1070_s10 = sshll.u32 %s1995_s7, 4  ;;  %s1069_s29 = int_to_ptr.vmem [resolvable:$true] %s1068_s29  ;;  %s1071_s10 = int_to_ptr.hbm [resolvable:$true] %s1070_s10 }
   0x9   :  { %v95_v6 = vpack.c.bf16 %v1481_v5, %v1481_v5 }
   0xa   :  { %v85_v7 = vld [vmem:[#allocation3] sm:$0xff] }
   0xb   :  { %418 = vmatpush.bf16.msrb.mxu1 %v1457_v1  ;;  %370 = vmatpush.bf16.msrb.mxu0 %v1452_v0  ;;  %v1489_v8 = vld [vmem:[#allocation4] sm:$0xff] }
   0xc   :  { %532 = vmatpush.bf16.msrb.mxu3 %v1457_v1  ;;  %484 = vmatpush.bf16.msrb.mxu2 %v1452_v0  ;;  %v161_v9 = vpack.c.bf16 %v1489_v8, %v1489_v8  ;;  %v87_v10 = vld [vmem:[#allocation5] sm:$0xff] }
   0xd   :  { %133 = vrot.lane.b32.xlu1 %v85_v7, %s1396_s3  ;;  %1134 = vmatmul.msk.bf16.vlgmr.msra.gmra.mxu0 %vm67_vm0, %v95_v6 }
   0xe   :  { %1144 = vmatmul.msk.bf16.vlgmr.msra.gmra.mxu1 %vm67_vm0, %v161_v9 }
   0xf   :  { %371 = vmatpush.bf16.msrb.mxu0 %v1465_v3  ;;  %419 = vmatpush.bf16.msrb.mxu1 %v1470_v4 }
  0x10   :  { %485 = vmatpush.bf16.msrb.mxu2 %v1465_v3  ;;  %533 = vmatpush.bf16.msrb.mxu3 %v1470_v4 }
  0x13   :  { %598 = vmatpush.bf16.msra.mxu0 %v1452_v0  ;;  %646 = vmatpush.bf16.msra.mxu1 %v1457_v1 }
  0x15   :  { %198 = vrot.lane.b32.xlu1 %v87_v10, %s1396_s3 }
  0x17   :  { %599 = vmatpush.bf16.msra.mxu0 %v1465_v3  ;;  %647 = vmatpush.bf16.msra.mxu1 %v1470_v4 }
  0x7f   :  { %v1518_v37 = vpop.permute.xlu1 %133 }
  0x87   :  { %v1524_v41 = vpop.permute.xlu1 %198 }
  0x8a   :  { %v121_v12 = vpop.f32.mrf.mxu0 }
  0x8b   :  { %v125_v13 = vadd.f32 %v121_v12, %v90_v11  ;;  %v186_v15 = vpop.f32.mrf.mxu1 }
  0x8c   :  { %v190_v16 = vadd.f32 %v1124_v14, %v186_v15 }
  0x8d   :  { %1215 = vtanh.f32 %v125_v13  ;;  %v126_v21 = vsub.f32 0.0, %v125_v13 }
  0x8e   :  { %1217 = vtanh.f32 %v190_v16  ;;  %v191_v24 = vsub.f32 0.0, %v190_v16 }
  0x8f   :  { %v127_v22 = vmul.f32 1.442695, %v126_v21 }
  0x90   :  { %v192_v25 = vmul.f32 1.442695, %v191_v24 }
  0x91   :  { %1219 = vpow2.f32 %v127_v22 }
  0x92   :  { %v123_v17 = vpop.f32.mrf.mxu0  ;;  %1221 = vpow2.f32 %v192_v25 }
  0x93   :  { %v1216_v18 = vpop.eup %1215  ;;  %v188_v19 = vpop.f32.mrf.mxu1 }
  0x94   :  { %138 = vrot.lane.b32.xlu0 %v1216_v18, %s1397_s16  ;;  %v1218_v20 = vpop.eup %1217 }
  0x97   :  { %v1220_v26 = vpop.eup %1219 }
  0x98   :  { %v129_v27 = vadd.f32 1.0, %v1220_v26  ;;  %v1222_v28 = vpop.eup %1221 }
  0x99   :  { %v194_v29 = vadd.f32 1.0, %v1222_v28 }
  0x9a   :  { %1223 = vrcp.f32 %v129_v27 }
  0x9b   :  { %1225 = vrcp.f32 %v194_v29 }
  0x9c   :  { %203 = vrot.lane.b32.xlu0 %v1218_v20, %s1397_s16 }
  0xa0   :  { %v1224_v30 = vpop.eup %1223 }
  0xa1   :  { %v1226_v33 = vpop.eup %1225  ;;  %v136_v38 = vmul.f32 %v1224_v30, %v1518_v37 }
  0xa2   :  { %v201_v42 = vmul.f32 %v1226_v33, %v1524_v41 }
 0x106   :  { %v139_v31 = vpop.permute.xlu0 %138 }
 0x107   :  { %v141_v32 = vmul.f32 %v1224_v30, %v139_v31 }
 0x109   :  { %143 = vrot.lane.b32.xlu2 %v141_v32, %s1396_s3 }
 0x10e   :  { %v204_v34 = vpop.permute.xlu0 %203 }
 0x10f   :  { %v206_v35 = vmul.f32 %v1226_v33, %v204_v34 }
 0x111   :  { %208 = vrot.lane.b32.xlu2 %v206_v35, %s1396_s3 }
 0x119   :  { %82 = vperm.xlu2 %1213, %v80_v36  }
 0x163   :  { %v144_v39 = vpop.permute.xlu2 %143 }
 0x164   :  { %v1521_v40 = vadd.f32 %v144_v39, %v136_v38 }
 0x166   :  { %1227 = vtanh.f32 %v1521_v40 }
 0x16b   :  { %v209_v43 = vpop.permute.xlu2 %208 }
 0x16c   :  { %v1228_v44 = vpop.eup %1227  ;;  %v1527_v45 = vadd.f32 %v209_v43, %v201_v42 }
 0x16d   :  { %149 = vrot.lane.b32.xlu0 %v1228_v44, %s1397_s16  ;;  %v1154_v44 = vld [vmem:[%s1989_s1 + $0x10] sm:$0xff] }
 0x16e   :  { %1229 = vtanh.f32 %v1527_v45 }
 0x173   :  { %v1536_v48 = vpop.permute.xlu2 %82 }
 0x174   :  { %v1230_v46 = vpop.eup %1229  ;;  %vm1125_vm1 = vcmp.gt.s32.totalorder %v1536_v48, 0  ;;  %vm1135_vm2 = vcmp.gt.s32.totalorder %v1536_v48, 7  ;;  %vm1148_vm3 = vcmp.gt.s32.totalorder %v1536_v48, 1  ;;  %vm1150_vm4 = vcmp.gt.s32.totalorder %v1536_v48, 6 }
 0x175   :  { %214 = vrot.lane.b32.xlu1 %v1230_v46, %s1397_s16  ;;  %154 = vrot.lane.b32.xlu0 %v1481_v5, %s1399_s0  ;;  %v1147_v5 = vld [vmem:[%s1990_s2 + $0x30] sm:$0xff]  ;;  %v1574_v24 = vsel %vm1125_vm1, %v1521_v40, %v1518_v37  ;;  %v1584_v28 = vsel %vm1135_vm2, %v1527_v45, %v1524_v41  ;;  %vm1156_vm5 = vcmp.gt.s32.totalorder %v1536_v48, 2  ;;  %vm1158_vm6 = vcmp.gt.s32.totalorder %v1536_v48, 5 }
 0x176   :  { %vm1164_vm7 = vcmp.gt.s32.totalorder %v1536_v48, 3  ;;  %vm1166_vm8 = vcmp.gt.s32.totalorder %v1536_v48, 4 }
 0x17d   :  { %219 = vrot.lane.b32.xlu1 %v1489_v8, %s1399_s0 }
 0x1df   :  { %v150_v47 = vpop.permute.xlu0 %149 }
 0x1e0   :  { %v152_v49 = vmul.f32 %v1224_v30, %v150_v47  ;;  %v1155_v47 = vld [vmem:[%s1990_s2 + $0x28] sm:$0xff] }
 0x1e7   :  { %v215_v50 = vpop.permute.xlu1 %214  ;;  %v155_v51 = vpop.permute.xlu0 %154 }
 0x1e8   :  { %v1541_v52 = vsel %vm1125_vm1, %v152_v49, %v155_v51  ;;  %v217_v54 = vmul.f32 %v1226_v33, %v215_v50 }
 0x1e9   :  { %v243_v53 = vpack.c.bf16 %v1541_v52, %v1541_v52 }
 0x1eb   :  { %245 = vrot.lane.b32.xlu2 %v243_v53, %s1396_s3 }
 0x1ef   :  { %v220_v55 = vpop.permute.xlu1 %219 }
 0x1f0   :  { %v1549_v56 = vsel %vm1135_vm2, %v217_v54, %v220_v55 }
 0x1f1   :  { %v291_v57 = vpack.c.bf16 %v1549_v56, %v1549_v56 }
 0x1f3   :  { %293 = vrot.lane.b32.xlu0 %v291_v57, %s1396_s3 }
 0x245   :  { %v246_v58 = vpop.permute.xlu2 %245 }
 0x246   :  { %1149 = vmatmul.msk.bf16.vlgmr.msra.gmra.mxu2 %vm67_vm0, %v246_v58 }
 0x247   :  { %712 = vmatpush.bf16.msra.mxu2 %v1452_v0 }
 0x24b   :  { %713 = vmatpush.bf16.msra.mxu2 %v1465_v3 }
 0x265   :  { %v294_v59 = vpop.permute.xlu0 %293 }
 0x266   :  { %1151 = vmatmul.msk.bf16.vlgmr.msra.gmra.mxu3 %vm67_vm0, %v294_v59 }
 0x267   :  { %760 = vmatpush.bf16.msra.mxu3 %v1457_v1 }
 0x26b   :  { %761 = vmatpush.bf16.msra.mxu3 %v1470_v4 }
 0x2c9   :  { %v259_v61 = vpop.f32.mrf.mxu2 }
 0x2ca   :  { %v263_v62 = vadd.f32 %v1146_v60, %v259_v61 }
 0x2cc   :  { %1231 = vtanh.f32 %v263_v62  ;;  %v264_v10 = vsub.f32 0.0, %v263_v62 }
 0x2ce   :  { %v265_v11 = vmul.f32 1.442695, %v264_v10 }
 0x2d1   :  { %v261_v63 = vpop.f32.mrf.mxu2 }
 0x2d2   :  { %v1232_v2 = vpop.eup %1231 }
 0x2d3   :  { %272 = vrot.lane.b32.xlu1 %v1232_v2, %s1397_s16 }
 0x2e9   :  { %v307_v6 = vpop.f32.mrf.mxu3 }
 0x2ea   :  { %v311_v7 = vadd.f32 %v1147_v5, %v307_v6 }
 0x2ec   :  { %1233 = vtanh.f32 %v311_v7  ;;  %v312_v12 = vsub.f32 0.0, %v311_v7 }
 0x2ed   :  { %1235 = vpow2.f32 %v265_v11 }
 0x2ee   :  { %v313_v13 = vmul.f32 1.442695, %v312_v12 }
 0x2f0   :  { %1237 = vpow2.f32 %v313_v13 }
 0x2f1   :  { %v309_v8 = vpop.f32.mrf.mxu3 }
 0x2f2   :  { %v1234_v9 = vpop.eup %1233 }
 0x2f3   :  { %320 = vrot.lane.b32.xlu2 %v1234_v9, %s1397_s16  ;;  %v1236_v14 = vpop.eup %1235 }
 0x2f4   :  { %v267_v15 = vadd.f32 1.0, %v1236_v14 }
 0x2f6   :  { %1239 = vrcp.f32 %v267_v15  ;;  %v1238_v16 = vpop.eup %1237 }
 0x2f7   :  { %v315_v17 = vadd.f32 1.0, %v1238_v16 }
 0x2f9   :  { %1241 = vrcp.f32 %v315_v17 }
 0x2fc   :  { %v1240_v18 = vpop.eup %1239 }
 0x2fd   :  { %v270_v25 = vmul.f32 %v1240_v18, %v1574_v24 }
 0x2ff   :  { %v1242_v21 = vpop.eup %1241 }
 0x300   :  { %v318_v29 = vmul.f32 %v1242_v21, %v1584_v28 }
 0x345   :  { %v273_v19 = vpop.permute.xlu1 %272 }
 0x346   :  { %v275_v20 = vmul.f32 %v1240_v18, %v273_v19 }
 0x348   :  { %277 = vrot.lane.b32.xlu0 %v275_v20, %s1396_s3 }
 0x34d   :  { %v321_v22 = vpop.permute.xlu2 %320 }
 0x34e   :  { %v323_v23 = vmul.f32 %v1242_v21, %v321_v22 }
 0x350   :  { %325 = vrot.lane.b32.xlu1 %v323_v23, %s1396_s3 }
 0x3ba   :  { %v278_v26 = vpop.permute.xlu0 %277 }
 0x3bb   :  { %v1577_v27 = vadd.f32 %v278_v26, %v270_v25 }
 0x3bd   :  { %1243 = vtanh.f32 %v1577_v27  ;;  %v1630_v11 = vsel %vm1148_vm3, %v1577_v27, %v1574_v24 }
 0x3c2   :  { %v326_v30 = vpop.permute.xlu1 %325 }
 0x3c3   :  { %v1244_v31 = vpop.eup %1243  ;;  %v1587_v32 = vadd.f32 %v326_v30, %v318_v29 }
 0x3c4   :  { %283 = vrot.lane.b32.xlu2 %v1244_v31, %s1397_s16  ;;  %v1162_v31 = vld [vmem:[%s1989_s1 + $0x18] sm:$0xff] }
 0x3c5   :  { %1245 = vtanh.f32 %v1587_v32  ;;  %v1641_v16 = vsel %vm1150_vm4, %v1587_v32, %v1584_v28 }
 0x3cb   :  { %v1246_v33 = vpop.eup %1245 }
 0x3cc   :  { %331 = vrot.lane.b32.xlu0 %v1246_v33, %s1397_s16 }
 0x41e   :  { %v284_v34 = vpop.permute.xlu2 %283 }
 0x41f   :  { %v286_v35 = vmul.f32 %v1240_v18, %v284_v34 }
 0x421   :  { %v1596_v36 = vsel %vm1148_vm3, %v286_v35, %v1541_v52 }
 0x422   :  { %v357_v37 = vpack.c.bf16 %v1596_v36, %v1596_v36 }
 0x424   :  { %359 = vrot.lane.b32.xlu1 %v357_v37, %s1396_s3 }
 0x43e   :  { %v332_v38 = vpop.permute.xlu0 %331 }
 0x43f   :  { %v334_v39 = vmul.f32 %v1242_v21, %v332_v38 }
 0x441   :  { %v1605_v40 = vsel %vm1150_vm4, %v334_v39, %v1549_v56 }
 0x442   :  { %v405_v41 = vpack.c.bf16 %v1605_v40, %v1605_v40 }
 0x444   :  { %407 = vrot.lane.b32.xlu2 %v405_v41, %s1396_s3 }
 0x496   :  { %v360_v42 = vpop.permute.xlu1 %359 }
 0x497   :  { %1157 = vmatmul.msk.bf16.vlgmr.msrb.gmra.mxu0 %vm67_vm0, %v360_v42 }
 0x498   :  { %826 = vmatpush.bf16.msrb.mxu0 %v1452_v0 }
 0x49c   :  { %827 = vmatpush.bf16.msrb.mxu0 %v1465_v3 }
 0x49e   :  { %v408_v43 = vpop.permute.xlu2 %407 }
 0x49f   :  { %1159 = vmatmul.msk.bf16.vlgmr.msrb.gmra.mxu1 %vm67_vm0, %v408_v43 }
 0x4a0   :  { %874 = vmatpush.bf16.msrb.mxu1 %v1457_v1 }
 0x4a4   :  { %875 = vmatpush.bf16.msrb.mxu1 %v1470_v4 }
 0x514   :  { %v373_v45 = vpop.f32.mrf.mxu0 }
 0x515   :  { %v377_v46 = vadd.f32 %v1154_v44, %v373_v45 }
 0x517   :  { %1247 = vtanh.f32 %v377_v46  ;;  %v378_v57 = vsub.f32 0.0, %v377_v46 }
 0x519   :  { %v379_v58 = vmul.f32 1.442695, %v378_v57 }
 0x51c   :  { %v375_v49 = vpop.f32.mrf.mxu0  ;;  %v421_v50 = vpop.f32.mrf.mxu1 }
 0x51d   :  { %v1248_v51 = vpop.eup %1247  ;;  %v425_v53 = vadd.f32 %v1155_v47, %v421_v50 }
 0x51e   :  { %386 = vrot.lane.b32.xlu0 %v1248_v51, %s1397_s16 }
 0x51f   :  { %1249 = vtanh.f32 %v425_v53  ;;  %v426_v59 = vsub.f32 0.0, %v425_v53 }
 0x520   :  { %1251 = vpow2.f32 %v379_v58 }
 0x521   :  { %v427_v60 = vmul.f32 1.442695, %v426_v59 }
 0x523   :  { %1253 = vpow2.f32 %v427_v60 }
 0x524   :  { %v423_v54 = vpop.f32.mrf.mxu1 }
 0x525   :  { %v1250_v55 = vpop.eup %1249 }
 0x526   :  { %434 = vrot.lane.b32.xlu1 %v1250_v55, %s1397_s16  ;;  %v1252_v61 = vpop.eup %1251 }
 0x527   :  { %v381_v62 = vadd.f32 1.0, %v1252_v61 }
 0x529   :  { %1255 = vrcp.f32 %v381_v62  ;;  %v1254_v63 = vpop.eup %1253 }
 0x52a   :  { %v429_v2 = vadd.f32 1.0, %v1254_v63 }
 0x52c   :  { %1257 = vrcp.f32 %v429_v2 }
 0x52f   :  { %v1256_v5 = vpop.eup %1255 }
 0x530   :  { %v384_v12 = vmul.f32 %v1256_v5, %v1630_v11 }
 0x532   :  { %v1258_v8 = vpop.eup %1257 }
 0x533   :  { %v432_v17 = vmul.f32 %v1258_v8, %v1641_v16 }
 0x590   :  { %v387_v6 = vpop.permute.xlu0 %386 }
 0x591   :  { %v389_v7 = vmul.f32 %v1256_v5, %v387_v6 }
 0x593   :  { %391 = vrot.lane.b32.xlu2 %v389_v7, %s1396_s3 }
 0x598   :  { %v435_v9 = vpop.permute.xlu1 %434 }
 0x599   :  { %v437_v10 = vmul.f32 %v1258_v8, %v435_v9 }
 0x59b   :  { %439 = vrot.lane.b32.xlu0 %v437_v10, %s1396_s3 }
 0x5ed   :  { %v392_v13 = vpop.permute.xlu2 %391 }
 0x5ee   :  { %v1633_v14 = vadd.f32 %v392_v13, %v384_v12 }
 0x5f0   :  { %1259 = vtanh.f32 %v1633_v14  ;;  %v1686_v55 = vsel %vm1156_vm5, %v1633_v14, %v1630_v11 }
 0x5f6   :  { %v1260_v15 = vpop.eup %1259 }
 0x5f7   :  { %397 = vrot.lane.b32.xlu1 %v1260_v15, %s1397_s16 }
 0x60d   :  { %v440_v18 = vpop.permute.xlu0 %439 }
 0x60e   :  { %v1644_v19 = vadd.f32 %v440_v18, %v432_v17 }
 0x610   :  { %1261 = vtanh.f32 %v1644_v19  ;;  %v1693_v60 = vsel %vm1158_vm6, %v1644_v19, %v1641_v16  ;;  %v1170_v16 = vld [vmem:[%s1989_s1 + $0x20] sm:$0xff] }
 0x616   :  { %v1262_v20 = vpop.eup %1261 }
 0x617   :  { %445 = vrot.lane.b32.xlu2 %v1262_v20, %s1397_s16 }
 0x669   :  { %v398_v21 = vpop.permute.xlu1 %397 }
 0x66a   :  { %v400_v22 = vmul.f32 %v1256_v5, %v398_v21  ;;  %v1171_v21 = vld [vmem:[%s1990_s2 + $0x18] sm:$0xff] }
 0x66c   :  { %v1652_v23 = vsel %vm1156_vm5, %v400_v22, %v1596_v36 }
 0x66d   :  { %v471_v24 = vpack.c.bf16 %v1652_v23, %v1652_v23 }
 0x66f   :  { %473 = vrot.lane.b32.xlu0 %v471_v24, %s1396_s3 }
 0x671   :  { %v446_v25 = vpop.permute.xlu2 %445 }
 0x672   :  { %v448_v26 = vmul.f32 %v1258_v8, %v446_v25 }
 0x674   :  { %v1661_v27 = vsel %vm1158_vm6, %v448_v26, %v1605_v40 }
 0x675   :  { %v519_v28 = vpack.c.bf16 %v1661_v27, %v1661_v27 }
 0x677   :  { %521 = vrot.lane.b32.xlu1 %v519_v28, %s1396_s3 }
 0x6e1   :  { %v474_v29 = vpop.permute.xlu0 %473 }
 0x6e2   :  { %1165 = vmatmul.msk.bf16.vlgmr.msrb.gmra.mxu2 %vm67_vm0, %v474_v29 }
 0x6e3   :  { %939 = vmatpush.bf16.msrb.mxu2 %v1452_v0  ;;  %v1163_v0 = vld [vmem:[%s1990_s2 + $0x20] sm:$0xff] }
 0x6e7   :  { %940 = vmatpush.bf16.msrb.mxu2 %v1465_v3 }
 0x6e9   :  { %v522_v30 = vpop.permute.xlu1 %521 }
 0x6ea   :  { %1167 = vmatmul.msk.bf16.vlgmr.msrb.gmra.mxu3 %vm67_vm0, %v522_v30 }
 0x6eb   :  { %987 = vmatpush.bf16.msrb.mxu3 %v1457_v1 }
 0x6ef   :  { %988 = vmatpush.bf16.msrb.mxu3 %v1470_v4 }
 0x765   :  { %v487_v32 = vpop.f32.mrf.mxu2 }
 0x766   :  { %v491_v33 = vadd.f32 %v1162_v31, %v487_v32 }
 0x768   :  { %1263 = vtanh.f32 %v491_v33  ;;  %v492_v38 = vsub.f32 0.0, %v491_v33 }
 0x76a   :  { %v493_v39 = vmul.f32 1.442695, %v492_v38 }
 0x76d   :  { %v489_v34 = vpop.f32.mrf.mxu2  ;;  %v535_v3 = vpop.f32.mrf.mxu3 }
 0x76e   :  { %v1264_v35 = vpop.eup %1263  ;;  %v539_v37 = vadd.f32 %v1163_v0, %v535_v3 }
 0x76f   :  { %500 = vrot.lane.b32.xlu2 %v1264_v35, %s1397_s16 }
 0x770   :  { %1265 = vtanh.f32 %v539_v37  ;;  %v540_v46 = vsub.f32 0.0, %v539_v37 }
 0x771   :  { %1267 = vpow2.f32 %v493_v39 }
 0x772   :  { %v541_v47 = vmul.f32 1.442695, %v540_v46 }
 0x775   :  { %v537_v1 = vpop.f32.mrf.mxu3 }
 0x776   :  { %v1266_v4 = vpop.eup %1265 }
 0x777   :  { %548 = vrot.lane.b32.xlu0 %v1266_v4, %s1397_s16  ;;  %v1268_v41 = vpop.eup %1267 }
 0x778   :  { %v495_v42 = vadd.f32 1.0, %v1268_v41 }
 0x77a   :  { %1269 = vrcp.f32 %v495_v42 }
 0x77b   :  { %1271 = vpow2.f32 %v541_v47 }
 0x780   :  { %v1270_v43 = vpop.eup %1269 }
 0x781   :  { %v1272_v49 = vpop.eup %1271  ;;  %v498_v57 = vmul.f32 %v1270_v43, %v1686_v55 }
 0x782   :  { %v543_v50 = vadd.f32 1.0, %v1272_v49 }
 0x784   :  { %1273 = vrcp.f32 %v543_v50 }
 0x78a   :  { %v1274_v51 = vpop.eup %1273 }
 0x78b   :  { %v546_v61 = vmul.f32 %v1274_v51, %v1693_v60 }
 0x7c9   :  { %v501_v44 = vpop.permute.xlu2 %500 }
 0x7ca   :  { %v503_v45 = vmul.f32 %v1270_v43, %v501_v44 }
 0x7cc   :  { %505 = vrot.lane.b32.xlu1 %v503_v45, %s1396_s3 }
 0x7e9   :  { %v549_v53 = vpop.permute.xlu0 %548 }
 0x7ea   :  { %v551_v54 = vmul.f32 %v1274_v51, %v549_v53 }
 0x7ec   :  { %553 = vrot.lane.b32.xlu2 %v551_v54, %s1396_s3 }
 0x83e   :  { %v506_v58 = vpop.permute.xlu1 %505 }
 0x83f   :  { %v508_v59 = vadd.f32 %v506_v58, %v498_v57 }
 0x841   :  { %1275 = vtanh.f32 %v508_v59  ;;  %v1731_v39 = vsel %vm1164_vm7, %v508_v59, %v1686_v55 }
 0x846   :  { %v554_v62 = vpop.permute.xlu2 %553 }
 0x847   :  { %v1276_v63 = vpop.eup %1275  ;;  %v556_v2 = vadd.f32 %v554_v62, %v546_v61 }
 0x848   :  { %511 = vrot.lane.b32.xlu0 %v1276_v63, %s1397_s16  ;;  %v1178_v63 = vld [vmem:[%s1989_s1 + $0x28] sm:$0xff] }
 0x849   :  { %1277 = vtanh.f32 %v556_v2  ;;  %v1737_v44 = vsel %vm1166_vm8, %v556_v2, %v1693_v60 }
 0x84f   :  { %v1278_v5 = vpop.eup %1277 }
 0x850   :  { %559 = vrot.lane.b32.xlu1 %v1278_v5, %s1397_s16 }
 0x8ba   :  { %v512_v6 = vpop.permute.xlu0 %511 }
 0x8bb   :  { %v514_v7 = vmul.f32 %v1270_v43, %v512_v6  ;;  %v1179_v6 = vld [vmem:[%s1990_s2 + $0x10] sm:$0xff] }
 0x8bd   :  { %v1702_v8 = vsel %vm1164_vm7, %v514_v7, %v1652_v23 }
 0x8be   :  { %v585_v9 = vpack.c.bf16 %v1702_v8, %v1702_v8 }
 0x8c0   :  { %587 = vrot.lane.b32.xlu2 %v585_v9, %s1396_s3 }
 0x8c2   :  { %v560_v10 = vpop.permute.xlu1 %559 }
 0x8c3   :  { %v562_v11 = vmul.f32 %v1274_v51, %v560_v10 }
 0x8c5   :  { %v1711_v12 = vsel %vm1166_vm8, %v562_v11, %v1661_v27 }
 0x8c6   :  { %v633_v13 = vpack.c.bf16 %v1711_v12, %v1711_v12 }
 0x8c8   :  { %635 = vrot.lane.b32.xlu0 %v633_v13, %s1396_s3 }
 0x91a   :  { %v588_v14 = vpop.permute.xlu2 %587 }
 0x91b   :  { %1173 = vmatmul.msk.bf16.vlgmr.msra.gmra.mxu0 %vm67_vm0, %v588_v14 }
 0x93a   :  { %v636_v15 = vpop.permute.xlu0 %635 }
 0x93b   :  { %1175 = vmatmul.msk.bf16.vlgmr.msra.gmra.mxu1 %vm67_vm0, %v636_v15 }
 0x998   :  { %v601_v17 = vpop.f32.mrf.mxu0 }
 0x999   :  { %v605_v18 = vadd.f32 %v1170_v16, %v601_v17 }
 0x99b   :  { %1279 = vtanh.f32 %v605_v18  ;;  %v606_v28 = vsub.f32 0.0, %v605_v18 }
 0x99d   :  { %v607_v29 = vmul.f32 1.442695, %v606_v28 }
 0x9a0   :  { %v603_v19 = vpop.f32.mrf.mxu0 }
 0x9a1   :  { %v1280_v20 = vpop.eup %1279 }
 0x9a2   :  { %614 = vrot.lane.b32.xlu1 %v1280_v20, %s1397_s16 }
 0x9b8   :  { %v649_v22 = vpop.f32.mrf.mxu1 }
 0x9b9   :  { %v653_v24 = vadd.f32 %v1171_v21, %v649_v22 }
 0x9bb   :  { %1281 = vtanh.f32 %v653_v24  ;;  %v654_v30 = vsub.f32 0.0, %v653_v24 }
 0x9bc   :  { %1283 = vpow2.f32 %v607_v29 }
 0x9bd   :  { %v655_v31 = vmul.f32 1.442695, %v654_v30 }
 0x9bf   :  { %1285 = vpow2.f32 %v655_v31 }
 0x9c0   :  { %v651_v25 = vpop.f32.mrf.mxu1 }
 0x9c1   :  { %v1282_v26 = vpop.eup %1281 }
 0x9c2   :  { %662 = vrot.lane.b32.xlu2 %v1282_v26, %s1397_s16  ;;  %v1284_v32 = vpop.eup %1283 }
 0x9c3   :  { %v609_v33 = vadd.f32 1.0, %v1284_v32 }
 0x9c5   :  { %1287 = vrcp.f32 %v609_v33  ;;  %v1286_v0 = vpop.eup %1285 }
 0x9c6   :  { %v657_v34 = vadd.f32 1.0, %v1286_v0 }
 0x9c8   :  { %1289 = vrcp.f32 %v657_v34 }
 0x9cb   :  { %v1288_v3 = vpop.eup %1287 }
 0x9cc   :  { %v612_v41 = vmul.f32 %v1288_v3, %v1731_v39 }
 0x9ce   :  { %v1290_v1 = vpop.eup %1289 }
 0x9cf   :  { %v660_v45 = vmul.f32 %v1290_v1, %v1737_v44 }
 0xa14   :  { %v615_v35 = vpop.permute.xlu1 %614 }
 0xa15   :  { %v617_v37 = vmul.f32 %v1288_v3, %v615_v35 }
 0xa17   :  { %619 = vrot.lane.b32.xlu0 %v617_v37, %s1396_s3 }
 0xa1c   :  { %v663_v4 = vpop.permute.xlu2 %662 }
 0xa1d   :  { %v665_v38 = vmul.f32 %v1290_v1, %v663_v4 }
 0xa1f   :  { %667 = vrot.lane.b32.xlu1 %v665_v38, %s1396_s3 }
 0xa89   :  { %v620_v42 = vpop.permute.xlu0 %619 }
 0xa8a   :  { %v622_v43 = vadd.f32 %v620_v42, %v612_v41 }
 0xa8c   :  { %1291 = vtanh.f32 %v622_v43  ;;  %v1773_v31 = vsel %vm1166_vm8, %v622_v43, %v1731_v39 }
 0xa91   :  { %v668_v46 = vpop.permute.xlu1 %667 }
 0xa92   :  { %v1292_v47 = vpop.eup %1291  ;;  %v670_v49 = vadd.f32 %v668_v46, %v660_v45 }
 0xa93   :  { %625 = vrot.lane.b32.xlu2 %v1292_v47, %s1397_s16 }
 0xa94   :  { %1293 = vtanh.f32 %v670_v49 }
 0xa9a   :  { %v1294_v50 = vpop.eup %1293 }
 0xa9b   :  { %673 = vrot.lane.b32.xlu0 %v1294_v50, %s1397_s16  ;;  %v1186_v50 = vld [vmem:[%s1989_s1 + $0x30] sm:$0xff] }
 0xaed   :  { %v626_v51 = vpop.permute.xlu2 %625 }
 0xaee   :  { %v628_v53 = vmul.f32 %v1288_v3, %v626_v51  ;;  %v678_v3 = vsel %vm1164_vm7, %v670_v49, %v1737_v44 }
 0xaf0   :  { %v1745_v54 = vsel %vm1166_vm8, %v628_v53, %v1702_v8 }
 0xaf1   :  { %v699_v55 = vpack.c.bf16 %v1745_v54, %v1745_v54 }
 0xaf3   :  { %701 = vrot.lane.b32.xlu1 %v699_v55, %s1396_s3  ;;  %v1187_v55 = vld [vmem:[%s1990_s2 + $0x8] sm:$0xff] }
 0xb0d   :  { %v674_v57 = vpop.permute.xlu0 %673 }
 0xb0e   :  { %v676_v58 = vmul.f32 %v1290_v1, %v674_v57 }
 0xb10   :  { %v1753_v59 = vsel %vm1164_vm7, %v676_v58, %v1711_v12 }
 0xb11   :  { %v747_v60 = vpack.c.bf16 %v1753_v59, %v1753_v59 }
 0xb13   :  { %749 = vrot.lane.b32.xlu2 %v747_v60, %s1396_s3 }
 0xb65   :  { %v702_v61 = vpop.permute.xlu1 %701 }
 0xb66   :  { %1181 = vmatmul.msk.bf16.vlgmr.msra.gmra.mxu2 %vm67_vm0, %v702_v61 }
 0xb6d   :  { %v750_v62 = vpop.permute.xlu2 %749 }
 0xb6e   :  { %1183 = vmatmul.msk.bf16.vlgmr.msra.gmra.mxu3 %vm67_vm0, %v750_v62 }
 0xbe9   :  { %v715_v2 = vpop.f32.mrf.mxu2 }
 0xbea   :  { %v719_v5 = vadd.f32 %v1178_v63, %v715_v2 }
 0xbec   :  { %1295 = vtanh.f32 %v719_v5  ;;  %v720_v15 = vsub.f32 0.0, %v719_v5 }
 0xbee   :  { %v721_v16 = vmul.f32 1.442695, %v720_v15 }
 0xbf1   :  { %v717_v7 = vpop.f32.mrf.mxu2  ;;  %v763_v9 = vpop.f32.mrf.mxu3 }
 0xbf2   :  { %v1296_v10 = vpop.eup %1295  ;;  %v767_v11 = vadd.f32 %v1179_v6, %v763_v9 }
 0xbf3   :  { %728 = vrot.lane.b32.xlu0 %v1296_v10, %s1397_s16 }
 0xbf4   :  { %1297 = vtanh.f32 %v767_v11  ;;  %v768_v17 = vsub.f32 0.0, %v767_v11 }
 0xbf5   :  { %1299 = vpow2.f32 %v721_v16 }
 0xbf6   :  { %v769_v18 = vmul.f32 1.442695, %v768_v17 }
 0xbf8   :  { %1301 = vpow2.f32 %v769_v18 }
 0xbf9   :  { %v765_v13 = vpop.f32.mrf.mxu3 }
 0xbfa   :  { %v1298_v14 = vpop.eup %1297 }
 0xbfb   :  { %776 = vrot.lane.b32.xlu1 %v1298_v14, %s1397_s16  ;;  %v1300_v19 = vpop.eup %1299 }
 0xbfc   :  { %v723_v20 = vadd.f32 1.0, %v1300_v19 }
 0xbfe   :  { %1303 = vrcp.f32 %v723_v20  ;;  %v1302_v21 = vpop.eup %1301 }
 0xbff   :  { %v771_v22 = vadd.f32 1.0, %v1302_v21 }
 0xc01   :  { %1305 = vrcp.f32 %v771_v22 }
 0xc04   :  { %v1304_v24 = vpop.eup %1303 }
 0xc05   :  { %v726_v32 = vmul.f32 %v1304_v24, %v1773_v31 }
 0xc07   :  { %v1306_v28 = vpop.eup %1305 }
 0xc08   :  { %v774_v35 = vmul.f32 %v1306_v28, %v678_v3 }
 0xc65   :  { %v729_v25 = vpop.permute.xlu0 %728 }
 0xc66   :  { %v731_v26 = vmul.f32 %v1304_v24, %v729_v25 }
 0xc68   :  { %733 = vrot.lane.b32.xlu2 %v731_v26, %s1396_s3 }
 0xc6d   :  { %v777_v29 = vpop.permute.xlu1 %776 }
 0xc6e   :  { %v779_v30 = vmul.f32 %v1306_v28, %v777_v29 }
 0xc70   :  { %781 = vrot.lane.b32.xlu0 %v779_v30, %s1396_s3 }
 0xcc2   :  { %v734_v33 = vpop.permute.xlu2 %733 }
 0xcc3   :  { %v736_v0 = vadd.f32 %v734_v33, %v726_v32 }
 0xcc5   :  { %1307 = vtanh.f32 %v736_v0  ;;  %v1812_v20 = vsel %vm1158_vm6, %v736_v0, %v1773_v31 }
 0xccb   :  { %v1308_v34 = vpop.eup %1307 }
 0xccc   :  { %739 = vrot.lane.b32.xlu1 %v1308_v34, %s1397_s16 }
 0xce2   :  { %v782_v37 = vpop.permute.xlu0 %781 }
 0xce3   :  { %v784_v1 = vadd.f32 %v782_v37, %v774_v35 }
 0xce5   :  { %1309 = vtanh.f32 %v784_v1  ;;  %v1817_v25 = vsel %vm1156_vm5, %v784_v1, %v678_v3 }
 0xceb   :  { %v1310_v4 = vpop.eup %1309 }
 0xcec   :  { %787 = vrot.lane.b32.xlu2 %v1310_v4, %s1397_s16 }
 0xd3e   :  { %v740_v38 = vpop.permute.xlu1 %739 }
 0xd3f   :  { %v742_v39 = vmul.f32 %v1304_v24, %v740_v38 }
 0xd41   :  { %v1784_v41 = vsel %vm1158_vm6, %v742_v39, %v1745_v54  ;;  %v1194_v39 = vld [vmem:[%s1989_s1 + $0x38] sm:$0xff] }
 0xd42   :  { %v813_v42 = vpack.c.bf16 %v1784_v41, %v1784_v41 }
 0xd44   :  { %815 = vrot.lane.b32.xlu0 %v813_v42, %s1396_s3 }
 0xd46   :  { %v788_v43 = vpop.permute.xlu2 %787 }
 0xd47   :  { %v790_v44 = vmul.f32 %v1306_v28, %v788_v43 }
 0xd49   :  { %v1792_v45 = vsel %vm1156_vm5, %v790_v44, %v1753_v59 }
 0xd4a   :  { %v861_v46 = vpack.c.bf16 %v1792_v45, %v1792_v45 }
 0xd4c   :  { %863 = vrot.lane.b32.xlu1 %v861_v46, %s1396_s3 }
 0xdb6   :  { %v816_v47 = vpop.permute.xlu0 %815 }
 0xdb7   :  { %1189 = vmatmul.msk.bf16.vlgmr.msrb.gmra.mxu0 %vm67_vm0, %v816_v47  ;;  %v923_v47 = vld [vmem:[%s1990_s2] sm:$0xff] }
 0xdbe   :  { %v864_v49 = vpop.permute.xlu1 %863 }
 0xdbf   :  { %1191 = vmatmul.msk.bf16.vlgmr.msrb.gmra.mxu1 %vm67_vm0, %v864_v49 }
 0xe34   :  { %v829_v51 = vpop.f32.mrf.mxu0 }
 0xe35   :  { %v833_v53 = vadd.f32 %v1186_v50, %v829_v51 }
 0xe37   :  { %1311 = vtanh.f32 %v833_v53  ;;  %v834_v2 = vsub.f32 0.0, %v833_v53 }
 0xe39   :  { %v835_v5 = vmul.f32 1.442695, %v834_v2 }
 0xe3c   :  { %v831_v57 = vpop.f32.mrf.mxu0  ;;  %v877_v58 = vpop.f32.mrf.mxu1 }
 0xe3d   :  { %v1312_v60 = vpop.eup %1311  ;;  %v881_v61 = vadd.f32 %v1187_v55, %v877_v58 }
 0xe3e   :  { %842 = vrot.lane.b32.xlu2 %v1312_v60, %s1397_s16 }
 0xe3f   :  { %1313 = vtanh.f32 %v881_v61  ;;  %v882_v13 = vsub.f32 0.0, %v881_v61 }
 0xe40   :  { %1315 = vpow2.f32 %v835_v5 }
 0xe41   :  { %v883_v14 = vmul.f32 1.442695, %v882_v13 }
 0xe44   :  { %v879_v62 = vpop.f32.mrf.mxu1 }
 0xe45   :  { %v1314_v63 = vpop.eup %1313 }
 0xe46   :  { %890 = vrot.lane.b32.xlu0 %v1314_v63, %s1397_s16  ;;  %v1316_v6 = vpop.eup %1315 }
 0xe47   :  { %v837_v7 = vadd.f32 1.0, %v1316_v6 }
 0xe49   :  { %1317 = vrcp.f32 %v837_v7 }
 0xe4a   :  { %1319 = vpow2.f32 %v883_v14 }
 0xe4f   :  { %v1318_v9 = vpop.eup %1317 }
 0xe50   :  { %v1320_v15 = vpop.eup %1319  ;;  %v840_v21 = vmul.f32 %v1318_v9, %v1812_v20 }
 0xe51   :  { %v885_v16 = vadd.f32 1.0, %v1320_v15 }
 0xe53   :  { %1321 = vrcp.f32 %v885_v16 }
 0xe59   :  { %v1322_v17 = vpop.eup %1321 }
 0xe5a   :  { %v888_v26 = vmul.f32 %v1322_v17, %v1817_v25 }
 0xe98   :  { %v843_v10 = vpop.permute.xlu2 %842 }
 0xe99   :  { %v845_v11 = vmul.f32 %v1318_v9, %v843_v10 }
 0xe9b   :  { %847 = vrot.lane.b32.xlu1 %v845_v11, %s1396_s3 }
 0xeb8   :  { %v891_v18 = vpop.permute.xlu0 %890 }
 0xeb9   :  { %v893_v19 = vmul.f32 %v1322_v17, %v891_v18 }
 0xebb   :  { %895 = vrot.lane.b32.xlu2 %v893_v19, %s1396_s3 }
 0xf0d   :  { %v848_v22 = vpop.permute.xlu1 %847 }
 0xf0e   :  { %v850_v24 = vadd.f32 %v848_v22, %v840_v21 }
 0xf10   :  { %1323 = vtanh.f32 %v850_v24  ;;  %v858_v13 = vsel %vm1150_vm4, %v850_v24, %v1812_v20 }
 0xf15   :  { %v896_v28 = vpop.permute.xlu2 %895 }
 0xf16   :  { %v1324_v29 = vpop.eup %1323  ;;  %v1820_v30 = vadd.f32 %v896_v28, %v888_v26 }
 0xf17   :  { %853 = vrot.lane.b32.xlu0 %v1324_v29, %s1397_s16 }
 0xf18   :  { %1325 = vtanh.f32 %v1820_v30 }
 0xf1e   :  { %v1326_v31 = vpop.eup %1325 }
 0xf1f   :  { %901 = vrot.lane.b32.xlu1 %v1326_v31, %s1397_s16 }
 0xf89   :  { %v854_v32 = vpop.permute.xlu0 %853 }
 0xf8a   :  { %v856_v33 = vmul.f32 %v1318_v9, %v854_v32 }
 0xf8c   :  { %v1828_v0 = vsel %vm1150_vm4, %v856_v33, %v1784_v41 }
 0xf8d   :  { %v926_v34 = vpack.c.bf16 %v1828_v0, %v1828_v0 }
 0xf8f   :  { %928 = vrot.lane.b32.xlu2 %v926_v34, %s1396_s3 }
 0xf91   :  { %v902_v3 = vpop.permute.xlu1 %901 }
 0xf92   :  { %v904_v35 = vmul.f32 %v1322_v17, %v902_v3 }
 0xf94   :  { %v1836_v37 = vsel %vm1148_vm3, %v904_v35, %v1792_v45 }
 0xf95   :  { %v974_v1 = vpack.c.bf16 %v1836_v37, %v1836_v37 }
 0xf97   :  { %976 = vrot.lane.b32.xlu0 %v974_v1, %s1396_s3 }
 0xfe9   :  { %v929_v4 = vpop.permute.xlu2 %928 }
 0xfea   :  { %1196 = vmatmul.msk.bf16.vlgmr.msrb.gmra.mxu2 %vm67_vm0, %v929_v4 }
0x1009   :  { %v977_v38 = vpop.permute.xlu0 %976 }
0x100a   :  { %1198 = vmatmul.msk.bf16.vlgmr.msrb.gmra.mxu3 %vm67_vm0, %v977_v38 }
0x106d   :  { %v942_v42 = vpop.f32.mrf.mxu2 }
0x106e   :  { %v946_v43 = vadd.f32 %v1194_v39, %v942_v42 }
0x1070   :  { %1327 = vtanh.f32 %v946_v43  ;;  %v947_v55 = vsub.f32 0.0, %v946_v43 }
0x1072   :  { %v948_v57 = vmul.f32 1.442695, %v947_v55 }
0x1075   :  { %v944_v44 = vpop.f32.mrf.mxu2 }
0x1076   :  { %v1328_v46 = vpop.eup %1327 }
0x1077   :  { %955 = vrot.lane.b32.xlu1 %v1328_v46, %s1397_s16 }
0x108d   :  { %v990_v49 = vpop.f32.mrf.mxu3 }
0x108e   :  { %v994_v50 = vadd.f32 %v990_v49, %v923_v47 }
0x1090   :  { %1329 = vtanh.f32 %v994_v50  ;;  %v995_v58 = vsub.f32 0.0, %v994_v50 }
0x1091   :  { %1331 = vpow2.f32 %v948_v57 }
0x1092   :  { %v996_v60 = vmul.f32 1.442695, %v995_v58 }
0x1094   :  { %1333 = vpow2.f32 %v996_v60 }
0x1095   :  { %v992_v51 = vpop.f32.mrf.mxu3 }
0x1096   :  { %v1330_v53 = vpop.eup %1329 }
0x1097   :  { %1003 = vrot.lane.b32.xlu2 %v1330_v53, %s1397_s16  ;;  %v1332_v61 = vpop.eup %1331 }
0x1098   :  { %v950_v62 = vadd.f32 1.0, %v1332_v61 }
0x109a   :  { %1335 = vrcp.f32 %v950_v62  ;;  %v1334_v63 = vpop.eup %1333 }
0x109b   :  { %v998_v2 = vadd.f32 1.0, %v1334_v63 }
0x109d   :  { %1337 = vrcp.f32 %v998_v2 }
0x10a0   :  { %v1336_v5 = vpop.eup %1335 }
0x10a1   :  { %v953_v14 = vmul.f32 %v1336_v5, %v858_v13 }
0x10a3   :  { %v1338_v9 = vpop.eup %1337 }
0x10e9   :  { %v956_v6 = vpop.permute.xlu1 %955 }
0x10ea   :  { %v958_v7 = vmul.f32 %v1336_v5, %v956_v6 }
0x10ec   :  { %960 = vrot.lane.b32.xlu0 %v958_v7, %s1396_s3 }
0x10f1   :  { %v1004_v10 = vpop.permute.xlu2 %1003 }
0x10f2   :  { %v1006_v11 = vmul.f32 %v1338_v9, %v1004_v10 }
0x10f4   :  { %1008 = vrot.lane.b32.xlu1 %v1006_v11, %s1396_s3 }
0x10fc   :  { %225 = vrot.lane.b32.xlu1 %v1541_v52, %s1396_s3  ;;  %v906_v52 = vsel %vm1148_vm3, %v1820_v30, %v1817_v25 }
0x10fd   :  { %v1001_v18 = vmul.f32 %v1338_v9, %v906_v52 }
0x1104   :  { %344 = vrot.lane.b32.xlu1 %v1605_v40, %s1396_s3 }
0x115e   :  { %v961_v15 = vpop.permute.xlu0 %960 }
0x115f   :  { %v963_v16 = vadd.f32 %v961_v15, %v953_v14 }
0x1161   :  { %1339 = vtanh.f32 %v963_v16  ;;  %v971_v17 = vsel %vm1135_vm2, %v963_v16, %v858_v13 }
0x1162   :  { %1033 = vrot.lane.b32.xlu1 %v971_v17, %s1399_s0 }
0x1166   :  { %v1009_v40 = vpop.permute.xlu1 %1008 }
0x1167   :  { %v1340_v19 = vpop.eup %1339  ;;  %v1011_v21 = vadd.f32 %v1009_v40, %v1001_v18 }
0x1168   :  { %966 = vrot.lane.b32.xlu2 %v1340_v19, %s1397_s16 }
0x1169   :  { %1341 = vtanh.f32 %v1011_v21 }
0x116a   :  { %458 = vrot.lane.b32.xlu1 %v1661_v27, %s1396_s3  ;;  %v1019_v27 = vsel %vm1125_vm1, %v1011_v21, %v906_v52 }
0x116e   :  { %v226_v20 = vpop.permute.xlu1 %225 }
0x116f   :  { %v1342_v22 = vpop.eup %1341  ;;  %228 = vst.msk [vmem:[%s1993_s5] sm:$0xff] %vm67_vm0, %v226_v20 }
0x1170   :  { %1014 = vrot.lane.b32.xlu0 %v1342_v22, %s1397_s16  ;;  %230 = vrot.lane.b32.xlu2 %v1549_v56, %s1396_s3 }
0x1172   :  { %680 = vrot.lane.b32.xlu1 %v1745_v54, %s1396_s3 }
0x1176   :  { %v345_v24 = vpop.permute.xlu1 %344 }
0x1177   :  { %1153 = vst.msk [vmem:[%s1994_s6 + $0x30] sm:$0xff] %vm67_vm0, %v345_v24 }
0x1178   :  { %338 = vrot.lane.b32.xlu0 %v1596_v36, %s1396_s3  ;;  %1039 = vrot.lane.b32.xlu2 %v1019_v27, %s1399_s0 }
0x117a   :  { %800 = vrot.lane.b32.xlu1 %v1792_v45, %s1396_s3 }
0x1180   :  { %452 = vrot.lane.b32.xlu0 %v1652_v23, %s1396_s3  ;;  %566 = vrot.lane.b32.xlu2 %v1702_v8, %s1396_s3 }
0x1188   :  { %572 = vrot.lane.b32.xlu0 %v1711_v12, %s1396_s3  ;;  %686 = vrot.lane.b32.xlu2 %v1753_v59, %s1396_s3 }
0x1190   :  { %794 = vrot.lane.b32.xlu0 %v1784_v41, %s1396_s3 }
0x11c2   :  { %v967_v56 = vpop.permute.xlu2 %966 }
0x11c3   :  { %v969_v36 = vmul.f32 %v1336_v5, %v967_v56 }
0x11c5   :  { %v970_v54 = vsel %vm1135_vm2, %v969_v36, %v1828_v0 }
0x11c6   :  { %1021 = vrot.lane.b32.xlu2 %v970_v54, %s1396_s3 }
0x11ca   :  { %v231_v23 = vpop.permute.xlu2 %230 }
0x11cb   :  { %1145 = vst.msk [vmem:[%s1994_s6 + $0x38] sm:$0xff] %vm67_vm0, %v231_v23 }
0x11ce   :  { %908 = vrot.lane.b32.xlu2 %v1828_v0, %s1396_s3 }
0x11d2   :  { %v1040_v8 = vpop.permute.xlu2 %1039 }
0x11d3   :  { %1042 = vst.msk [vmem:[#allocation5] sm:$0xff] %vm67_vm0, %v1040_v8 }
0x11d4   :  { %1051 = vst.msk [vmem:[#allocation8 + $0x8] sm:$0xff] %vm67_vm0, %v1040_v8  ;;  %v1034_v12 = vpop.permute.xlu1 %1033 }
0x11d5   :  { %1036 = vst.msk [vmem:[#allocation3] sm:$0xff] %vm67_vm0, %v1034_v12 }
0x11d6   :  { %1049 = vst.msk [vmem:[#allocation8] sm:$0xff] %vm67_vm0, %v1034_v12 }
0x11d7   :  { %1089 = dma.vmem_to_hbm [thread:$0]  %s1082_s12, 256, %s1084_s14, [#allocation9], %s1401_s18, %s1401_s18, %s1402_s19  }
0x11da   :  { %v567_v59 = vpop.permute.xlu2 %566 }
0x11db   :  { %1168 = vst.msk [vmem:[%s1993_s5 + $0x18] sm:$0xff] %vm67_vm0, %v567_v59 }
0x11dc   :  { %v459_v41 = vpop.permute.xlu1 %458 }
0x11dd   :  { %1161 = vst.msk [vmem:[%s1994_s6 + $0x28] sm:$0xff] %vm67_vm0, %v459_v41 }
0x11e2   :  { %v687_v45 = vpop.permute.xlu2 %686  ;;  %v1015_v25 = vpop.permute.xlu0 %1014 }
0x11e3   :  { %1177 = vst.msk [vmem:[%s1994_s6 + $0x18] sm:$0xff] %vm67_vm0, %v687_v45  ;;  %v1017_v26 = vmul.f32 %v1338_v9, %v1015_v25 }
0x11e4   :  { %v681_v28 = vpop.permute.xlu1 %680 }
0x11e5   :  { %1176 = vst.msk [vmem:[%s1993_s5 + $0x20] sm:$0xff] %vm67_vm0, %v681_v28  ;;  %v1018_v29 = vsel %vm1125_vm1, %v1017_v26, %v1836_v37 }
0x11e6   :  { %1027 = vrot.lane.b32.xlu0 %v1018_v29, %s1396_s3 }
0x11ea   :  { %v339_v30 = vpop.permute.xlu0 %338 }
0x11eb   :  { %1152 = vst.msk [vmem:[%s1993_s5 + $0x8] sm:$0xff] %vm67_vm0, %v339_v30 }
0x11ec   :  { %v801_v31 = vpop.permute.xlu1 %800 }
0x11ed   :  { %1185 = vst.msk [vmem:[%s1994_s6 + $0x10] sm:$0xff] %vm67_vm0, %v801_v31 }
0x11ee   :  { %914 = vrot.lane.b32.xlu0 %v1836_v37, %s1396_s3 }
0x11f2   :  { %v453_v48 = vpop.permute.xlu0 %452 }
0x11f3   :  { %1160 = vst.msk [vmem:[%s1993_s5 + $0x10] sm:$0xff] %vm67_vm0, %v453_v48 }
0x11fa   :  { %v573_v32 = vpop.permute.xlu0 %572 }
0x11fb   :  { %1169 = vst.msk [vmem:[%s1994_s6 + $0x20] sm:$0xff] %vm67_vm0, %v573_v32 }
0x1202   :  { %v795_v33 = vpop.permute.xlu0 %794 }
0x1203   :  { %1184 = vst.msk [vmem:[%s1993_s5 + $0x28] sm:$0xff] %vm67_vm0, %v795_v33 }
0x1220   :  { %v1022_v0 = vpop.permute.xlu2 %1021 }
0x1221   :  { %1199 = vst.msk [vmem:[%s1993_s5 + $0x38] sm:$0xff] %vm67_vm0, %v1022_v0 }
0x1222   :  { %1031 = vst.msk [vmem:[#allocation2] sm:$0xff] %vm67_vm0, %v1022_v0 }
0x1223   :  { %1046 = vst.msk [vmem:[#allocation6] sm:$0xff] %vm67_vm0, %v1022_v0 }
0x1228   :  { %v909_v34 = vpop.permute.xlu2 %908 }
0x1229   :  { %1192 = vst.msk [vmem:[%s1993_s5 + $0x30] sm:$0xff] %vm67_vm0, %v909_v34 }
0x1258   :  { %v1028_v3 = vpop.permute.xlu0 %1027 }
0x1259   :  { %1030 = vst.msk [vmem:[%s1994_s6] sm:$0xff] %vm67_vm0, %v1028_v3 }
0x125a   :  { %1037 = vst.msk [vmem:[#allocation4] sm:$0xff] %vm67_vm0, %v1028_v3 }
0x125b   :  { %1048 = vst.msk [vmem:[#allocation6 + $0x8] sm:$0xff] %vm67_vm0, %v1028_v3 }
0x125c   :  { %1076 = dma.vmem_to_hbm [thread:$0]  %s1069_s29, 256, %s1071_s10, [#allocation7], %s1401_s18, %s1401_s18, %s1402_s19  }
0x1260   :  { %v915_v35 = vpop.permute.xlu0 %914 }
0x1261   :  { %1193 = vst.msk [vmem:[%s1994_s6 + $0x8] sm:$0xff] %vm67_vm0, %v915_v35 }
0x1262   :  { %1391 = dma.done.wait [#allocation7], 256  }
0x1263   :  { %1392 = vsyncadd [#allocation7], 4294967040 }
0x1264   :  { %1393 = dma.done.wait [#allocation9], 256  }
0x1265   :  { %1394 = vsyncadd [#allocation9], 4294967040 }
0x1266   :  { %1108 = vsyncpa [#allocation7], 1 }
0x1267   :  { %1109 = vsyncpa [#allocation9], 1 }

// kernel: encoder_forward.3
= control target key start
LH: loop header
LB: loop body
LE: loop exit
PB: predicated region body
PF: predicated region fallthrough
CT: control target
= control target key end

     0   :  { %vm65_vm0 = vcmask 261120   ;;  %v1311_v2 = vmov 0.0   ;;  %s1313_s16 = smov 64   ;;  %v1314_v23 = vmov 0   ;;  %s1904_s3 = inlined_call_operand.vmem [shape: bf16[32,128], index: 3, kind: input, shape index: {}]   ;;  %s1905_s4 = inlined_call_operand.vmem [shape: bf16[32,128], index: 4, kind: input, shape index: {}]   ;;  %s1906_s1 = inlined_call_operand.vmem [shape: f32[8,8,128], index: 1, kind: input, shape index: {}]   ;;  %s1907_s2 = inlined_call_operand.vmem [shape: f32[8,8,128], index: 2, kind: input, shape index: {}]   ;;  %s1908_s0 = inlined_call_operand.vmem [shape: s32[8,1], index: 0, kind: input, shape index: {}]   ;;  %s1909_s5 = inlined_call_operand.vmem [shape: f32[8,8,32], index: 5, kind: output, shape index: {0}]   ;;  %s1910_s6 = inlined_call_operand.vmem [shape: f32[8,8,32], index: 6, kind: output, shape index: {1}]   ;;  %s1911_s8 = inlined_call_operand.vmem [shape: f32[2,8,32], index: 8, kind: output, shape index: {3}]   ;;  %s1912_s7 = inlined_call_operand.vmem [shape: f32[2,8,32], index: 7, kind: output, shape index: {2}]  }
   0x1   :  { %v1364_v0 = vld [vmem:[%s1904_s3 + $0x8] sm:$0xff]  ;;  %66 = vst.msk [vmem:[#allocation2] sm:$0xff] %vm65_vm0, %v1311_v2  ;;  %v1378_v3 = vld [vmem:[%s1904_s3] sm:$0xff]  ;;  %s1312_s3 = smov 32   ;;  %v1094_v14 = vld [vmem:[%s1907_s2 + $0x38] sm:$0xff]  ;;  %1181 = vset.pattern.permute.xlu2 %v1314_v23  ;;  %1182 = vset.pattern.permute.xlu0 %v1314_v23 }
   0x2   :  { %v1369_v1 = vld [vmem:[%s1905_s4 + $0x8] sm:$0xff]  ;;  %67 = vst.msk [vmem:[#allocation3] sm:$0xff] %vm65_vm0, %v1311_v2  ;;  %116 = vmatpush.bf16.msra.mxu0 %v1364_v0  ;;  %v1383_v4 = vld [vmem:[%s1905_s4] sm:$0xff]  ;;  %254 = vmatpush.bf16.msra.mxu2 %v1364_v0 }
   0x3   :  { %181 = vmatpush.bf16.msra.mxu1 %v1369_v1  ;;  %68 = vst.msk [vmem:[#allocation4] sm:$0xff] %vm65_vm0, %v1311_v2  ;;  %302 = vmatpush.bf16.msra.mxu3 %v1369_v1  ;;  %v88_v11 = vld [vmem:[%s1906_s1] sm:$0xff]  ;;  %v1116_v60 = vld [vmem:[%s1906_s1 + $0x8] sm:$0xff] }
   0x4   :  { %69 = vst.msk [vmem:[#allocation5] sm:$0xff] %vm65_vm0, %v1311_v2  ;;  %v78_v36 = vld [vmem:[%s1908_s0] sm:$0xff]  ;;  %s1315_s0 = smov 96  }
   0x6   :  { %117 = vmatpush.bf16.msra.mxu0 %v1378_v3  ;;  %255 = vmatpush.bf16.msra.mxu2 %v1378_v3 }
   0x7   :  { %182 = vmatpush.bf16.msra.mxu1 %v1383_v4  ;;  %303 = vmatpush.bf16.msra.mxu3 %v1383_v4 }
   0x8   :  { %v1391_v5 = vld [vmem:[#allocation2] sm:$0xff] }
   0x9   :  { %v93_v6 = vpack.c.bf16 %v1391_v5, %v1391_v5  ;;  %v83_v7 = vld [vmem:[#allocation3] sm:$0xff] }
   0xa   :  { %368 = vmatpush.bf16.msrb.mxu0 %v1364_v0  ;;  %v1399_v8 = vld [vmem:[#allocation4] sm:$0xff]  ;;  %131 = vrot.lane.b32.xlu1 %v83_v7, %s1312_s3 }
   0xb   :  { %416 = vmatpush.bf16.msrb.mxu1 %v1369_v1  ;;  %530 = vmatpush.bf16.msrb.mxu3 %v1369_v1  ;;  %v159_v9 = vpack.c.bf16 %v1399_v8, %v1399_v8  ;;  %v85_v10 = vld [vmem:[#allocation5] sm:$0xff] }
   0xc   :  { %1104 = vmatmul.msk.bf16.vlgmr.msra.gmra.mxu0 %vm65_vm0, %v93_v6  ;;  %482 = vmatpush.bf16.msrb.mxu2 %v1364_v0 }
   0xd   :  { %1114 = vmatmul.msk.bf16.vlgmr.msra.gmra.mxu1 %vm65_vm0, %v159_v9 }
   0xe   :  { %369 = vmatpush.bf16.msrb.mxu0 %v1378_v3 }
   0xf   :  { %417 = vmatpush.bf16.msrb.mxu1 %v1383_v4  ;;  %531 = vmatpush.bf16.msrb.mxu3 %v1383_v4 }
  0x10   :  { %483 = vmatpush.bf16.msrb.mxu2 %v1378_v3 }
  0x12   :  { %596 = vmatpush.bf16.msra.mxu0 %v1364_v0  ;;  %196 = vrot.lane.b32.xlu1 %v85_v10, %s1312_s3 }
  0x13   :  { %644 = vmatpush.bf16.msra.mxu1 %v1369_v1 }
  0x16   :  { %597 = vmatpush.bf16.msra.mxu0 %v1378_v3 }
  0x17   :  { %645 = vmatpush.bf16.msra.mxu1 %v1383_v4 }
  0x7c   :  { %v1430_v37 = vpop.permute.xlu1 %131 }
  0x84   :  { %v1436_v41 = vpop.permute.xlu1 %196 }
  0x89   :  { %v119_v12 = vpop.f32.mrf.mxu0 }
  0x8a   :  { %v123_v13 = vadd.f32 %v119_v12, %v88_v11  ;;  %v184_v15 = vpop.f32.mrf.mxu1 }
  0x8b   :  { %v188_v16 = vadd.f32 %v1094_v14, %v184_v15 }
  0x8c   :  { %1183 = vtanh.f32 %v123_v13  ;;  %v124_v21 = vsub.f32 0.0, %v123_v13 }
  0x8d   :  { %1185 = vtanh.f32 %v188_v16  ;;  %v189_v24 = vsub.f32 0.0, %v188_v16 }
  0x8e   :  { %v125_v22 = vmul.f32 1.442695, %v124_v21 }
  0x8f   :  { %v190_v25 = vmul.f32 1.442695, %v189_v24 }
  0x90   :  { %1187 = vpow2.f32 %v125_v22 }
  0x91   :  { %v121_v17 = vpop.f32.mrf.mxu0  ;;  %1189 = vpow2.f32 %v190_v25 }
  0x92   :  { %v1184_v18 = vpop.eup %1183  ;;  %v186_v19 = vpop.f32.mrf.mxu1 }
  0x93   :  { %136 = vrot.lane.b32.xlu0 %v1184_v18, %s1313_s16  ;;  %v1186_v20 = vpop.eup %1185 }
  0x96   :  { %v1188_v26 = vpop.eup %1187 }
  0x97   :  { %v127_v27 = vadd.f32 1.0, %v1188_v26  ;;  %v1190_v28 = vpop.eup %1189 }
  0x98   :  { %v192_v29 = vadd.f32 1.0, %v1190_v28 }
  0x99   :  { %1191 = vrcp.f32 %v127_v27 }
  0x9a   :  { %1193 = vrcp.f32 %v192_v29 }
  0x9b   :  { %201 = vrot.lane.b32.xlu0 %v1186_v20, %s1313_s16 }
  0x9f   :  { %v1192_v30 = vpop.eup %1191 }
  0xa0   :  { %v1194_v33 = vpop.eup %1193  ;;  %v134_v38 = vmul.f32 %v1192_v30, %v1430_v37 }
  0xa1   :  { %v199_v42 = vmul.f32 %v1194_v33, %v1436_v41 }
 0x105   :  { %v137_v31 = vpop.permute.xlu0 %136 }
 0x106   :  { %v139_v32 = vmul.f32 %v1192_v30, %v137_v31 }
 0x108   :  { %141 = vrot.lane.b32.xlu2 %v139_v32, %s1312_s3 }
 0x10d   :  { %v202_v34 = vpop.permute.xlu0 %201 }
 0x10e   :  { %v204_v35 = vmul.f32 %v1194_v33, %v202_v34 }
 0x110   :  { %206 = vrot.lane.b32.xlu2 %v204_v35, %s1312_s3 }
 0x118   :  { %80 = vperm.xlu2 %1181, %v78_v36  }
 0x162   :  { %v142_v39 = vpop.permute.xlu2 %141 }
 0x163   :  { %v1433_v40 = vadd.f32 %v142_v39, %v134_v38 }
 0x165   :  { %1195 = vtanh.f32 %v1433_v40 }
 0x16a   :  { %v207_v43 = vpop.permute.xlu2 %206 }
 0x16b   :  { %v1196_v44 = vpop.eup %1195  ;;  %v1439_v45 = vadd.f32 %v207_v43, %v199_v42 }
 0x16c   :  { %147 = vrot.lane.b32.xlu0 %v1196_v44, %s1313_s16  ;;  %v1124_v44 = vld [vmem:[%s1906_s1 + $0x10] sm:$0xff] }
 0x16d   :  { %1197 = vtanh.f32 %v1439_v45 }
 0x172   :  { %v1448_v48 = vpop.permute.xlu2 %80 }
 0x173   :  { %v1198_v46 = vpop.eup %1197  ;;  %vm1095_vm1 = vcmp.gt.s32.totalorder %v1448_v48, 0  ;;  %vm1105_vm2 = vcmp.gt.s32.totalorder %v1448_v48, 7  ;;  %vm1118_vm3 = vcmp.gt.s32.totalorder %v1448_v48, 1  ;;  %vm1120_vm4 = vcmp.gt.s32.totalorder %v1448_v48, 6 }
 0x174   :  { %212 = vrot.lane.b32.xlu1 %v1198_v46, %s1313_s16  ;;  %152 = vrot.lane.b32.xlu0 %v1391_v5, %s1315_s0  ;;  %v1117_v5 = vld [vmem:[%s1907_s2 + $0x30] sm:$0xff]  ;;  %v1486_v24 = vsel %vm1095_vm1, %v1433_v40, %v1430_v37  ;;  %v1496_v28 = vsel %vm1105_vm2, %v1439_v45, %v1436_v41  ;;  %vm1126_vm5 = vcmp.gt.s32.totalorder %v1448_v48, 2  ;;  %vm1128_vm6 = vcmp.gt.s32.totalorder %v1448_v48, 5 }
 0x175   :  { %vm1134_vm7 = vcmp.gt.s32.totalorder %v1448_v48, 3  ;;  %vm1136_vm8 = vcmp.gt.s32.totalorder %v1448_v48, 4 }
 0x17c   :  { %217 = vrot.lane.b32.xlu1 %v1399_v8, %s1315_s0 }
 0x1de   :  { %v148_v47 = vpop.permute.xlu0 %147 }
 0x1df   :  { %v150_v49 = vmul.f32 %v1192_v30, %v148_v47  ;;  %v1125_v47 = vld [vmem:[%s1907_s2 + $0x28] sm:$0xff] }
 0x1e6   :  { %v213_v50 = vpop.permute.xlu1 %212  ;;  %v153_v51 = vpop.permute.xlu0 %152 }
 0x1e7   :  { %v1453_v52 = vsel %vm1095_vm1, %v150_v49, %v153_v51  ;;  %v215_v54 = vmul.f32 %v1194_v33, %v213_v50 }
 0x1e8   :  { %v241_v53 = vpack.c.bf16 %v1453_v52, %v1453_v52 }
 0x1ea   :  { %243 = vrot.lane.b32.xlu2 %v241_v53, %s1312_s3 }
 0x1ee   :  { %v218_v55 = vpop.permute.xlu1 %217 }
 0x1ef   :  { %v1461_v56 = vsel %vm1105_vm2, %v215_v54, %v218_v55 }
 0x1f0   :  { %v289_v57 = vpack.c.bf16 %v1461_v56, %v1461_v56 }
 0x1f2   :  { %291 = vrot.lane.b32.xlu0 %v289_v57, %s1312_s3 }
 0x244   :  { %v244_v58 = vpop.permute.xlu2 %243 }
 0x245   :  { %1119 = vmatmul.msk.bf16.vlgmr.msra.gmra.mxu2 %vm65_vm0, %v244_v58 }
 0x246   :  { %710 = vmatpush.bf16.msra.mxu2 %v1364_v0 }
 0x24a   :  { %711 = vmatpush.bf16.msra.mxu2 %v1378_v3 }
 0x264   :  { %v292_v59 = vpop.permute.xlu0 %291 }
 0x265   :  { %1121 = vmatmul.msk.bf16.vlgmr.msra.gmra.mxu3 %vm65_vm0, %v292_v59 }
 0x266   :  { %758 = vmatpush.bf16.msra.mxu3 %v1369_v1 }
 0x26a   :  { %759 = vmatpush.bf16.msra.mxu3 %v1383_v4 }
 0x2c8   :  { %v257_v61 = vpop.f32.mrf.mxu2 }
 0x2c9   :  { %v261_v62 = vadd.f32 %v1116_v60, %v257_v61 }
 0x2cb   :  { %1199 = vtanh.f32 %v261_v62  ;;  %v262_v10 = vsub.f32 0.0, %v261_v62 }
 0x2cd   :  { %v263_v11 = vmul.f32 1.442695, %v262_v10 }
 0x2d0   :  { %v259_v63 = vpop.f32.mrf.mxu2 }
 0x2d1   :  { %v1200_v2 = vpop.eup %1199 }
 0x2d2   :  { %270 = vrot.lane.b32.xlu1 %v1200_v2, %s1313_s16 }
 0x2e8   :  { %v305_v6 = vpop.f32.mrf.mxu3 }
 0x2e9   :  { %v309_v7 = vadd.f32 %v1117_v5, %v305_v6 }
 0x2eb   :  { %1201 = vtanh.f32 %v309_v7  ;;  %v310_v12 = vsub.f32 0.0, %v309_v7 }
 0x2ec   :  { %1203 = vpow2.f32 %v263_v11 }
 0x2ed   :  { %v311_v13 = vmul.f32 1.442695, %v310_v12 }
 0x2ef   :  { %1205 = vpow2.f32 %v311_v13 }
 0x2f0   :  { %v307_v8 = vpop.f32.mrf.mxu3 }
 0x2f1   :  { %v1202_v9 = vpop.eup %1201 }
 0x2f2   :  { %318 = vrot.lane.b32.xlu2 %v1202_v9, %s1313_s16  ;;  %v1204_v14 = vpop.eup %1203 }
 0x2f3   :  { %v265_v15 = vadd.f32 1.0, %v1204_v14 }
 0x2f5   :  { %1207 = vrcp.f32 %v265_v15  ;;  %v1206_v16 = vpop.eup %1205 }
 0x2f6   :  { %v313_v17 = vadd.f32 1.0, %v1206_v16 }
 0x2f8   :  { %1209 = vrcp.f32 %v313_v17 }
 0x2fb   :  { %v1208_v18 = vpop.eup %1207 }
 0x2fc   :  { %v268_v25 = vmul.f32 %v1208_v18, %v1486_v24 }
 0x2fe   :  { %v1210_v21 = vpop.eup %1209 }
 0x2ff   :  { %v316_v29 = vmul.f32 %v1210_v21, %v1496_v28 }
 0x344   :  { %v271_v19 = vpop.permute.xlu1 %270 }
 0x345   :  { %v273_v20 = vmul.f32 %v1208_v18, %v271_v19 }
 0x347   :  { %275 = vrot.lane.b32.xlu0 %v273_v20, %s1312_s3 }
 0x34c   :  { %v319_v22 = vpop.permute.xlu2 %318 }
 0x34d   :  { %v321_v23 = vmul.f32 %v1210_v21, %v319_v22 }
 0x34f   :  { %323 = vrot.lane.b32.xlu1 %v321_v23, %s1312_s3 }
 0x3b9   :  { %v276_v26 = vpop.permute.xlu0 %275 }
 0x3ba   :  { %v1489_v27 = vadd.f32 %v276_v26, %v268_v25 }
 0x3bc   :  { %1211 = vtanh.f32 %v1489_v27  ;;  %v1542_v11 = vsel %vm1118_vm3, %v1489_v27, %v1486_v24 }
 0x3c1   :  { %v324_v30 = vpop.permute.xlu1 %323 }
 0x3c2   :  { %v1212_v31 = vpop.eup %1211  ;;  %v1499_v32 = vadd.f32 %v324_v30, %v316_v29 }
 0x3c3   :  { %281 = vrot.lane.b32.xlu2 %v1212_v31, %s1313_s16  ;;  %v1132_v31 = vld [vmem:[%s1906_s1 + $0x18] sm:$0xff] }
 0x3c4   :  { %1213 = vtanh.f32 %v1499_v32  ;;  %v1553_v16 = vsel %vm1120_vm4, %v1499_v32, %v1496_v28 }
 0x3ca   :  { %v1214_v33 = vpop.eup %1213 }
 0x3cb   :  { %329 = vrot.lane.b32.xlu0 %v1214_v33, %s1313_s16 }
 0x41d   :  { %v282_v34 = vpop.permute.xlu2 %281 }
 0x41e   :  { %v284_v35 = vmul.f32 %v1208_v18, %v282_v34 }
 0x420   :  { %v1508_v36 = vsel %vm1118_vm3, %v284_v35, %v1453_v52 }
 0x421   :  { %v355_v37 = vpack.c.bf16 %v1508_v36, %v1508_v36 }
 0x423   :  { %357 = vrot.lane.b32.xlu1 %v355_v37, %s1312_s3 }
 0x43d   :  { %v330_v38 = vpop.permute.xlu0 %329 }
 0x43e   :  { %v332_v39 = vmul.f32 %v1210_v21, %v330_v38 }
 0x440   :  { %v1517_v40 = vsel %vm1120_vm4, %v332_v39, %v1461_v56 }
 0x441   :  { %v403_v41 = vpack.c.bf16 %v1517_v40, %v1517_v40 }
 0x443   :  { %405 = vrot.lane.b32.xlu2 %v403_v41, %s1312_s3 }
 0x495   :  { %v358_v42 = vpop.permute.xlu1 %357 }
 0x496   :  { %1127 = vmatmul.msk.bf16.vlgmr.msrb.gmra.mxu0 %vm65_vm0, %v358_v42 }
 0x497   :  { %824 = vmatpush.bf16.msrb.mxu0 %v1364_v0 }
 0x49b   :  { %825 = vmatpush.bf16.msrb.mxu0 %v1378_v3 }
 0x49d   :  { %v406_v43 = vpop.permute.xlu2 %405 }
 0x49e   :  { %1129 = vmatmul.msk.bf16.vlgmr.msrb.gmra.mxu1 %vm65_vm0, %v406_v43 }
 0x49f   :  { %872 = vmatpush.bf16.msrb.mxu1 %v1369_v1 }
 0x4a3   :  { %873 = vmatpush.bf16.msrb.mxu1 %v1383_v4 }
 0x513   :  { %v371_v45 = vpop.f32.mrf.mxu0 }
 0x514   :  { %v375_v46 = vadd.f32 %v1124_v44, %v371_v45 }
 0x516   :  { %1215 = vtanh.f32 %v375_v46  ;;  %v376_v57 = vsub.f32 0.0, %v375_v46 }
 0x518   :  { %v377_v58 = vmul.f32 1.442695, %v376_v57 }
 0x51b   :  { %v373_v49 = vpop.f32.mrf.mxu0  ;;  %v419_v50 = vpop.f32.mrf.mxu1 }
 0x51c   :  { %v1216_v51 = vpop.eup %1215  ;;  %v423_v53 = vadd.f32 %v1125_v47, %v419_v50 }
 0x51d   :  { %384 = vrot.lane.b32.xlu0 %v1216_v51, %s1313_s16 }
 0x51e   :  { %1217 = vtanh.f32 %v423_v53  ;;  %v424_v59 = vsub.f32 0.0, %v423_v53 }
 0x51f   :  { %1219 = vpow2.f32 %v377_v58 }
 0x520   :  { %v425_v60 = vmul.f32 1.442695, %v424_v59 }
 0x522   :  { %1221 = vpow2.f32 %v425_v60 }
 0x523   :  { %v421_v54 = vpop.f32.mrf.mxu1 }
 0x524   :  { %v1218_v55 = vpop.eup %1217 }
 0x525   :  { %432 = vrot.lane.b32.xlu1 %v1218_v55, %s1313_s16  ;;  %v1220_v61 = vpop.eup %1219 }
 0x526   :  { %v379_v62 = vadd.f32 1.0, %v1220_v61 }
 0x528   :  { %1223 = vrcp.f32 %v379_v62  ;;  %v1222_v63 = vpop.eup %1221 }
 0x529   :  { %v427_v2 = vadd.f32 1.0, %v1222_v63 }
 0x52b   :  { %1225 = vrcp.f32 %v427_v2 }
 0x52e   :  { %v1224_v5 = vpop.eup %1223 }
 0x52f   :  { %v382_v12 = vmul.f32 %v1224_v5, %v1542_v11 }
 0x531   :  { %v1226_v8 = vpop.eup %1225 }
 0x532   :  { %v430_v17 = vmul.f32 %v1226_v8, %v1553_v16 }
 0x58f   :  { %v385_v6 = vpop.permute.xlu0 %384 }
 0x590   :  { %v387_v7 = vmul.f32 %v1224_v5, %v385_v6 }
 0x592   :  { %389 = vrot.lane.b32.xlu2 %v387_v7, %s1312_s3 }
 0x597   :  { %v433_v9 = vpop.permute.xlu1 %432 }
 0x598   :  { %v435_v10 = vmul.f32 %v1226_v8, %v433_v9 }
 0x59a   :  { %437 = vrot.lane.b32.xlu0 %v435_v10, %s1312_s3 }
 0x5ec   :  { %v390_v13 = vpop.permute.xlu2 %389 }
 0x5ed   :  { %v1545_v14 = vadd.f32 %v390_v13, %v382_v12 }
 0x5ef   :  { %1227 = vtanh.f32 %v1545_v14  ;;  %v1598_v55 = vsel %vm1126_vm5, %v1545_v14, %v1542_v11 }
 0x5f5   :  { %v1228_v15 = vpop.eup %1227 }
 0x5f6   :  { %395 = vrot.lane.b32.xlu1 %v1228_v15, %s1313_s16 }
 0x60c   :  { %v438_v18 = vpop.permute.xlu0 %437 }
 0x60d   :  { %v1556_v19 = vadd.f32 %v438_v18, %v430_v17 }
 0x60f   :  { %1229 = vtanh.f32 %v1556_v19  ;;  %v1605_v60 = vsel %vm1128_vm6, %v1556_v19, %v1553_v16  ;;  %v1140_v16 = vld [vmem:[%s1906_s1 + $0x20] sm:$0xff] }
 0x615   :  { %v1230_v20 = vpop.eup %1229 }
 0x616   :  { %443 = vrot.lane.b32.xlu2 %v1230_v20, %s1313_s16 }
 0x668   :  { %v396_v21 = vpop.permute.xlu1 %395 }
 0x669   :  { %v398_v22 = vmul.f32 %v1224_v5, %v396_v21  ;;  %v1141_v21 = vld [vmem:[%s1907_s2 + $0x18] sm:$0xff] }
 0x66b   :  { %v1564_v23 = vsel %vm1126_vm5, %v398_v22, %v1508_v36 }
 0x66c   :  { %v469_v24 = vpack.c.bf16 %v1564_v23, %v1564_v23 }
 0x66e   :  { %471 = vrot.lane.b32.xlu0 %v469_v24, %s1312_s3 }
 0x670   :  { %v444_v25 = vpop.permute.xlu2 %443 }
 0x671   :  { %v446_v26 = vmul.f32 %v1226_v8, %v444_v25 }
 0x673   :  { %v1573_v27 = vsel %vm1128_vm6, %v446_v26, %v1517_v40 }
 0x674   :  { %v517_v28 = vpack.c.bf16 %v1573_v27, %v1573_v27 }
 0x676   :  { %519 = vrot.lane.b32.xlu1 %v517_v28, %s1312_s3 }
 0x6e0   :  { %v472_v29 = vpop.permute.xlu0 %471 }
 0x6e1   :  { %1135 = vmatmul.msk.bf16.vlgmr.msrb.gmra.mxu2 %vm65_vm0, %v472_v29 }
 0x6e2   :  { %937 = vmatpush.bf16.msrb.mxu2 %v1364_v0  ;;  %v1133_v0 = vld [vmem:[%s1907_s2 + $0x20] sm:$0xff] }
 0x6e6   :  { %938 = vmatpush.bf16.msrb.mxu2 %v1378_v3 }
 0x6e8   :  { %v520_v30 = vpop.permute.xlu1 %519 }
 0x6e9   :  { %1137 = vmatmul.msk.bf16.vlgmr.msrb.gmra.mxu3 %vm65_vm0, %v520_v30 }
 0x6ea   :  { %985 = vmatpush.bf16.msrb.mxu3 %v1369_v1 }
 0x6ee   :  { %986 = vmatpush.bf16.msrb.mxu3 %v1383_v4 }
 0x764   :  { %v485_v32 = vpop.f32.mrf.mxu2 }
 0x765   :  { %v489_v33 = vadd.f32 %v1132_v31, %v485_v32 }
 0x767   :  { %1231 = vtanh.f32 %v489_v33  ;;  %v490_v38 = vsub.f32 0.0, %v489_v33 }
 0x769   :  { %v491_v39 = vmul.f32 1.442695, %v490_v38 }
 0x76c   :  { %v487_v34 = vpop.f32.mrf.mxu2  ;;  %v533_v3 = vpop.f32.mrf.mxu3 }
 0x76d   :  { %v1232_v35 = vpop.eup %1231  ;;  %v537_v37 = vadd.f32 %v1133_v0, %v533_v3 }
 0x76e   :  { %498 = vrot.lane.b32.xlu2 %v1232_v35, %s1313_s16 }
 0x76f   :  { %1233 = vtanh.f32 %v537_v37  ;;  %v538_v46 = vsub.f32 0.0, %v537_v37 }
 0x770   :  { %1235 = vpow2.f32 %v491_v39 }
 0x771   :  { %v539_v47 = vmul.f32 1.442695, %v538_v46 }
 0x774   :  { %v535_v1 = vpop.f32.mrf.mxu3 }
 0x775   :  { %v1234_v4 = vpop.eup %1233 }
 0x776   :  { %546 = vrot.lane.b32.xlu0 %v1234_v4, %s1313_s16  ;;  %v1236_v41 = vpop.eup %1235 }
 0x777   :  { %v493_v42 = vadd.f32 1.0, %v1236_v41 }
 0x779   :  { %1237 = vrcp.f32 %v493_v42 }
 0x77a   :  { %1239 = vpow2.f32 %v539_v47 }
 0x77f   :  { %v1238_v43 = vpop.eup %1237 }
 0x780   :  { %v1240_v49 = vpop.eup %1239  ;;  %v496_v57 = vmul.f32 %v1238_v43, %v1598_v55 }
 0x781   :  { %v541_v50 = vadd.f32 1.0, %v1240_v49 }
 0x783   :  { %1241 = vrcp.f32 %v541_v50 }
 0x789   :  { %v1242_v51 = vpop.eup %1241 }
 0x78a   :  { %v544_v61 = vmul.f32 %v1242_v51, %v1605_v60 }
 0x7c8   :  { %v499_v44 = vpop.permute.xlu2 %498 }
 0x7c9   :  { %v501_v45 = vmul.f32 %v1238_v43, %v499_v44 }
 0x7cb   :  { %503 = vrot.lane.b32.xlu1 %v501_v45, %s1312_s3 }
 0x7e8   :  { %v547_v53 = vpop.permute.xlu0 %546 }
 0x7e9   :  { %v549_v54 = vmul.f32 %v1242_v51, %v547_v53 }
 0x7eb   :  { %551 = vrot.lane.b32.xlu2 %v549_v54, %s1312_s3 }
 0x83d   :  { %v504_v58 = vpop.permute.xlu1 %503 }
 0x83e   :  { %v506_v59 = vadd.f32 %v504_v58, %v496_v57 }
 0x840   :  { %1243 = vtanh.f32 %v506_v59  ;;  %v1643_v39 = vsel %vm1134_vm7, %v506_v59, %v1598_v55 }
 0x845   :  { %v552_v62 = vpop.permute.xlu2 %551 }
 0x846   :  { %v1244_v63 = vpop.eup %1243  ;;  %v554_v2 = vadd.f32 %v552_v62, %v544_v61 }
 0x847   :  { %509 = vrot.lane.b32.xlu0 %v1244_v63, %s1313_s16  ;;  %v1148_v63 = vld [vmem:[%s1906_s1 + $0x28] sm:$0xff] }
 0x848   :  { %1245 = vtanh.f32 %v554_v2  ;;  %v1649_v44 = vsel %vm1136_vm8, %v554_v2, %v1605_v60 }
 0x84e   :  { %v1246_v5 = vpop.eup %1245 }
 0x84f   :  { %557 = vrot.lane.b32.xlu1 %v1246_v5, %s1313_s16 }
 0x8b9   :  { %v510_v6 = vpop.permute.xlu0 %509 }
 0x8ba   :  { %v512_v7 = vmul.f32 %v1238_v43, %v510_v6  ;;  %v1149_v6 = vld [vmem:[%s1907_s2 + $0x10] sm:$0xff] }
 0x8bc   :  { %v1614_v8 = vsel %vm1134_vm7, %v512_v7, %v1564_v23 }
 0x8bd   :  { %v583_v9 = vpack.c.bf16 %v1614_v8, %v1614_v8 }
 0x8bf   :  { %585 = vrot.lane.b32.xlu2 %v583_v9, %s1312_s3 }
 0x8c1   :  { %v558_v10 = vpop.permute.xlu1 %557 }
 0x8c2   :  { %v560_v11 = vmul.f32 %v1242_v51, %v558_v10 }
 0x8c4   :  { %v1623_v12 = vsel %vm1136_vm8, %v560_v11, %v1573_v27 }
 0x8c5   :  { %v631_v13 = vpack.c.bf16 %v1623_v12, %v1623_v12 }
 0x8c7   :  { %633 = vrot.lane.b32.xlu0 %v631_v13, %s1312_s3 }
 0x919   :  { %v586_v14 = vpop.permute.xlu2 %585 }
 0x91a   :  { %1143 = vmatmul.msk.bf16.vlgmr.msra.gmra.mxu0 %vm65_vm0, %v586_v14 }
 0x939   :  { %v634_v15 = vpop.permute.xlu0 %633 }
 0x93a   :  { %1145 = vmatmul.msk.bf16.vlgmr.msra.gmra.mxu1 %vm65_vm0, %v634_v15 }
 0x997   :  { %v599_v17 = vpop.f32.mrf.mxu0 }
 0x998   :  { %v603_v18 = vadd.f32 %v1140_v16, %v599_v17 }
 0x99a   :  { %1247 = vtanh.f32 %v603_v18  ;;  %v604_v28 = vsub.f32 0.0, %v603_v18 }
 0x99c   :  { %v605_v29 = vmul.f32 1.442695, %v604_v28 }
 0x99f   :  { %v601_v19 = vpop.f32.mrf.mxu0 }
 0x9a0   :  { %v1248_v20 = vpop.eup %1247 }
 0x9a1   :  { %612 = vrot.lane.b32.xlu1 %v1248_v20, %s1313_s16 }
 0x9b7   :  { %v647_v22 = vpop.f32.mrf.mxu1 }
 0x9b8   :  { %v651_v24 = vadd.f32 %v1141_v21, %v647_v22 }
 0x9ba   :  { %1249 = vtanh.f32 %v651_v24  ;;  %v652_v30 = vsub.f32 0.0, %v651_v24 }
 0x9bb   :  { %1251 = vpow2.f32 %v605_v29 }
 0x9bc   :  { %v653_v31 = vmul.f32 1.442695, %v652_v30 }
 0x9be   :  { %1253 = vpow2.f32 %v653_v31 }
 0x9bf   :  { %v649_v25 = vpop.f32.mrf.mxu1 }
 0x9c0   :  { %v1250_v26 = vpop.eup %1249 }
 0x9c1   :  { %660 = vrot.lane.b32.xlu2 %v1250_v26, %s1313_s16  ;;  %v1252_v32 = vpop.eup %1251 }
 0x9c2   :  { %v607_v33 = vadd.f32 1.0, %v1252_v32 }
 0x9c4   :  { %1255 = vrcp.f32 %v607_v33  ;;  %v1254_v0 = vpop.eup %1253 }
 0x9c5   :  { %v655_v34 = vadd.f32 1.0, %v1254_v0 }
 0x9c7   :  { %1257 = vrcp.f32 %v655_v34 }
 0x9ca   :  { %v1256_v3 = vpop.eup %1255 }
 0x9cb   :  { %v610_v41 = vmul.f32 %v1256_v3, %v1643_v39 }
 0x9cd   :  { %v1258_v1 = vpop.eup %1257 }
 0x9ce   :  { %v658_v45 = vmul.f32 %v1258_v1, %v1649_v44 }
 0xa13   :  { %v613_v35 = vpop.permute.xlu1 %612 }
 0xa14   :  { %v615_v37 = vmul.f32 %v1256_v3, %v613_v35 }
 0xa16   :  { %617 = vrot.lane.b32.xlu0 %v615_v37, %s1312_s3 }
 0xa1b   :  { %v661_v4 = vpop.permute.xlu2 %660 }
 0xa1c   :  { %v663_v38 = vmul.f32 %v1258_v1, %v661_v4 }
 0xa1e   :  { %665 = vrot.lane.b32.xlu1 %v663_v38, %s1312_s3 }
 0xa88   :  { %v618_v42 = vpop.permute.xlu0 %617 }
 0xa89   :  { %v620_v43 = vadd.f32 %v618_v42, %v610_v41 }
 0xa8b   :  { %1259 = vtanh.f32 %v620_v43  ;;  %v1685_v31 = vsel %vm1136_vm8, %v620_v43, %v1643_v39 }
 0xa90   :  { %v666_v46 = vpop.permute.xlu1 %665 }
 0xa91   :  { %v1260_v47 = vpop.eup %1259  ;;  %v668_v49 = vadd.f32 %v666_v46, %v658_v45 }
 0xa92   :  { %623 = vrot.lane.b32.xlu2 %v1260_v47, %s1313_s16 }
 0xa93   :  { %1261 = vtanh.f32 %v668_v49 }
 0xa99   :  { %v1262_v50 = vpop.eup %1261 }
 0xa9a   :  { %671 = vrot.lane.b32.xlu0 %v1262_v50, %s1313_s16  ;;  %v1156_v50 = vld [vmem:[%s1906_s1 + $0x30] sm:$0xff] }
 0xaec   :  { %v624_v51 = vpop.permute.xlu2 %623 }
 0xaed   :  { %v626_v53 = vmul.f32 %v1256_v3, %v624_v51  ;;  %v676_v3 = vsel %vm1134_vm7, %v668_v49, %v1649_v44 }
 0xaef   :  { %v1657_v54 = vsel %vm1136_vm8, %v626_v53, %v1614_v8 }
 0xaf0   :  { %v697_v55 = vpack.c.bf16 %v1657_v54, %v1657_v54 }
 0xaf2   :  { %699 = vrot.lane.b32.xlu1 %v697_v55, %s1312_s3  ;;  %v1157_v55 = vld [vmem:[%s1907_s2 + $0x8] sm:$0xff] }
 0xb0c   :  { %v672_v57 = vpop.permute.xlu0 %671 }
 0xb0d   :  { %v674_v58 = vmul.f32 %v1258_v1, %v672_v57 }
 0xb0f   :  { %v1665_v59 = vsel %vm1134_vm7, %v674_v58, %v1623_v12 }
 0xb10   :  { %v745_v60 = vpack.c.bf16 %v1665_v59, %v1665_v59 }
 0xb12   :  { %747 = vrot.lane.b32.xlu2 %v745_v60, %s1312_s3 }
 0xb64   :  { %v700_v61 = vpop.permute.xlu1 %699 }
 0xb65   :  { %1151 = vmatmul.msk.bf16.vlgmr.msra.gmra.mxu2 %vm65_vm0, %v700_v61 }
 0xb6c   :  { %v748_v62 = vpop.permute.xlu2 %747 }
 0xb6d   :  { %1153 = vmatmul.msk.bf16.vlgmr.msra.gmra.mxu3 %vm65_vm0, %v748_v62 }
 0xbe8   :  { %v713_v2 = vpop.f32.mrf.mxu2 }
 0xbe9   :  { %v717_v5 = vadd.f32 %v1148_v63, %v713_v2 }
 0xbeb   :  { %1263 = vtanh.f32 %v717_v5  ;;  %v718_v15 = vsub.f32 0.0, %v717_v5 }
 0xbed   :  { %v719_v16 = vmul.f32 1.442695, %v718_v15 }
 0xbf0   :  { %v715_v7 = vpop.f32.mrf.mxu2  ;;  %v761_v9 = vpop.f32.mrf.mxu3 }
 0xbf1   :  { %v1264_v10 = vpop.eup %1263  ;;  %v765_v11 = vadd.f32 %v1149_v6, %v761_v9 }
 0xbf2   :  { %726 = vrot.lane.b32.xlu0 %v1264_v10, %s1313_s16 }
 0xbf3   :  { %1265 = vtanh.f32 %v765_v11  ;;  %v766_v17 = vsub.f32 0.0, %v765_v11 }
 0xbf4   :  { %1267 = vpow2.f32 %v719_v16 }
 0xbf5   :  { %v767_v18 = vmul.f32 1.442695, %v766_v17 }
 0xbf7   :  { %1269 = vpow2.f32 %v767_v18 }
 0xbf8   :  { %v763_v13 = vpop.f32.mrf.mxu3 }
 0xbf9   :  { %v1266_v14 = vpop.eup %1265 }
 0xbfa   :  { %774 = vrot.lane.b32.xlu1 %v1266_v14, %s1313_s16  ;;  %v1268_v19 = vpop.eup %1267 }
 0xbfb   :  { %v721_v20 = vadd.f32 1.0, %v1268_v19 }
 0xbfd   :  { %1271 = vrcp.f32 %v721_v20  ;;  %v1270_v21 = vpop.eup %1269 }
 0xbfe   :  { %v769_v22 = vadd.f32 1.0, %v1270_v21 }
 0xc00   :  { %1273 = vrcp.f32 %v769_v22 }
 0xc03   :  { %v1272_v24 = vpop.eup %1271 }
 0xc04   :  { %v724_v32 = vmul.f32 %v1272_v24, %v1685_v31 }
 0xc06   :  { %v1274_v28 = vpop.eup %1273 }
 0xc07   :  { %v772_v35 = vmul.f32 %v1274_v28, %v676_v3 }
 0xc64   :  { %v727_v25 = vpop.permute.xlu0 %726 }
 0xc65   :  { %v729_v26 = vmul.f32 %v1272_v24, %v727_v25 }
 0xc67   :  { %731 = vrot.lane.b32.xlu2 %v729_v26, %s1312_s3 }
 0xc6c   :  { %v775_v29 = vpop.permute.xlu1 %774 }
 0xc6d   :  { %v777_v30 = vmul.f32 %v1274_v28, %v775_v29 }
 0xc6f   :  { %779 = vrot.lane.b32.xlu0 %v777_v30, %s1312_s3 }
 0xcc1   :  { %v732_v33 = vpop.permute.xlu2 %731 }
 0xcc2   :  { %v734_v0 = vadd.f32 %v732_v33, %v724_v32 }
 0xcc4   :  { %1275 = vtanh.f32 %v734_v0  ;;  %v1724_v20 = vsel %vm1128_vm6, %v734_v0, %v1685_v31 }
 0xcca   :  { %v1276_v34 = vpop.eup %1275 }
 0xccb   :  { %737 = vrot.lane.b32.xlu1 %v1276_v34, %s1313_s16 }
 0xce1   :  { %v780_v37 = vpop.permute.xlu0 %779 }
 0xce2   :  { %v782_v1 = vadd.f32 %v780_v37, %v772_v35 }
 0xce4   :  { %1277 = vtanh.f32 %v782_v1  ;;  %v1732_v25 = vsel %vm1126_vm5, %v782_v1, %v676_v3 }
 0xcea   :  { %v1278_v4 = vpop.eup %1277 }
 0xceb   :  { %785 = vrot.lane.b32.xlu2 %v1278_v4, %s1313_s16 }
 0xd3d   :  { %v738_v38 = vpop.permute.xlu1 %737 }
 0xd3e   :  { %v740_v39 = vmul.f32 %v1272_v24, %v738_v38 }
 0xd40   :  { %v1696_v41 = vsel %vm1128_vm6, %v740_v39, %v1657_v54  ;;  %v1164_v39 = vld [vmem:[%s1906_s1 + $0x38] sm:$0xff] }
 0xd41   :  { %v811_v42 = vpack.c.bf16 %v1696_v41, %v1696_v41 }
 0xd43   :  { %813 = vrot.lane.b32.xlu0 %v811_v42, %s1312_s3 }
 0xd45   :  { %v786_v43 = vpop.permute.xlu2 %785 }
 0xd46   :  { %v788_v44 = vmul.f32 %v1274_v28, %v786_v43 }
 0xd48   :  { %v1704_v45 = vsel %vm1126_vm5, %v788_v44, %v1665_v59 }
 0xd49   :  { %v859_v46 = vpack.c.bf16 %v1704_v45, %v1704_v45 }
 0xd4b   :  { %861 = vrot.lane.b32.xlu1 %v859_v46, %s1312_s3 }
 0xdb5   :  { %v814_v47 = vpop.permute.xlu0 %813 }
 0xdb6   :  { %1159 = vmatmul.msk.bf16.vlgmr.msrb.gmra.mxu0 %vm65_vm0, %v814_v47  ;;  %v921_v47 = vld [vmem:[%s1907_s2] sm:$0xff] }
 0xdbd   :  { %v862_v49 = vpop.permute.xlu1 %861 }
 0xdbe   :  { %1161 = vmatmul.msk.bf16.vlgmr.msrb.gmra.mxu1 %vm65_vm0, %v862_v49 }
 0xe33   :  { %v827_v51 = vpop.f32.mrf.mxu0 }
 0xe34   :  { %v831_v53 = vadd.f32 %v1156_v50, %v827_v51 }
 0xe36   :  { %1279 = vtanh.f32 %v831_v53  ;;  %v832_v2 = vsub.f32 0.0, %v831_v53 }
 0xe38   :  { %v833_v5 = vmul.f32 1.442695, %v832_v2 }
 0xe3b   :  { %v829_v57 = vpop.f32.mrf.mxu0  ;;  %v875_v58 = vpop.f32.mrf.mxu1 }
 0xe3c   :  { %v1280_v60 = vpop.eup %1279  ;;  %v879_v61 = vadd.f32 %v1157_v55, %v875_v58 }
 0xe3d   :  { %840 = vrot.lane.b32.xlu2 %v1280_v60, %s1313_s16 }
 0xe3e   :  { %1281 = vtanh.f32 %v879_v61  ;;  %v880_v13 = vsub.f32 0.0, %v879_v61 }
 0xe3f   :  { %1283 = vpow2.f32 %v833_v5 }
 0xe40   :  { %v881_v14 = vmul.f32 1.442695, %v880_v13 }
 0xe43   :  { %v877_v62 = vpop.f32.mrf.mxu1 }
 0xe44   :  { %v1282_v63 = vpop.eup %1281 }
 0xe45   :  { %888 = vrot.lane.b32.xlu0 %v1282_v63, %s1313_s16  ;;  %v1284_v6 = vpop.eup %1283 }
 0xe46   :  { %v835_v7 = vadd.f32 1.0, %v1284_v6 }
 0xe48   :  { %1285 = vrcp.f32 %v835_v7 }
 0xe49   :  { %1287 = vpow2.f32 %v881_v14 }
 0xe4e   :  { %v1286_v9 = vpop.eup %1285 }
 0xe4f   :  { %v1288_v15 = vpop.eup %1287  ;;  %v838_v21 = vmul.f32 %v1286_v9, %v1724_v20 }
 0xe50   :  { %v883_v16 = vadd.f32 1.0, %v1288_v15 }
 0xe52   :  { %1289 = vrcp.f32 %v883_v16 }
 0xe58   :  { %v1290_v17 = vpop.eup %1289 }
 0xe59   :  { %v886_v26 = vmul.f32 %v1290_v17, %v1732_v25 }
 0xe97   :  { %v841_v10 = vpop.permute.xlu2 %840 }
 0xe98   :  { %v843_v11 = vmul.f32 %v1286_v9, %v841_v10 }
 0xe9a   :  { %845 = vrot.lane.b32.xlu1 %v843_v11, %s1312_s3 }
 0xeb7   :  { %v889_v18 = vpop.permute.xlu0 %888 }
 0xeb8   :  { %v891_v19 = vmul.f32 %v1290_v17, %v889_v18 }
 0xeba   :  { %893 = vrot.lane.b32.xlu2 %v891_v19, %s1312_s3 }
 0xf0c   :  { %v846_v22 = vpop.permute.xlu1 %845 }
 0xf0d   :  { %v1727_v24 = vadd.f32 %v846_v22, %v838_v21 }
 0xf0f   :  { %1291 = vtanh.f32 %v1727_v24  ;;  %v856_v13 = vsel %vm1120_vm4, %v1727_v24, %v1724_v20 }
 0xf14   :  { %v894_v28 = vpop.permute.xlu2 %893 }
 0xf15   :  { %v1292_v29 = vpop.eup %1291  ;;  %v1735_v30 = vadd.f32 %v894_v28, %v886_v26 }
 0xf16   :  { %851 = vrot.lane.b32.xlu0 %v1292_v29, %s1313_s16 }
 0xf17   :  { %1293 = vtanh.f32 %v1735_v30 }
 0xf1d   :  { %v1294_v31 = vpop.eup %1293 }
 0xf1e   :  { %899 = vrot.lane.b32.xlu1 %v1294_v31, %s1313_s16 }
 0xf88   :  { %v852_v32 = vpop.permute.xlu0 %851 }
 0xf89   :  { %v854_v33 = vmul.f32 %v1286_v9, %v852_v32 }
 0xf8b   :  { %v1743_v0 = vsel %vm1120_vm4, %v854_v33, %v1696_v41 }
 0xf8c   :  { %v924_v34 = vpack.c.bf16 %v1743_v0, %v1743_v0 }
 0xf8e   :  { %926 = vrot.lane.b32.xlu2 %v924_v34, %s1312_s3 }
 0xf90   :  { %v900_v3 = vpop.permute.xlu1 %899 }
 0xf91   :  { %v902_v35 = vmul.f32 %v1290_v17, %v900_v3 }
 0xf93   :  { %v1751_v37 = vsel %vm1118_vm3, %v902_v35, %v1704_v45 }
 0xf94   :  { %v972_v1 = vpack.c.bf16 %v1751_v37, %v1751_v37 }
 0xf96   :  { %974 = vrot.lane.b32.xlu0 %v972_v1, %s1312_s3 }
 0xfe8   :  { %v927_v4 = vpop.permute.xlu2 %926 }
 0xfe9   :  { %1166 = vmatmul.msk.bf16.vlgmr.msrb.gmra.mxu2 %vm65_vm0, %v927_v4 }
0x1008   :  { %v975_v38 = vpop.permute.xlu0 %974 }
0x1009   :  { %1168 = vmatmul.msk.bf16.vlgmr.msrb.gmra.mxu3 %vm65_vm0, %v975_v38 }
0x106c   :  { %v940_v42 = vpop.f32.mrf.mxu2 }
0x106d   :  { %v944_v43 = vadd.f32 %v1164_v39, %v940_v42 }
0x106f   :  { %1295 = vtanh.f32 %v944_v43  ;;  %v945_v55 = vsub.f32 0.0, %v944_v43 }
0x1071   :  { %v946_v57 = vmul.f32 1.442695, %v945_v55 }
0x1074   :  { %v942_v44 = vpop.f32.mrf.mxu2 }
0x1075   :  { %v1296_v46 = vpop.eup %1295 }
0x1076   :  { %953 = vrot.lane.b32.xlu1 %v1296_v46, %s1313_s16 }
0x108c   :  { %v988_v49 = vpop.f32.mrf.mxu3 }
0x108d   :  { %v992_v50 = vadd.f32 %v988_v49, %v921_v47 }
0x108f   :  { %1297 = vtanh.f32 %v992_v50  ;;  %v993_v58 = vsub.f32 0.0, %v992_v50 }
0x1090   :  { %1299 = vpow2.f32 %v946_v57 }
0x1091   :  { %v994_v60 = vmul.f32 1.442695, %v993_v58 }
0x1093   :  { %1301 = vpow2.f32 %v994_v60 }
0x1094   :  { %v990_v51 = vpop.f32.mrf.mxu3 }
0x1095   :  { %v1298_v53 = vpop.eup %1297 }
0x1096   :  { %1001 = vrot.lane.b32.xlu2 %v1298_v53, %s1313_s16  ;;  %v1300_v61 = vpop.eup %1299 }
0x1097   :  { %v948_v62 = vadd.f32 1.0, %v1300_v61 }
0x1099   :  { %1303 = vrcp.f32 %v948_v62  ;;  %v1302_v63 = vpop.eup %1301 }
0x109a   :  { %v996_v2 = vadd.f32 1.0, %v1302_v63 }
0x109c   :  { %1305 = vrcp.f32 %v996_v2 }
0x109f   :  { %v1304_v5 = vpop.eup %1303 }
0x10a0   :  { %v951_v14 = vmul.f32 %v1304_v5, %v856_v13 }
0x10a2   :  { %v1306_v9 = vpop.eup %1305 }
0x10e8   :  { %v954_v6 = vpop.permute.xlu1 %953 }
0x10e9   :  { %v956_v7 = vmul.f32 %v1304_v5, %v954_v6 }
0x10eb   :  { %958 = vrot.lane.b32.xlu0 %v956_v7, %s1312_s3 }
0x10f0   :  { %v1002_v10 = vpop.permute.xlu2 %1001 }
0x10f1   :  { %v1004_v11 = vmul.f32 %v1306_v9, %v1002_v10 }
0x10f3   :  { %1006 = vrot.lane.b32.xlu1 %v1004_v11, %s1312_s3 }
0x10fb   :  { %223 = vrot.lane.b32.xlu1 %v1453_v52, %s1312_s3 }
0x1103   :  { %342 = vrot.lane.b32.xlu1 %v1517_v40, %s1312_s3  ;;  %v904_v40 = vsel %vm1118_vm3, %v1735_v30, %v1732_v25 }
0x110b   :  { %564 = vrot.lane.b32.xlu1 %v1614_v8, %s1312_s3  ;;  %v999_v8 = vmul.f32 %v1306_v9, %v904_v40 }
0x1113   :  { %684 = vrot.lane.b32.xlu1 %v1665_v59, %s1312_s3 }
0x111b   :  { %906 = vrot.lane.b32.xlu1 %v1743_v0, %s1312_s3 }
0x115d   :  { %v959_v15 = vpop.permute.xlu0 %958 }
0x115e   :  { %v961_v52 = vadd.f32 %v959_v15, %v951_v14 }
0x1160   :  { %1307 = vtanh.f32 %v961_v52 }
0x1165   :  { %v1007_v16 = vpop.permute.xlu1 %1006 }
0x1166   :  { %v1308_v59 = vpop.eup %1307  ;;  %v1009_v17 = vadd.f32 %v1007_v16, %v999_v8 }
0x1167   :  { %964 = vrot.lane.b32.xlu2 %v1308_v59, %s1313_s16 }
0x1168   :  { %1309 = vtanh.f32 %v1009_v17 }
0x116d   :  { %v224_v18 = vpop.permute.xlu1 %223 }
0x116e   :  { %v1310_v19 = vpop.eup %1309  ;;  %226 = vst.msk [vmem:[%s1909_s5] sm:$0xff] %vm65_vm0, %v224_v18 }
0x116f   :  { %228 = vrot.lane.b32.xlu2 %v1461_v56, %s1312_s3  ;;  %1012 = vrot.lane.b32.xlu0 %v1310_v19, %s1313_s16 }
0x1175   :  { %v343_v20 = vpop.permute.xlu1 %342 }
0x1176   :  { %1123 = vst.msk [vmem:[%s1910_s6 + $0x30] sm:$0xff] %vm65_vm0, %v343_v20 }
0x1177   :  { %450 = vrot.lane.b32.xlu2 %v1564_v23, %s1312_s3  ;;  %336 = vrot.lane.b32.xlu0 %v1508_v36, %s1312_s3  ;;  %v969_v23 = vsel %vm1105_vm2, %v961_v52, %v856_v13 }
0x117d   :  { %v565_v21 = vpop.permute.xlu1 %564 }
0x117e   :  { %1138 = vst.msk [vmem:[%s1909_s5 + $0x18] sm:$0xff] %vm65_vm0, %v565_v21 }
0x117f   :  { %570 = vrot.lane.b32.xlu2 %v1623_v12, %s1312_s3  ;;  %456 = vrot.lane.b32.xlu0 %v1573_v27, %s1312_s3 }
0x1185   :  { %v685_v56 = vpop.permute.xlu1 %684 }
0x1186   :  { %1147 = vst.msk [vmem:[%s1910_s6 + $0x18] sm:$0xff] %vm65_vm0, %v685_v56 }
0x1187   :  { %792 = vrot.lane.b32.xlu2 %v1696_v41, %s1312_s3  ;;  %678 = vrot.lane.b32.xlu0 %v1657_v54, %s1312_s3 }
0x118d   :  { %v907_v36 = vpop.permute.xlu1 %906 }
0x118e   :  { %1162 = vst.msk [vmem:[%s1909_s5 + $0x30] sm:$0xff] %vm65_vm0, %v907_v36 }
0x118f   :  { %912 = vrot.lane.b32.xlu2 %v1751_v37, %s1312_s3  ;;  %798 = vrot.lane.b32.xlu0 %v1704_v45, %s1312_s3  ;;  %v1017_v45 = vsel %vm1095_vm1, %v1009_v17, %v904_v40 }
0x1197   :  { %1031 = vrot.lane.b32.xlu2 %v969_v23, %s1315_s0 }
0x11c1   :  { %v965_v27 = vpop.permute.xlu2 %964 }
0x11c2   :  { %v967_v12 = vmul.f32 %v1304_v5, %v965_v27 }
0x11c4   :  { %v968_v54 = vsel %vm1105_vm2, %v967_v12, %v1743_v0 }
0x11c5   :  { %1019 = vrot.lane.b32.xlu0 %v968_v54, %s1312_s3 }
0x11c9   :  { %v229_v41 = vpop.permute.xlu2 %228 }
0x11ca   :  { %1115 = vst.msk [vmem:[%s1910_s6 + $0x38] sm:$0xff] %vm65_vm0, %v229_v41 }
0x11cd   :  { %1037 = vrot.lane.b32.xlu0 %v1017_v45, %s1315_s0 }
0x11d1   :  { %v451_v22 = vpop.permute.xlu2 %450 }
0x11d2   :  { %1130 = vst.msk [vmem:[%s1909_s5 + $0x10] sm:$0xff] %vm65_vm0, %v451_v22 }
0x11d9   :  { %v571_v24 = vpop.permute.xlu2 %570 }
0x11da   :  { %1139 = vst.msk [vmem:[%s1910_s6 + $0x20] sm:$0xff] %vm65_vm0, %v571_v24 }
0x11e1   :  { %v1013_v25 = vpop.permute.xlu0 %1012  ;;  %v793_v26 = vpop.permute.xlu2 %792 }
0x11e2   :  { %v1015_v28 = vmul.f32 %v1306_v9, %v1013_v25  ;;  %1154 = vst.msk [vmem:[%s1909_s5 + $0x28] sm:$0xff] %vm65_vm0, %v793_v26 }
0x11e4   :  { %v1016_v29 = vsel %vm1095_vm1, %v1015_v28, %v1751_v37 }
0x11e5   :  { %1025 = vrot.lane.b32.xlu1 %v1016_v29, %s1312_s3 }
0x11e9   :  { %v337_v30 = vpop.permute.xlu0 %336  ;;  %v913_v31 = vpop.permute.xlu2 %912 }
0x11ea   :  { %1122 = vst.msk [vmem:[%s1909_s5 + $0x8] sm:$0xff] %vm65_vm0, %v337_v30 }
0x11eb   :  { %1163 = vst.msk [vmem:[%s1910_s6 + $0x8] sm:$0xff] %vm65_vm0, %v913_v31 }
0x11f1   :  { %v457_v32 = vpop.permute.xlu0 %456  ;;  %v1032_v33 = vpop.permute.xlu2 %1031 }
0x11f2   :  { %1131 = vst.msk [vmem:[%s1910_s6 + $0x28] sm:$0xff] %vm65_vm0, %v457_v32 }
0x11f3   :  { %1034 = vst.msk [vmem:[#allocation3] sm:$0xff] %vm65_vm0, %v1032_v33 }
0x11f4   :  { %1047 = vst.msk [vmem:[%s1911_s8] sm:$0xff] %vm65_vm0, %v1032_v33 }
0x11f9   :  { %v679_v48 = vpop.permute.xlu0 %678 }
0x11fa   :  { %1146 = vst.msk [vmem:[%s1909_s5 + $0x20] sm:$0xff] %vm65_vm0, %v679_v48 }
0x1201   :  { %v799_v0 = vpop.permute.xlu0 %798 }
0x1202   :  { %1155 = vst.msk [vmem:[%s1910_s6 + $0x10] sm:$0xff] %vm65_vm0, %v799_v0 }
0x1237   :  { %v1020_v34 = vpop.permute.xlu0 %1019 }
0x1238   :  { %1169 = vst.msk [vmem:[%s1909_s5 + $0x38] sm:$0xff] %vm65_vm0, %v1020_v34 }
0x1239   :  { %1029 = vst.msk [vmem:[#allocation2] sm:$0xff] %vm65_vm0, %v1020_v34 }
0x123a   :  { %1044 = vst.msk [vmem:[%s1912_s7] sm:$0xff] %vm65_vm0, %v1020_v34 }
0x123f   :  { %v1038_v3 = vpop.permute.xlu0 %1037 }
0x1240   :  { %1040 = vst.msk [vmem:[#allocation5] sm:$0xff] %vm65_vm0, %v1038_v3 }
0x1241   :  { %1171 = vst.msk [vmem:[%s1911_s8 + $0x8] sm:$0xff] %vm65_vm0, %v1038_v3 }
0x1257   :  { %v1026_v35 = vpop.permute.xlu1 %1025 }
0x1258   :  { %1028 = vst.msk [vmem:[%s1910_s6] sm:$0xff] %vm65_vm0, %v1026_v35 }
0x1259   :  { %1035 = vst.msk [vmem:[#allocation4] sm:$0xff] %vm65_vm0, %v1026_v35 }
0x125a   :  { %1170 = vst.msk [vmem:[%s1912_s7 + $0x8] sm:$0xff] %vm65_vm0, %v1026_v35 }

</bundles_post_ra>
